<compile_context>
chip_gen: v6e
topology: v6e:2x2x1
jax: 0.10.0
libtpu: 0.0.40
codegen_flags: <defaults>
</compile_context>

<pallas_src>
import functools
import math

import numpy as np
import jax
import jax.numpy as jnp
from jax.experimental import pallas as pl
from jax.experimental.pallas import tpu as pltpu

BN_EPS = 1e-5


# --------------------------- per-generation tuning ---------------------------
def _tpu_defaults():
    """Returns (use_256_wide_tiles, vmem_limit_bytes) for the local TPU."""
    wide_mxu = True
    vmem_limit = 48 * 1024 * 1024            # safe on v7x (64 MiB physical VMEM)
    try:
        cap = int(pltpu.get_tpu_info().vmem_capacity_bytes)
        vmem_limit = max(32 * 1024 * 1024,
                         min(100 * 1024 * 1024, (cap * 3) // 4))
    except Exception:                        # conservative fallback
        pass
    try:
        kind = jax.devices()[0].device_kind.lower()
        if ("v5 lite" in kind) or ("v5e" in kind) or ("v5lite" in kind):
            wide_mxu = False                 # v5e MXU is 128 wide -> keep tN=128
    except Exception:
        pass
    return wide_mxu, vmem_limit


def _pick_tn(cout, wide_mxu):
    if wide_mxu and cout % 256 == 0:
        return 256                           # fill the 256-wide MXU on v6e/v7x
    if cout % 128 == 0:
        return 128                           # lane-dense output tiles
    # TODO(synk): pad cout to a multiple of 128 instead of masked partial stores.
    return cout


# ------------------------------ Pallas kernels ------------------------------
def _im2col_patches(x_ref, H, W, dtype):
    """Build (H*W, 9*Cin) conv patches from a padded (H+2, W+2, Cin) block.

    Three W-shift concats are done once on the padded block, then three
    H-shift concats of that row-patch -- the 3x3 taps end up folded into the
    contraction dim so the conv becomes a single deep-K matmul.
    """
    x = x_ref[...].astype(dtype)                               # (H+2, W+2, Cin)
    cin = x.shape[-1]
    rows = jnp.concatenate([x[:, kw:kw + W, :] for kw in range(3)],
                           axis=-1)                            # (H+2, W, 3*Cin)
    patches = jnp.concatenate([rows[kh:kh + H, :, :] for kh in range(3)],
                              axis=-1)                         # (H, W, 9*Cin)
    return patches.reshape(H * W, 9 * cin)


def conv_bn_relu_pad_kernel(x_ref, w_ref, b_ref, o_ref, *, H, W):
    """3x3 conv (taps folded into K) + BN bias + ReLU; emits a ZERO-PADDED tile.

    x_ref: (H+2, W+2, Cin) padded activations (batch dim squeezed)
    w_ref: (9*Cin, tN) bf16 weights (BN scale folded in)
    b_ref: (1, tN) f32 fused BN bias
    o_ref: (H+2, W+2, tN) -- interior = activation, 1-px border = zeros, so the
           next conv can consume it directly (no HBM pad round-trip).
    """
    patches = _im2col_patches(x_ref, H, W, w_ref.dtype)
    acc = jnp.dot(patches, w_ref[...], preferred_element_type=jnp.float32)
    y = jnp.maximum(acc + b_ref[...], 0.0)
    y = y.reshape(H, W, y.shape[-1]).astype(o_ref.dtype)
    o_ref[...] = jnp.zeros(o_ref.shape, o_ref.dtype)           # zero halo
    o_ref[pl.ds(1, H), pl.ds(1, W), :] = y                     # interior


def conv_bn_relu_pool_kernel(x_ref, w_ref, b_ref, o_ref, *, H, W, ph, pw):
    """Same conv + BN bias + ReLU, plus a ph x pw average pool fused as VPU adds.

    o_ref: (Hp*Wp, tN) pooled output tile.
    """
    patches = _im2col_patches(x_ref, H, W, w_ref.dtype)
    acc = jnp.dot(patches, w_ref[...], preferred_element_type=jnp.float32)
    y = jnp.maximum(acc + b_ref[...], 0.0)                     # (H*W, tN) f32
    tn = y.shape[-1]
    Hp, Wp = H // ph, W // pw

    # Width pool: flat row index is h*W + (j*pw + k), so the pw window entries
    # are consecutive rows of the flat matrix.
    yw = y.reshape(H * Wp, pw, tn)
    acc_w = yw[:, 0, :]
    for k in range(1, pw):
        acc_w = acc_w + yw[:, k, :]                            # (H*Wp, tN)

    # Height pool: in acc_w (row = h*Wp + j), the rows for h = i*ph + k form
    # the contiguous slice [k*Wp, (k+1)*Wp) of the (Hp, ph*Wp, tN) reshape.
    yh = acc_w.reshape(Hp, ph * Wp, tn)
    pooled = yh[:, 0:Wp, :]
    for k in range(1, ph):
        pooled = pooled + yh[:, k * Wp:(k + 1) * Wp, :]
    pooled = pooled * (1.0 / (ph * pw))                        # (Hp, Wp, tN)

    o_ref[...] = pooled.reshape(Hp * Wp, tn).astype(o_ref.dtype)


# --------------------------- Pallas call wrapper -----------------------------
def conv3x3_bn_relu(xp, w_flat, bias, *, mode, pool_size=(2, 2),
                    out_dtype=jnp.float32):
    """One fused conv stage of the ConvBlock.

    xp     : (B, H+2, W+2, Cin) zero-padded activations (bf16 preferred)
    w_flat : (9*Cin, Cout) bf16 weights with the eval-BN scale folded in
    bias   : (1, Cout) f32 fused BN bias
    mode   : "pad"  -> (B, H+2, W+2, Cout), zero 1-px border (feeds the next conv)
             "pool" -> (B, (H//ph)*(W//pw), Cout), avg pool fused in the epilogue
    """
    B, Hp2, Wp2, cin = xp.shape
    H, W = Hp2 - 2, Wp2 - 2
    K, cout = w_flat.shape
    assert K == 9 * cin

    wide_mxu, vmem_limit = _tpu_defaults()
    tN = _pick_tn(cout, wide_mxu)
    n_j = cout // tN

    # Keep the larger operand resident across the inner grid axis (its block
    # index is constant there, so Pallas skips the re-DMA).
    act_bytes = Hp2 * Wp2 * cin * xp.dtype.itemsize
    w_tile_bytes = K * tN * w_flat.dtype.itemsize
    if act_bytes >= w_tile_bytes:
        grid = (B, n_j)                                   # activation resident
        x_map = lambda b, j: (b, 0, 0, 0)
        w_map = lambda b, j: (0, j)
        v_map = lambda b, j: (0, j)
        o3_map = lambda b, j: (b, 0, j)
        o4_map = lambda b, j: (b, 0, 0, j)
    else:
        grid = (n_j, B)                                   # weight tile resident
        x_map = lambda j, b: (b, 0, 0, 0)
        w_map = lambda j, b: (0, j)
        v_map = lambda j, b: (0, j)
        o3_map = lambda j, b: (b, 0, j)
        o4_map = lambda j, b: (b, 0, 0, j)

    in_specs = [
        pl.BlockSpec((None, Hp2, Wp2, cin), x_map),       # padded activation block
        pl.BlockSpec((K, tN), w_map),                     # bf16 weight tile
        pl.BlockSpec((1, tN), v_map),                     # fused BN bias
    ]

    if mode == "pad":
        kernel = functools.partial(conv_bn_relu_pad_kernel, H=H, W=W)
        out_shape = jax.ShapeDtypeStruct((B, Hp2, Wp2, cout), out_dtype)
        out_spec = pl.BlockSpec((None, Hp2, Wp2, tN), o4_map)
    elif mode == "pool":
        ph, pw = pool_size
        # TODO(synk): floor-mode crop for non-divisible spatial sizes.
        assert H % ph == 0 and W % pw == 0
        out_rows = (H // ph) * (W // pw)
        kernel = functools.partial(conv_bn_relu_pool_kernel, H=H, W=W, ph=ph, pw=pw)
        out_shape = jax.ShapeDtypeStruct((B, out_rows, cout), out_dtype)
        out_spec = pl.BlockSpec((None, out_rows, tN), o3_map)
    else:
        raise ValueError(mode)

    return pl.pallas_call(
        kernel,
        out_shape=out_shape,
        grid=grid,
        in_specs=in_specs,
        out_specs=out_spec,
        compiler_params=pltpu.CompilerParams(
            dimension_semantics=("parallel", "parallel"),
            vmem_limit_bytes=vmem_limit),
    )(xp, w_flat, bias)


# ----------------------------- params / helpers ------------------------------
def init_conv_block_params(key, in_channels, out_channels):
    """Matches ConvBlock.init_weight(): xavier_uniform conv weights (no bias),
    BN gamma=1 / beta=0; eval-mode BN with fresh running stats folds to
    scale = 1/sqrt(1+eps), bias = 0.  The BN scale is folded into the conv
    weights in f32 BEFORE the bf16 cast (intentional inference approximation)."""
    bn_scale = 1.0 / math.sqrt(1.0 + BN_EPS)

    def conv_w(k, cin, cout):
        fan_in, fan_out = cin * 9, cout * 9
        bound = math.sqrt(6.0 / (fan_in + fan_out))
        w = jax.random.uniform(k, (3, 3, cin, cout), jnp.float32, -bound, bound)
        w = w * bn_scale                       # fold eval-BN scale (per cout)
        # fold the 3x3 taps into the contraction dim: (kh, kw, cin) -> K = 9*cin
        return w.reshape(9 * cin, cout).astype(jnp.bfloat16)

    k1, k2 = jax.random.split(key)
    return {
        "w1": conv_w(k1, in_channels, out_channels),
        "b1": jnp.zeros((1, out_channels), jnp.float32),
        "w2": conv_w(k2, out_channels, out_channels),
        "b2": jnp.zeros((1, out_channels), jnp.float32),
    }


# --------------------------------- forward -----------------------------------
def conv_block_forward(params, x_nchw, pool_size=(2, 2), pool_type="avg"):
    """ConvBlock.forward (eval). x: (B, Cin, H, W) -> (B, Cout, H//2, W//2)."""
    if pool_type != "avg":
        # TODO(synk): 'max' / 'avg+max' pool types not implemented (module default is 'avg').
        raise NotImplementedError(pool_type)

    x = jnp.transpose(x_nchw, (0, 2, 3, 1)).astype(jnp.bfloat16)   # NCHW -> NHWC, bf16
    B, H, W, _ = x.shape
    cout = params["w1"].shape[1]
    xp = jnp.pad(x, ((0, 0), (1, 1), (1, 1), (0, 0)))              # pad block input once (Cin small)

    # conv1 + bn1 + relu -> bf16 activation emitted already zero-padded
    y_pad = conv3x3_bn_relu(xp, params["w1"], params["b1"],
                            mode="pad", out_dtype=jnp.bfloat16)

    # conv2 + bn2 + relu + avg pool (fused VPU adds), consumes y_pad directly
    z = conv3x3_bn_relu(y_pad, params["w2"], params["b2"],
                        mode="pool", pool_size=pool_size, out_dtype=jnp.float32)

    Hp, Wp = H // pool_size[0], W // pool_size[1]
    z = z.reshape(B, Hp, Wp, cout)
    return jnp.transpose(z, (0, 3, 1, 2))                          # NHWC -> NCHW


# ------------------------------ JAX reference ---------------------------------
def conv_block_ref(params, x_nchw, pool_size=(2, 2)):
    """Plain-JAX reference with the same bf16-rounded weights/activations
    (f32 math) for validating the Pallas kernels."""
    x = jnp.transpose(x_nchw, (0, 2, 3, 1)).astype(jnp.bfloat16).astype(jnp.float32)

    def conv_bias_relu(h, w_flat, b):
        cin = h.shape[-1]
        w = w_flat.astype(jnp.float32).reshape(3, 3, cin, -1)
        y = jax.lax.conv_general_dilated(
            h, w, window_strides=(1, 1), padding="SAME",
            dimension_numbers=("NHWC", "HWIO", "NHWC"),
            precision=jax.lax.Precision.HIGHEST)
        return jnp.maximum(y + b, 0.0)

    y = conv_bias_relu(x, params["w1"], params["b1"])
    y = y.astype(jnp.bfloat16).astype(jnp.float32)   # kernel stores this in bf16
    y = conv_bias_relu(y, params["w2"], params["b2"])

    B, H, W, C = y.shape
    ph, pw = pool_size
    y = y[:, : (H // ph) * ph, : (W // pw) * pw, :]
    y = y.reshape(B, H // ph, ph, W // pw, pw, C).mean(axis=(2, 4))
    return jnp.transpose(y, (0, 3, 1, 2))


# ----------------------------------- main -------------------------------------
if __name__ == "__main__":
    key = jax.random.PRNGKey(0)
    k_param, k_x = jax.random.split(key)

    B, C_IN, H, W = 2, 4, 16, 16
    C_OUT = 128                       # lane-dense output channels

    params = init_conv_block_params(k_param, C_IN, C_OUT)
    x = jax.random.normal(k_x, (B, C_IN, H, W), jnp.float32)

    out = jax.jit(conv_block_forward)(params, x)
    out = jax.block_until_ready(out)

    assert out.shape == (B, C_OUT, H // 2, W // 2), out.shape
    assert bool(jnp.all(jnp.isfinite(out)))
    assert bool(jnp.all(out >= 0.0))

    ref = conv_block_ref(params, x)
    np.testing.assert_allclose(np.asarray(out), np.asarray(ref), rtol=2e-2, atol=2e-2)

    print("KERNEL_OK")
</pallas_src>

<mosaic_0001>
module attributes {stable_mosaic.version = 11 : i64} {
  func.func @conv_bn_relu_pad_kernel(%arg0: i32, %arg1: i32, %arg2: memref<1x18x18x4xbf16, #tpu.memory_space<vmem>>, %arg3: memref<36x128xbf16, #tpu.memory_space<vmem>>, %arg4: memref<1x128xf32, #tpu.memory_space<vmem>>, %arg5: memref<1x18x18x128xbf16, #tpu.memory_space<vmem>>) attributes {dimension_semantics = [#tpu.dimension_semantics<parallel>, #tpu.dimension_semantics<parallel>], iteration_bounds = array<i64: 1, 2>, scalar_prefetch = 0 : i64, scratch_operands = 0 : i64, tpu.core_type = #tpu.core_type<tc>, window_params = [{transform_indices = @transform_0, window_bounds = array<i64: 1, 18, 18, 4>}, {transform_indices = @transform_1, window_bounds = array<i64: 36, 128>}, {transform_indices = @transform_2, window_bounds = array<i64: 1, 128>}, {transform_indices = @transform_3, window_bounds = array<i64: 1, 18, 18, 128>}]} {
    %c0 = arith.constant 0 : index
    %c0_0 = arith.constant 0 : index
    %c0_1 = arith.constant 0 : index
    %c0_2 = arith.constant 0 : index
    %0 = vector.load %arg2[%c0, %c0_0, %c0_1, %c0_2] : memref<1x18x18x4xbf16, #tpu.memory_space<vmem>>, vector<1x18x18x4xbf16>
    %1 = vector.shape_cast %0 : vector<1x18x18x4xbf16> to vector<18x18x4xbf16>
    %2 = vector.extract_strided_slice %1 {offsets = [0, 0, 0], sizes = [18, 16, 4], strides = [1, 1, 1]} : vector<18x18x4xbf16> to vector<18x16x4xbf16>
    %3 = vector.extract_strided_slice %1 {offsets = [0, 1, 0], sizes = [18, 16, 4], strides = [1, 1, 1]} : vector<18x18x4xbf16> to vector<18x16x4xbf16>
    %4 = vector.extract_strided_slice %1 {offsets = [0, 2, 0], sizes = [18, 16, 4], strides = [1, 1, 1]} : vector<18x18x4xbf16> to vector<18x16x4xbf16>
    %5 = tpu.concatenate %2, %3, %4 in 2 : vector<18x16x4xbf16>, vector<18x16x4xbf16>, vector<18x16x4xbf16> -> vector<18x16x12xbf16>
    %6 = vector.extract_strided_slice %5 {offsets = [0, 0, 0], sizes = [16, 16, 12], strides = [1, 1, 1]} : vector<18x16x12xbf16> to vector<16x16x12xbf16>
    %7 = vector.extract_strided_slice %5 {offsets = [1, 0, 0], sizes = [16, 16, 12], strides = [1, 1, 1]} : vector<18x16x12xbf16> to vector<16x16x12xbf16>
    %8 = vector.extract_strided_slice %5 {offsets = [2, 0, 0], sizes = [16, 16, 12], strides = [1, 1, 1]} : vector<18x16x12xbf16> to vector<16x16x12xbf16>
    %9 = tpu.concatenate %6, %7, %8 in 2 : vector<16x16x12xbf16>, vector<16x16x12xbf16>, vector<16x16x12xbf16> -> vector<16x16x36xbf16>
    %10 = vector.shape_cast %9 : vector<16x16x36xbf16> to vector<256x36xbf16>
    %c0_3 = arith.constant 0 : index
    %c0_4 = arith.constant 0 : index
    %11 = vector.load %arg3[%c0_3, %c0_4] : memref<36x128xbf16, #tpu.memory_space<vmem>>, vector<36x128xbf16>
    %cst = arith.constant dense<0.000000e+00> : vector<256x128xf32>
    %12 = tpu.matmul %10, %11, %cst {dimension_numbers = #tpu.dot_dimension_numbers<[1], [0], [0], [1], [0, 0, 1, 1], [], []>} : vector<256x36xbf16>, vector<36x128xbf16>, vector<256x128xf32> -> vector<256x128xf32>
    %c0_5 = arith.constant 0 : index
    %c0_6 = arith.constant 0 : index
    %13 = vector.load %arg4[%c0_5, %c0_6] : memref<1x128xf32, #tpu.memory_space<vmem>>, vector<1x128xf32>
    %14 = vector.broadcast %13 : vector<1x128xf32> to vector<256x128xf32>
    %15 = arith.addf %12, %14 : vector<256x128xf32>
    %cst_7 = arith.constant 0.000000e+00 : f32
    %16 = vector.broadcast %cst_7 : f32 to vector<256x128xf32>
    %17 = arith.maximumf %15, %16 : vector<256x128xf32>
    %18 = vector.shape_cast %17 : vector<256x128xf32> to vector<16x16x128xf32>
    %19 = arith.truncf %18 : vector<16x16x128xf32> to vector<16x16x128xbf16>
    %cst_8 = arith.constant 0.000000e+00 : bf16
    %20 = vector.broadcast %cst_8 : bf16 to vector<18x18x128xbf16>
    %c0_9 = arith.constant 0 : index
    %c0_10 = arith.constant 0 : index
    %c0_11 = arith.constant 0 : index
    %c0_12 = arith.constant 0 : index
    %21 = vector.load %arg5[%c0_9, %c0_10, %c0_11, %c0_12] : memref<1x18x18x128xbf16, #tpu.memory_space<vmem>>, vector<1x18x18x128xbf16>
    %22 = vector.shape_cast %21 : vector<1x18x18x128xbf16> to vector<18x18x128xbf16>
    %23 = vector.shape_cast %20 : vector<18x18x128xbf16> to vector<1x18x18x128xbf16>
    tpu.vector_store %arg5[%c0_9, %c0_10, %c0_11, %c0_12], %23 {strides = array<i32>} : memref<1x18x18x128xbf16, #tpu.memory_space<vmem>>, vector<1x18x18x128xbf16>,
    %c0_13 = arith.constant 0 : index
    %c1 = arith.constant 1 : index
    %c1_14 = arith.constant 1 : index
    %c0_15 = arith.constant 0 : index
    %24 = vector.load %arg5[%c0_13, %c1, %c1_14, %c0_15] : memref<1x18x18x128xbf16, #tpu.memory_space<vmem>>, vector<1x16x16x128xbf16>
    %25 = vector.shape_cast %24 : vector<1x16x16x128xbf16> to vector<16x16x128xbf16>
    %26 = vector.shape_cast %19 : vector<16x16x128xbf16> to vector<1x16x16x128xbf16>
    tpu.vector_store %arg5[%c0_13, %c1, %c1_14, %c0_15], %26 {strides = array<i32>} : memref<1x18x18x128xbf16, #tpu.memory_space<vmem>>, vector<1x16x16x128xbf16>,
    return
  }
  func.func @transform_0(%arg0: i32, %arg1: i32) -> (i32, i32, i32, i32) {
    %c0_i32 = arith.constant 0 : i32
    %c0_i32_0 = arith.constant 0 : i32
    %c0_i32_1 = arith.constant 0 : i32
    %c0_i32_2 = arith.constant 0 : i32
    return %arg1, %c0_i32, %c0_i32_0, %c0_i32_1 : i32, i32, i32, i32
  }
  func.func @transform_1(%arg0: i32, %arg1: i32) -> (i32, i32) {
    %c0_i32 = arith.constant 0 : i32
    %c0_i32_0 = arith.constant 0 : i32
    return %c0_i32, %arg0 : i32, i32
  }
  func.func @transform_2(%arg0: i32, %arg1: i32) -> (i32, i32) {
    %c0_i32 = arith.constant 0 : i32
    %c0_i32_0 = arith.constant 0 : i32
    return %c0_i32, %arg0 : i32, i32
  }
  func.func @transform_3(%arg0: i32, %arg1: i32) -> (i32, i32, i32, i32) {
    %c0_i32 = arith.constant 0 : i32
    %c0_i32_0 = arith.constant 0 : i32
    %c0_i32_1 = arith.constant 0 : i32
    return %arg1, %c0_i32, %c0_i32_0, %arg0 : i32, i32, i32, i32
  }
}

module attributes {stable_mosaic.version = 11 : i64} {
  func.func @conv_bn_relu_pool_kernel(%arg0: i32, %arg1: i32, %arg2: memref<1x18x18x128xbf16, #tpu.memory_space<vmem>>, %arg3: memref<1152x128xbf16, #tpu.memory_space<vmem>>, %arg4: memref<1x128xf32, #tpu.memory_space<vmem>>, %arg5: memref<1x64x128xf32, #tpu.memory_space<vmem>>) attributes {dimension_semantics = [#tpu.dimension_semantics<parallel>, #tpu.dimension_semantics<parallel>], iteration_bounds = array<i64: 1, 2>, scalar_prefetch = 0 : i64, scratch_operands = 0 : i64, tpu.core_type = #tpu.core_type<tc>, window_params = [{transform_indices = @transform_0, window_bounds = array<i64: 1, 18, 18, 128>}, {transform_indices = @transform_1, window_bounds = array<i64: 1152, 128>}, {transform_indices = @transform_2, window_bounds = array<i64: 1, 128>}, {transform_indices = @transform_3, window_bounds = array<i64: 1, 64, 128>}]} {
    %c0 = arith.constant 0 : index
    %c0_0 = arith.constant 0 : index
    %c0_1 = arith.constant 0 : index
    %c0_2 = arith.constant 0 : index
    %0 = vector.load %arg2[%c0, %c0_0, %c0_1, %c0_2] : memref<1x18x18x128xbf16, #tpu.memory_space<vmem>>, vector<1x18x18x128xbf16>
    %1 = vector.shape_cast %0 : vector<1x18x18x128xbf16> to vector<18x18x128xbf16>
    %2 = vector.extract_strided_slice %1 {offsets = [0, 0, 0], sizes = [18, 16, 128], strides = [1, 1, 1]} : vector<18x18x128xbf16> to vector<18x16x128xbf16>
    %3 = vector.extract_strided_slice %1 {offsets = [0, 1, 0], sizes = [18, 16, 128], strides = [1, 1, 1]} : vector<18x18x128xbf16> to vector<18x16x128xbf16>
    %4 = vector.extract_strided_slice %1 {offsets = [0, 2, 0], sizes = [18, 16, 128], strides = [1, 1, 1]} : vector<18x18x128xbf16> to vector<18x16x128xbf16>
    %5 = tpu.concatenate %2, %3, %4 in 2 : vector<18x16x128xbf16>, vector<18x16x128xbf16>, vector<18x16x128xbf16> -> vector<18x16x384xbf16>
    %6 = vector.extract_strided_slice %5 {offsets = [0, 0, 0], sizes = [16, 16, 384], strides = [1, 1, 1]} : vector<18x16x384xbf16> to vector<16x16x384xbf16>
    %7 = vector.extract_strided_slice %5 {offsets = [1, 0, 0], sizes = [16, 16, 384], strides = [1, 1, 1]} : vector<18x16x384xbf16> to vector<16x16x384xbf16>
    %8 = vector.extract_strided_slice %5 {offsets = [2, 0, 0], sizes = [16, 16, 384], strides = [1, 1, 1]} : vector<18x16x384xbf16> to vector<16x16x384xbf16>
    %9 = tpu.concatenate %6, %7, %8 in 2 : vector<16x16x384xbf16>, vector<16x16x384xbf16>, vector<16x16x384xbf16> -> vector<16x16x1152xbf16>
    %10 = vector.shape_cast %9 : vector<16x16x1152xbf16> to vector<256x1152xbf16>
    %c0_3 = arith.constant 0 : index
    %c0_4 = arith.constant 0 : index
    %11 = vector.load %arg3[%c0_3, %c0_4] : memref<1152x128xbf16, #tpu.memory_space<vmem>>, vector<1152x128xbf16>
    %cst = arith.constant dense<0.000000e+00> : vector<256x128xf32>
    %12 = tpu.matmul %10, %11, %cst {dimension_numbers = #tpu.dot_dimension_numbers<[1], [0], [0], [1], [0, 0, 1, 1], [], []>} : vector<256x1152xbf16>, vector<1152x128xbf16>, vector<256x128xf32> -> vector<256x128xf32>
    %c0_5 = arith.constant 0 : index
    %c0_6 = arith.constant 0 : index
    %13 = vector.load %arg4[%c0_5, %c0_6] : memref<1x128xf32, #tpu.memory_space<vmem>>, vector<1x128xf32>
    %14 = vector.broadcast %13 : vector<1x128xf32> to vector<256x128xf32>
    %15 = arith.addf %12, %14 : vector<256x128xf32>
    %cst_7 = arith.constant 0.000000e+00 : f32
    %16 = vector.broadcast %cst_7 : f32 to vector<256x128xf32>
    %17 = arith.maximumf %15, %16 : vector<256x128xf32>
    %18 = vector.shape_cast %17 : vector<256x128xf32> to vector<128x2x128xf32>
    %19 = vector.extract_strided_slice %18 {offsets = [0, 0, 0], sizes = [128, 1, 128], strides = [1, 1, 1]} : vector<128x2x128xf32> to vector<128x1x128xf32>
    %20 = vector.shape_cast %19 : vector<128x1x128xf32> to vector<128x128xf32>
    %21 = vector.extract_strided_slice %18 {offsets = [0, 1, 0], sizes = [128, 1, 128], strides = [1, 1, 1]} : vector<128x2x128xf32> to vector<128x1x128xf32>
    %22 = vector.shape_cast %21 : vector<128x1x128xf32> to vector<128x128xf32>
    %23 = arith.addf %20, %22 : vector<128x128xf32>
    %24 = vector.shape_cast %23 : vector<128x128xf32> to vector<8x16x128xf32>
    %25 = vector.extract_strided_slice %24 {offsets = [0, 0, 0], sizes = [8, 8, 128], strides = [1, 1, 1]} : vector<8x16x128xf32> to vector<8x8x128xf32>
    %26 = vector.extract_strided_slice %24 {offsets = [0, 8, 0], sizes = [8, 8, 128], strides = [1, 1, 1]} : vector<8x16x128xf32> to vector<8x8x128xf32>
    %27 = arith.addf %25, %26 : vector<8x8x128xf32>
    %cst_8 = arith.constant 2.500000e-01 : f32
    %28 = vector.broadcast %cst_8 : f32 to vector<8x8x128xf32>
    %29 = arith.mulf %27, %28 : vector<8x8x128xf32>
    %30 = vector.shape_cast %29 : vector<8x8x128xf32> to vector<64x128xf32>
    %c0_9 = arith.constant 0 : index
    %c0_10 = arith.constant 0 : index
    %c0_11 = arith.constant 0 : index
    %31 = vector.load %arg5[%c0_9, %c0_10, %c0_11] : memref<1x64x128xf32, #tpu.memory_space<vmem>>, vector<1x64x128xf32>
    %32 = vector.shape_cast %31 : vector<1x64x128xf32> to vector<64x128xf32>
    %33 = vector.shape_cast %30 : vector<64x128xf32> to vector<1x64x128xf32>
    tpu.vector_store %arg5[%c0_9, %c0_10, %c0_11], %33 {strides = array<i32>} : memref<1x64x128xf32, #tpu.memory_space<vmem>>, vector<1x64x128xf32>,
    return
  }
  func.func @transform_0(%arg0: i32, %arg1: i32) -> (i32, i32, i32, i32) {
    %c0_i32 = arith.constant 0 : i32
    %c0_i32_0 = arith.constant 0 : i32
    %c0_i32_1 = arith.constant 0 : i32
    %c0_i32_2 = arith.constant 0 : i32
    return %arg1, %c0_i32, %c0_i32_0, %c0_i32_1 : i32, i32, i32, i32
  }
  func.func @transform_1(%arg0: i32, %arg1: i32) -> (i32, i32) {
    %c0_i32 = arith.constant 0 : i32
    %c0_i32_0 = arith.constant 0 : i32
    return %c0_i32, %arg0 : i32, i32
  }
  func.func @transform_2(%arg0: i32, %arg1: i32) -> (i32, i32) {
    %c0_i32 = arith.constant 0 : i32
    %c0_i32_0 = arith.constant 0 : i32
    return %c0_i32, %arg0 : i32, i32
  }
  func.func @transform_3(%arg0: i32, %arg1: i32) -> (i32, i32, i32) {
    %c0_i32 = arith.constant 0 : i32
    %c0_i32_0 = arith.constant 0 : i32
    return %arg1, %c0_i32, %arg0 : i32, i32, i32
  }
}

</mosaic_0001>

<bundles_post_ra>
// kernel: conv_block_forward.2
= control target key start
LH: loop header
LB: loop body
LE: loop exit
PB: predicated region body
PF: predicated region fallthrough
CT: control target
= control target key end

     0   :  { %s2333_s12 = smov 0   ;;  %s2335_s13 = smov 0   ;;  %s3146_s0 = inlined_call_operand.vmem [shape: bf16[2,18,18,4], index: 0, kind: input, shape index: {}]   ;;  %s3147_s1 = inlined_call_operand.vmem [shape: bf16[36,128], index: 1, kind: input, shape index: {}]   ;;  %s3148_s2 = inlined_call_operand.vmem [shape: f32[1,128], index: 2, kind: input, shape index: {}]   ;;  %s3149_s3 = inlined_call_operand.vmem [shape: bf16[2,18,18,128], index: 3, kind: output, shape index: {}]  }
   0x1   :  { %s2337_s14 = smov 0  }
   0x2 LB: > { %s22_s15 = sadd.s32 1, %s2302_s13  ;;  %p1945_p0 = scmp.ge.s32.totalorder %s2306_s14, 1  ;;  %s2306_s14 = sphi %s2337_s14, %s13_s14   ;;  %s2302_s13 = sphi %s2335_s13, %s3157_s13   ;;  %s2298_s12 = sphi %s2333_s12, %s3156_s12  }
   0x3   : > { %p23_p1 = scmp.ge.s32.totalorder %s22_s15, 2  ;;  %p168_p2 = scmp.lt.s32.totalorder %s2306_s14, 3 }
   0x5   : > { %s3159_s15 = smov (%p23_p1, %s22_s15), 0  ;;  %p169_p3 = pnand %p1945_p0, %p168_p2 }
   0x6   : > { %p202_p4 = scmp.lt.s32.totalorder (!%p169_p3), %s2298_s12, 1  ;;  %s2308_s20 = smov (!%p169_p3), 8  }
   0x7   : > { %172 = sbr.rel (%p169_p3) target bundleno = 551 (0x227), region = 32  ;;  %s2309_s21 = smov (!%p169_p3), 4  }
   0x8   : > { %s2310_s28 = smov (!%p169_p3), 12   ;;  %s2311_s29 = smov (!%p169_p3), 24  }
   0xc   : > { %s3161_s12 = smov (!%p202_p4, %s2298_s12), 1  ;;  %vm674_vm0 = vcmask 1046528   ;;  %vm421_vm1 = vsmask.f32 7424  ;;  %vm1046_vm2 = vcmask 1041408   ;;  %vm765_vm3 = vcmask 31744  }
   0xd   : > { %s2215_s16 = smul.u32 216, %s3161_s12  ;;  %vm802_vm4 = vcmask 64512   ;;  %vm920_vm5 = vcmask 97280   ;;  %vm953_vm6 = vcmask 195584   ;;  %vm1013_vm7 = vcmask 293888  }
   0xe   : > { %vm1717_vm8 = vcmask 1043456   ;;  %vm1718_vm9 = vsmask.f32 7938  ;;  %vm1393_vm10 = vsmask.f32 256  ;;  %vm1724_vm12 = vcmask 1040384  }
   0xf   : > { %s2359_s19 = scalar_lea.vmem %s3146_s0, %s2215_s16  ;;  %s2804_s5 = scalar_lea.vmem %s3149_s3, %s2215_s16  ;;  %vm1394_vm11 = vsmask.f32 4368  ;;  %vm2873_vm13 = vmand %vm1717_vm8, %vm1718_vm9 }
  0x10   : > { %v2362_v0 = vld [vmem:[%s2359_s19 + $0x6c] sm:$0xff]   ;;  %v2246_v1 = vld [vmem:[%s2359_s19 + $0x74] ss:$0 sps:$4 sm:$0x11]   ;;  %v2371_v6 = vld [vmem:[%s2359_s19 + $0x78] sm:$0xff]  }
  0x11   : > { %v2366_v2 = vld [vmem:[%s2359_s19 + $0xc] sm:$0xff]   ;;  %v702_v3 = vrot.slane %v2362_v0, 1  ;;  %v703_v4 = vrot.slane %v2246_v1, 1  ;;  %v2248_v5 = vld [vmem:[%s2359_s19 + $0x14] ss:$0 sps:$4 sm:$0x11]   ;;  %vm2884_vm14 = vmor %vm1393_vm10, %vm1394_vm11 }
  0x12   : > { %v678_v7 = vrot.slane %v2366_v2, 1  ;;  %v2375_v8 = vld [vmem:[%s2359_s19 + $0x18] sm:$0xff]   ;;  %v679_v10 = vrot.slane %v2248_v5, 1  ;;  %v2250_v11 = vld [vmem:[%s2359_s19 + $0x80] ss:$0 sps:$4 sm:$0x11]   ;;  %vm2891_vm15 = vmand %vm1724_vm12, %vm1393_vm10 }
  0x13   : > { %v704_v9 = vsel %vm674_vm0, %v702_v3, %v703_v4  ;;  %v705_v12 = vrot.slane %v2371_v6, 1  ;;  %v681_v13 = vrot.slane %v2375_v8, 1  ;;  %v706_v15 = vrot.slane %v2250_v11, 1  ;;  %v2252_v16 = vld [vmem:[%s2359_s19 + $0x20] ss:$0 sps:$4 sm:$0x11]  }
  0x14   : > { %747 = vrot.lane.b32.xlu1 %v704_v9, %s2308_s20  ;;  %v680_v14 = vsel %vm674_vm0, %v678_v7, %v679_v10  ;;  %v447_v17 = vshrl.u32 %v2375_v8, 16  ;;  %v449_v18 = vshll.u32 %v2375_v8, 16  ;;  %v435_v19 = vshrl.u32 %v2366_v2, 16  ;;  %v2391_v25 = vld [vmem:[%s2359_s19 + $0x84] sm:$0xff]   ;;  %v2410_v49 = vld [vmem:[%s2359_s19 + $0x90] sm:$0xff]   ;;  %v2422_v63 = vld [vmem:[%s2359_s19 + $0x9c] sm:$0xff]  }
  0x15   : > { %731 = vrot.lane.b32.xlu0 %v680_v14, %s2308_s20  ;;  %v437_v20 = vshll.u32 %v2366_v2, 16  ;;  %v707_v21 = vsel %vm674_vm0, %v705_v12, %v706_v15  ;;  %v682_v22 = vrot.slane %v2252_v16, 1  ;;  %v454_v23 = vshll.u32 %v2252_v16, 16  ;;  %v2254_v34 = vld [vmem:[%s2359_s19 + $0x8c] ss:$0 sps:$4 sm:$0x11]  }
  0x16   : > { %v442_v24 = vshll.u32 %v2248_v5, 16  ;;  %v451_v26 = vrot.slane %v449_v18, 1  ;;  %v543_v28 = vshrl.u32 %v2371_v6, 16  ;;  %v545_v29 = vshll.u32 %v2371_v6, 16  ;;  %v2406_v47 = vld [vmem:[%s2359_s19 + $0x24] sm:$0xff]   ;;  %v2419_v58 = vld [vmem:[%s2359_s19 + $0x30] sm:$0xff]  }
  0x17   : > { %v439_v27 = vrot.slane %v437_v20, 1  ;;  %v683_v30 = vsel %vm674_vm0, %v681_v13, %v682_v22  ;;  %v456_v31 = vrot.slane %v454_v23, 1  ;;  %v550_v33 = vshll.u32 %v2250_v11, 16  ;;  %v2256_v48 = vld [vmem:[%s2359_s19 + $0x2c] ss:$0 sps:$4 sm:$0x11]  }
  0x18   : > { %749 = vrot.lane.b32.xlu1 %v707_v21, %s2308_s20  ;;  %v444_v32 = vrot.slane %v442_v24, 1  ;;  %v452_v35 = vor.u32 %v451_v26, %v447_v17  ;;  %v547_v37 = vrot.slane %v545_v29, 1  ;;  %v531_v38 = vshrl.u32 %v2362_v0, 16  ;;  %v2426_v7 = vld [vmem:[%s2359_s19 + $0x98] ss:$0 sps:$4 sm:$0x11]  }
  0x19   : > { %733 = vrot.lane.b32.xlu0 %v683_v30, %s2308_s20  ;;  %v440_v36 = vor.u32 %v439_v27, %v435_v19  ;;  %v552_v39 = vrot.slane %v550_v33, 1  ;;  %v533_v40 = vshll.u32 %v2362_v0, 16  ;;  %v538_v41 = vshll.u32 %v2246_v1, 16  ;;  %v2435_v15 = vld [vmem:[%s2359_s19 + $0x38] ss:$0 sps:$4 sm:$0x11]  }
  0x1a   : > { %v555_v42 = vshrl.u32 %v2391_v25, 16  ;;  %v457_v43 = vsel %vm421_vm1, %v452_v35, %v456_v31  ;;  %v548_v45 = vor.u32 %v547_v37, %v543_v28  ;;  %v557_v46 = vshll.u32 %v2391_v25, 16  ;;  %v2262_v24 = vld [vmem:[%s2359_s19 + $0xa4] ss:$0 sps:$4 sm:$0x11]   ;;  %v2450_v31 = vld [vmem:[%s2359_s19 + $0x3c] sm:$0xff]  }
  0x1b   : > { %v445_v44 = vsel %vm421_vm1, %v440_v36, %v444_v32  ;;  %v535_v50 = vrot.slane %v533_v40, 1  ;;  %v540_v51 = vrot.slane %v538_v41, 1  ;;  %v562_v52 = vshll.u32 %v2254_v34, 16  ;;  %v2264_v36 = vld [vmem:[%s2359_s19 + $0x44] ss:$0 sps:$4 sm:$0x11]  }
  0x1c   : > { %642 = vrot.lane.b32.xlu1 %v457_v43, %s2309_s21  ;;  %v708_v53 = vrot.slane %v2391_v25, 1  ;;  %v553_v54 = vsel %vm421_vm1, %v548_v45, %v552_v39  ;;  %v559_v55 = vrot.slane %v557_v46, 1  ;;  %v459_v56 = vshrl.u32 %v2406_v47, 16  ;;  %v2463_v46 = vld [vmem:[%s2359_s19 + $0xb0] ss:$0 sps:$4 sm:$0x11]  }
  0x1d   : > { %640 = vrot.lane.b32.xlu0 %v445_v44, %s2309_s21  ;;  %v461_v57 = vshll.u32 %v2406_v47, 16  ;;  %v536_v59 = vor.u32 %v535_v50, %v531_v38  ;;  %v564_v60 = vrot.slane %v562_v52, 1  ;;  %v466_v61 = vshll.u32 %v2256_v48, 16  ;;  %v2459_v44 = vld [vmem:[%s2359_s19 + $0xa8] sm:$0xff]  }
  0x1e   : > { %v709_v62 = vrot.slane %v2254_v34, 1  ;;  %v560_v1 = vor.u32 %v559_v55, %v555_v42  ;;  %v684_v4 = vrot.slane %v2406_v47, 1  ;;  %v685_v5 = vrot.slane %v2256_v48, 1  ;;  %v2466_v48 = vld [vmem:[%s2359_s19 + $0x48] sm:$0xff]  }
  0x1f   : > { %v463_v3 = vrot.slane %v461_v57, 1  ;;  %v541_v9 = vsel %vm421_vm1, %v536_v59, %v540_v51  ;;  %v468_v10 = vrot.slane %v466_v61, 1  ;;  %v567_v11 = vshrl.u32 %v2410_v49, 16  ;;  %v2478_v61 = vld [vmem:[%s2359_s19 + $0x50] ss:$0 sps:$4 sm:$0x11]  }
  0x20   : > { %658 = vrot.lane.b32.xlu1 %v553_v54, %s2309_s21  ;;  %v565_v12 = vsel %vm421_vm1, %v560_v1, %v564_v60  ;;  %v569_v14 = vshll.u32 %v2410_v49, 16  ;;  %v574_v16 = vshll.u32 %v2426_v7, 16  ;;  %v471_v17 = vshrl.u32 %v2419_v58, 16 }
  0x21   : > { %656 = vrot.lane.b32.xlu0 %v541_v9, %s2309_s21  ;;  %v464_v13 = vor.u32 %v463_v3, %v459_v56  ;;  %v473_v18 = vshll.u32 %v2419_v58, 16  ;;  %v478_v21 = vshll.u32 %v2435_v15, 16  ;;  %v581_v26 = vshll.u32 %v2422_v63, 16 }
  0x22   : > { %v571_v20 = vrot.slane %v569_v14, 1  ;;  %v576_v22 = vrot.slane %v574_v16, 1  ;;  %v710_v27 = vsel %vm674_vm0, %v708_v53, %v709_v62  ;;  %v686_v28 = vsel %vm674_vm0, %v684_v4, %v685_v5  ;;  %v2481_v62 = vld [vmem:[%s2359_s19 + $0xb4] sm:$0xff]  }
  0x23   : > { %v469_v19 = vsel %vm421_vm1, %v464_v13, %v468_v10  ;;  %v475_v23 = vrot.slane %v473_v18, 1  ;;  %v579_v30 = vshrl.u32 %v2422_v63, 16  ;;  %v480_v33 = vrot.slane %v478_v21, 1  ;;  %v2486_v4 = vld [vmem:[%s2359_s19 + $0x54] sm:$0xff]  }
  0x24   : > { %660 = vrot.lane.b32.xlu1 %v565_v12, %s2309_s21  ;;  %v572_v29 = vor.u32 %v571_v20, %v567_v11  ;;  %v583_v34 = vrot.slane %v581_v26, 1  ;;  %v586_v35 = vshll.u32 %v2262_v24, 16  ;;  %v483_v37 = vshrl.u32 %v2450_v31, 16  ;;  %v2494_v12 = vld [vmem:[%s2359_s19 + $0xbc] ss:$0 sps:$4 sm:$0x11]  }
  0x25   : > { %644 = vrot.lane.b32.xlu0 %v469_v19, %s2309_s21  ;;  %v476_v32 = vor.u32 %v475_v23, %v471_v17  ;;  %v485_v38 = vshll.u32 %v2450_v31, 16  ;;  %v490_v43 = vshll.u32 %v2264_v36, 16  ;;  %v711_v52 = vrot.slane %v2410_v49, 1  ;;  %v2502_v19 = vld [vmem:[%s2359_s19 + $0x5c] ss:$0 sps:$4 sm:$0x11]  }
  0x26   : > { %v577_v39 = vsel %vm421_vm1, %v572_v29, %v576_v22  ;;  %v584_v40 = vor.u32 %v583_v34, %v579_v30  ;;  %v588_v41 = vrot.slane %v586_v35, 1  ;;  %v712_v53 = vrot.slane %v2426_v7, 1 }
  0x27   : > { %v487_v42 = vrot.slane %v485_v38, 1  ;;  %v481_v45 = vsel %vm421_vm1, %v476_v32, %v480_v33  ;;  %v492_v51 = vrot.slane %v490_v43, 1  ;;  %v687_v54 = vrot.slane %v2419_v58, 1  ;;  %v2517_v38 = vld [vmem:[%s2359_s19 + $0xc0] sm:$0xff]  }
  0x28   : > { %751 = vrot.lane.b32.xlu1 %v710_v27, %s2308_s20  ;;  %v688_v55 = vrot.slane %v2435_v15, 1  ;;  %v714_v56 = vrot.slane %v2422_v63, 1  ;;  %v589_v57 = vsel %vm421_vm1, %v584_v40, %v588_v41  ;;  %v715_v59 = vrot.slane %v2262_v24, 1 }
  0x29   : > { %735 = vrot.lane.b32.xlu0 %v686_v28, %s2308_s20  ;;  %v488_v50 = vor.u32 %v487_v42, %v483_v37  ;;  %v593_v60 = vshll.u32 %v2459_v44, 16  ;;  %v497_v3 = vshll.u32 %v2466_v48, 16  ;;  %v690_v5 = vrot.slane %v2450_v31, 1  ;;  %v2521_v42 = vld [vmem:[%s2359_s19 + $0x60] sm:$0xff]  }
  0x2a   : > { %v691_v7 = vrot.slane %v2264_v36, 1  ;;  %v591_v9 = vshrl.u32 %v2459_v44, 16  ;;  %v598_v10 = vshll.u32 %v2463_v46, 16  ;;  %v495_v11 = vshrl.u32 %v2466_v48, 16 }
  0x2b   : > { %v493_v1 = vsel %vm421_vm1, %v488_v50, %v492_v51  ;;  %v713_v13 = vsel %vm674_vm0, %v711_v52, %v712_v53  ;;  %v595_v14 = vrot.slane %v593_v60, 1  ;;  %v605_v15 = vshll.u32 %v2481_v62, 16  ;;  %v2528_v51 = vld [vmem:[%s2359_s19 + $0xc8] ss:$0 sps:$4 sm:$0x11]  }
  0x2c   : > { %662 = vrot.lane.b32.xlu1 %v577_v39, %s2309_s21  ;;  %v689_v16 = vsel %vm674_vm0, %v687_v54, %v688_v55  ;;  %v499_v17 = vrot.slane %v497_v3, 1  ;;  %v502_v18 = vshll.u32 %v2478_v61, 16  ;;  %v509_v20 = vshll.u32 %v2486_v4, 16 }
  0x2d   : > { %646 = vrot.lane.b32.xlu0 %v481_v45, %s2309_s21  ;;  %v716_v21 = vsel %vm674_vm0, %v714_v56, %v715_v59  ;;  %v692_v22 = vsel %vm674_vm0, %v690_v5, %v691_v7  ;;  %v600_v23 = vrot.slane %v598_v10, 1  ;;  %v603_v24 = vshrl.u32 %v2481_v62, 16  ;;  %v2276_v56 = vld [vmem:[%s2359_s19 + $0x68] ss:$0 sps:$4 sm:$0x11]   ;;  %v2541_v59 = vld [vmem:[%s2359_s19] sm:$0xff]  }
  0x2e   : > { %v596_v26 = vor.u32 %v595_v14, %v591_v9  ;;  %v607_v27 = vrot.slane %v605_v15, 1  ;;  %v610_v28 = vshll.u32 %v2494_v12, 16  ;;  %v507_v29 = vshrl.u32 %v2486_v4, 16  ;;  %v2280_v5 = vld [vmem:[%s2359_s19 + $0x8] ss:$0 sps:$4 sm:$0x11]  }
  0x2f   : > { %v500_v30 = vor.u32 %v499_v17, %v495_v11  ;;  %v504_v32 = vrot.slane %v502_v18, 1  ;;  %v511_v33 = vrot.slane %v509_v20, 1  ;;  %v514_v34 = vshll.u32 %v2502_v19, 16  ;;  %v2278_v18 = vld [vmem:[%s2359_s19 + $0xd4] ss:$0 sps:$4 sm:$0x11]  }
  0x30   : > { %664 = vrot.lane.b32.xlu1 %v589_v57, %s2309_s21  ;;  %v601_v35 = vsel %vm421_vm1, %v596_v26, %v600_v23  ;;  %v608_v36 = vor.u32 %v607_v27, %v603_v24  ;;  %v612_v37 = vrot.slane %v610_v28, 1  ;;  %v717_v43 = vrot.slane %v2459_v44, 1  ;;  %v2538_v57 = vld [vmem:[%s2359_s19 + $0xcc] sm:$0xff]  }
  0x31   : > { %648 = vrot.lane.b32.xlu0 %v493_v1, %s2309_s21  ;;  %v505_v39 = vsel %vm421_vm1, %v500_v30, %v504_v32  ;;  %v512_v40 = vor.u32 %v511_v33, %v507_v29  ;;  %v516_v41 = vrot.slane %v514_v34, 1  ;;  %v718_v45 = vrot.slane %v2463_v46, 1 }
  0x32   : > { %v693_v50 = vrot.slane %v2466_v48, 1  ;;  %v613_v52 = vsel %vm421_vm1, %v608_v36, %v612_v37  ;;  %v694_v53 = vrot.slane %v2478_v61, 1  ;;  %v617_v54 = vshll.u32 %v2517_v38, 16 }
  0x33   : > { %v517_v55 = vsel %vm421_vm1, %v512_v40, %v516_v41  ;;  %v521_v46 = vshll.u32 %v2521_v42, 16  ;;  %v719_v60 = vsel %vm674_vm0, %v717_v43, %v718_v45  ;;  %v720_v1 = vrot.slane %v2481_v62, 1 }
  0x34   : > { %753 = vrot.lane.b32.xlu1 %v713_v13, %s2308_s20  ;;  %v721_v3 = vrot.slane %v2494_v12, 1  ;;  %v696_v61 = vrot.slane %v2486_v4, 1  ;;  %v697_v7 = vrot.slane %v2502_v19, 1  ;;  %v615_v9 = vshrl.u32 %v2517_v38, 16 }
  0x35   : > { %737 = vrot.lane.b32.xlu0 %v689_v16, %s2308_s20  ;;  %v675_v10 = vrot.slane %v2541_v59, 1  ;;  %v619_v11 = vrot.slane %v617_v54, 1  ;;  %v622_v13 = vshll.u32 %v2528_v51, 16  ;;  %v519_v14 = vshrl.u32 %v2521_v42, 16 }
  0x36   : > { %v676_v15 = vrot.slane %v2280_v5, 1  ;;  %v695_v12 = vsel %vm674_vm0, %v693_v50, %v694_v53  ;;  %v523_v16 = vrot.slane %v521_v46, 1  ;;  %v526_v17 = vshll.u32 %v2276_v56, 16 }
  0x37   : > { %v629_v20 = vshll.u32 %v2538_v57, 16  ;;  %v620_v23 = vor.u32 %v619_v11, %v615_v9  ;;  %v624_v24 = vrot.slane %v622_v13, 1  ;;  %v627_v26 = vshrl.u32 %v2538_v57, 16  ;;  %v2282_v9 = vld [vmem:[%s3147_s1 + $0x8] sm:$0xff]   ;;  %v2283_v13 = vld [vmem:[%s3147_s1] sm:$0xff]  }
  0x38   : > { %755 = vrot.lane.b32.xlu1 %v716_v21, %s2308_s20  ;;  %v677_v19 = vsel %vm674_vm0, %v675_v10, %v676_v15  ;;  %v722_v21 = vsel %vm674_vm0, %v720_v1, %v721_v3  ;;  %v524_v27 = vor.u32 %v523_v16, %v519_v14  ;;  %v528_v28 = vrot.slane %v526_v17, 1  ;;  %v2281_v3 = vld [vmem:[%s3147_s1 + $0x10] ss:$0 sps:$4 sm:$0x33]  }
  0x39   : > { %739 = vrot.lane.b32.xlu0 %v692_v22, %s2308_s20  ;;  %v698_v22 = vsel %vm674_vm0, %v696_v61, %v697_v7  ;;  %v631_v29 = vrot.slane %v629_v20, 1  ;;  %v634_v30 = vshll.u32 %v2278_v18, 16  ;;  %v699_v32 = vrot.slane %v2521_v42, 1  ;;  %2213 = vmatprep.subr.msk.bf16.mxu0 %vm1046_vm2, %v2281_v3 }
  0x3a   : > { %v700_v33 = vrot.slane %v2276_v56, 1  ;;  %v625_v34 = vsel %vm421_vm1, %v620_v23, %v624_v24  ;;  %v726_v41 = vrot.slane %v2538_v57, 1  ;;  %v727_v43 = vrot.slane %v2278_v18, 1  ;;  %2214 = vmatprep.subr.msk.bf16.mxu1 %vm1046_vm2, %v2281_v3 }
  0x3b   : > { %v632_v36 = vor.u32 %v631_v29, %v627_v26  ;;  %v636_v37 = vrot.slane %v634_v30, 1  ;;  %v723_v45 = vrot.slane %v2517_v38, 1  ;;  %v724_v50 = vrot.slane %v2528_v51, 1 }
  0x3c   : > { %666 = vrot.lane.b32.xlu1 %v601_v35, %s2309_s21  ;;  %v529_v35 = vsel %vm421_vm1, %v524_v27, %v528_v28  ;;  %v701_v40 = vsel %vm674_vm0, %v699_v32, %v700_v33  ;;  %v423_v53 = vshrl.u32 %v2541_v59, 16  ;;  %v728_v56 = vsel %vm674_vm0, %v726_v41, %v727_v43 }
  0x3d   : > { %650 = vrot.lane.b32.xlu0 %v505_v39, %s2309_s21  ;;  %v425_v39 = vshll.u32 %v2541_v59, 16  ;;  %v725_v46 = vsel %vm674_vm0, %v723_v45, %v724_v50  ;;  %v1048_v61 = vsel %vm1046_vm2, %v2281_v3, 0 }
  0x3e   : > { %2170 = vmatpush3.bf16.msra.mxu0 %v1048_v61  ;;  %2210 = vmatpush3.bf16.msra.mxu1 %v1048_v61 }
  0x3f   : > { %v427_v54 = vrot.slane %v425_v39, 1  ;;  %2171 = vmatprep.subr.bf16.mxu0 %v2282_v9  ;;  %2208 = vmatprep.subr.bf16.mxu1 %v2282_v9 }
  0x40   : > { %668 = vrot.lane.b32.xlu1 %v613_v52, %s2309_s21  ;;  %v637_v52 = vsel %vm421_vm1, %v632_v36, %v636_v37 }
  0x41   : > { %652 = vrot.lane.b32.xlu0 %v517_v55, %s2309_s21  ;;  %v430_v55 = vshll.u32 %v2280_v5, 16 }
  0x42   : > { %2172 = vmatpush3.bf16.msra.mxu0 %v2282_v9  ;;  %2211 = vmatpush3.bf16.msra.mxu1 %v2282_v9 }
  0x43   : > { %v432_v1 = vrot.slane %v430_v55, 1  ;;  %2173 = vmatprep.subr.bf16.mxu0 %v2283_v13  ;;  %2209 = vmatprep.subr.bf16.mxu1 %v2283_v13 }
  0x44   : > { %757 = vrot.lane.b32.xlu1 %v719_v60, %s2308_s20  ;;  %v428_v60 = vor.u32 %v427_v54, %v423_v53 }
  0x45   : > { %741 = vrot.lane.b32.xlu0 %v695_v12, %s2308_s20 }
  0x46   : > { %v433_v51 = vsel %vm421_vm1, %v428_v60, %v432_v1  ;;  %2174 = vmatpush3.bf16.msra.mxu0 %v2283_v13  ;;  %2212 = vmatpush3.bf16.msra.mxu1 %v2283_v13 }
  0x48   : > { %759 = vrot.lane.b32.xlu1 %v722_v21, %s2308_s20 }
  0x49   : > { %743 = vrot.lane.b32.xlu0 %v698_v22, %s2308_s20 }
  0x4c   : > { %670 = vrot.lane.b32.xlu1 %v625_v34, %s2309_s21 }
  0x4d   : > { %654 = vrot.lane.b32.xlu0 %v529_v35, %s2309_s21 }
  0x50   : > { %745 = vrot.lane.b32.xlu1 %v701_v40, %s2308_s20 }
  0x51   : > { %672 = vrot.lane.b32.xlu0 %v637_v52, %s2309_s21 }
  0x54   : > { %763 = vrot.lane.b32.xlu1 %v728_v56, %s2308_s20 }
  0x55   : > { %761 = vrot.lane.b32.xlu0 %v725_v46, %s2308_s20 }
  0x58   : > { %729 = vrot.lane.b32.xlu1 %v677_v19, %s2308_s20 }
  0x59   : > { %638 = vrot.lane.b32.xlu0 %v433_v51, %s2309_s21 }
  0x86   : > { %v748_v5 = vpop.permute.xlu1 %747 }
  0x87   : > { %v732_v7 = vpop.permute.xlu0 %731 }
  0x8a   : > { %v750_v10 = vpop.permute.xlu1 %749 }
  0x8b   : > { %v734_v11 = vpop.permute.xlu0 %733 }
  0x8e   : > { %v643_v14 = vpop.permute.xlu1 %642 }
  0x8f   : > { %v641_v15 = vpop.permute.xlu0 %640  ;;  %v771_v17 = vsel %vm765_vm3, %v2375_v8, %v643_v14 }
  0x90   : > { %v769_v12 = vsel %vm765_vm3, %v2366_v2, %v641_v15  ;;  %v2611_v2 = vsel %vm802_vm4, %v771_v17, %v734_v11 }
  0x91   : > { %v2599_v16 = vsel %vm802_vm4, %v769_v12, %v732_v7 }
  0x92   : > { %855 = vrot.lane.b32.xlu0 %v2599_v16, %s2310_s28  ;;  %v659_v18 = vpop.permute.xlu1 %658 }
  0x93   : > { %v657_v20 = vpop.permute.xlu0 %656  ;;  %v787_v22 = vsel %vm765_vm3, %v2371_v6, %v659_v18 }
  0x94   : > { %v785_v19 = vsel %vm765_vm3, %v2362_v0, %v657_v20  ;;  %v2620_v24 = vsel %vm802_vm4, %v787_v22, %v750_v10 }
  0x95   : > { %v2608_v21 = vsel %vm802_vm4, %v785_v19, %v748_v5 }
  0x96   : > { %871 = vrot.lane.b32.xlu1 %v2608_v21, %s2310_s28  ;;  %857 = vrot.lane.b32.xlu0 %v2611_v2, %s2310_s28  ;;  %v661_v8 = vpop.permute.xlu1 %660 }
  0x97   : > { %v645_v23 = vpop.permute.xlu0 %644  ;;  %v789_v30 = vsel %vm765_vm3, %v2391_v25, %v661_v8 }
  0x98   : > { %v773_v6 = vsel %vm765_vm3, %v2406_v47, %v645_v23 }
  0x9a   : > { %873 = vrot.lane.b32.xlu1 %v2620_v24, %s2310_s28  ;;  %888 = vrot.lane.b32.xlu0 %v2611_v2, %s2311_s29  ;;  %v752_v0 = vpop.permute.xlu1 %751 }
  0x9b   : > { %v736_v26 = vpop.permute.xlu0 %735  ;;  %v2638_v32 = vsel %vm802_vm4, %v789_v30, %v752_v0 }
  0x9c   : > { %v2629_v27 = vsel %vm802_vm4, %v773_v6, %v736_v26 }
  0x9e   : > { %904 = vrot.lane.b32.xlu1 %v2620_v24, %s2311_s29  ;;  %890 = vrot.lane.b32.xlu0 %v2629_v27, %s2311_s29  ;;  %v663_v28 = vpop.permute.xlu1 %662 }
  0x9f   : > { %v647_v29 = vpop.permute.xlu0 %646  ;;  %v791_v34 = vsel %vm765_vm3, %v2410_v49, %v663_v28 }
  0xa0   : > { %v775_v25 = vsel %vm765_vm3, %v2419_v58, %v647_v29 }
  0xa2   : > { %906 = vrot.lane.b32.xlu1 %v2638_v32, %s2311_s29  ;;  %859 = vrot.lane.b32.xlu0 %v2629_v27, %s2310_s28  ;;  %v665_v47 = vpop.permute.xlu1 %664 }
  0xa3   : > { %v649_v33 = vpop.permute.xlu0 %648  ;;  %v793_v45 = vsel %vm765_vm3, %v2422_v63, %v665_v47 }
  0xa4   : > { %v777_v41 = vsel %vm765_vm3, %v2450_v31, %v649_v33 }
  0xa6   : > { %875 = vrot.lane.b32.xlu1 %v2638_v32, %s2310_s28  ;;  %v754_v35 = vpop.permute.xlu1 %753 }
  0xa7   : > { %v738_v36 = vpop.permute.xlu0 %737  ;;  %v2651_v37 = vsel %vm802_vm4, %v791_v34, %v754_v35 }
  0xa8   : > { %v2654_v39 = vsel %vm802_vm4, %v775_v25, %v738_v36 }
  0xa9   : > { %861 = vrot.lane.b32.xlu0 %v2654_v39, %s2310_s28 }
  0xaa   : > { %877 = vrot.lane.b32.xlu1 %v2651_v37, %s2310_s28  ;;  %v756_v49 = vpop.permute.xlu1 %755 }
  0xab   : > { %v740_v40 = vpop.permute.xlu0 %739  ;;  %v2674_v52 = vsel %vm802_vm4, %v793_v45, %v756_v49 }
  0xac   : > { %v2669_v50 = vsel %vm802_vm4, %v777_v41, %v740_v40 }
  0xad   : > { %892 = vrot.lane.b32.xlu0 %v2654_v39, %s2311_s29 }
  0xae   : > { %908 = vrot.lane.b32.xlu1 %v2651_v37, %s2311_s29  ;;  %v667_v58 = vpop.permute.xlu1 %666 }
  0xaf   : > { %v651_v43 = vpop.permute.xlu0 %650  ;;  %v795_v63 = vsel %vm765_vm3, %v2459_v44, %v667_v58 }
  0xb0   : > { %v779_v55 = vsel %vm765_vm3, %v2466_v48, %v651_v43 }
  0xb1   : > { %894 = vrot.lane.b32.xlu0 %v2669_v50, %s2311_s29 }
  0xb2   : > { %910 = vrot.lane.b32.xlu1 %v2674_v52, %s2311_s29  ;;  %v669_v53 = vpop.permute.xlu1 %668 }
  0xb3   : > { %v653_v54 = vpop.permute.xlu0 %652  ;;  %v797_v5 = vsel %vm765_vm3, %v2481_v62, %v669_v53 }
  0xb4   : > { %v781_v51 = vsel %vm765_vm3, %v2486_v4, %v653_v54 }
  0xb5   : > { %863 = vrot.lane.b32.xlu0 %v2669_v50, %s2310_s28 }
  0xb6   : > { %879 = vrot.lane.b32.xlu1 %v2674_v52, %s2310_s28  ;;  %v758_v31 = vpop.permute.xlu1 %757 }
  0xb7   : > { %v742_v56 = vpop.permute.xlu0 %741  ;;  %v2687_v46 = vsel %vm802_vm4, %v795_v63, %v758_v31 }
  0xb8   : > { %v2690_v60 = vsel %vm802_vm4, %v779_v55, %v742_v56 }
  0xb9   : > { %865 = vrot.lane.b32.xlu0 %v2690_v60, %s2310_s28 }
  0xba   : > { %881 = vrot.lane.b32.xlu1 %v2687_v46, %s2310_s28  ;;  %v760_v44 = vpop.permute.xlu1 %759 }
  0xbb   : > { %v744_v1 = vpop.permute.xlu0 %743  ;;  %v2710_v7 = vsel %vm802_vm4, %v797_v5, %v760_v44 }
  0xbc   : > { %v2705_v61 = vsel %vm802_vm4, %v781_v51, %v744_v1 }
  0xbd   : > { %896 = vrot.lane.b32.xlu0 %v2690_v60, %s2311_s29 }
  0xbe   : > { %912 = vrot.lane.b32.xlu1 %v2687_v46, %s2311_s29  ;;  %v671_v48 = vpop.permute.xlu1 %670 }
  0xbf   : > { %v655_v3 = vpop.permute.xlu0 %654  ;;  %v799_v11 = vsel %vm765_vm3, %v2517_v38, %v671_v48 }
  0xc0   : > { %v783_v13 = vsel %vm765_vm3, %v2521_v42, %v655_v3 }
  0xc1   : > { %898 = vrot.lane.b32.xlu0 %v2705_v61, %s2311_s29 }
  0xc2   : > { %914 = vrot.lane.b32.xlu1 %v2710_v7, %s2311_s29  ;;  %v746_v9 = vpop.permute.xlu1 %745 }
  0xc3   : > { %v673_v10 = vpop.permute.xlu0 %672  ;;  %v820_v12 = vsel %vm802_vm4, %v783_v13, %v746_v9 }
  0xc4   : > { %v801_v62 = vsel %vm765_vm3, %v2538_v57, %v673_v10 }
  0xc5   : > { %867 = vrot.lane.b32.xlu0 %v2705_v61, %s2310_s28 }
  0xc6   : > { %883 = vrot.lane.b32.xlu1 %v2710_v7, %s2310_s28  ;;  %v764_v4 = vpop.permute.xlu1 %763 }
  0xc7   : > { %v762_v14 = vpop.permute.xlu0 %761  ;;  %v838_v15 = vsel %vm802_vm4, %v801_v62, %v764_v4 }
  0xc8   : > { %v836_v17 = vsel %vm802_vm4, %v799_v11, %v762_v14 }
  0xc9   : > { %869 = vrot.lane.b32.xlu0 %v820_v12, %s2310_s28 }
  0xca   : > { %885 = vrot.lane.b32.xlu1 %v836_v17, %s2310_s28  ;;  %v730_v57 = vpop.permute.xlu1 %729 }
  0xcb   : > { %v639_v18 = vpop.permute.xlu0 %638 }
  0xcc   : > { %v767_v20 = vsel %vm765_vm3, %v2541_v59, %v639_v18 }
  0xcd   : > { %900 = vrot.lane.b32.xlu0 %v820_v12, %s2311_s29  ;;  %v804_v38 = vsel %vm802_vm4, %v767_v20, %v730_v57 }
  0xce   : > { %916 = vrot.lane.b32.xlu1 %v836_v17, %s2311_s29 }
  0xd1   : > { %902 = vrot.lane.b32.xlu0 %v2608_v21, %s2311_s29 }
  0xd2   : > { %918 = vrot.lane.b32.xlu1 %v838_v15, %s2311_s29 }
 0x104   : > { %v856_v42 = vpop.permute.xlu0 %855 }
 0x105   : > { %v922_v8 = vsel %vm920_vm5, %v804_v38, %v856_v42 }
 0x108   : > { %v872_v19 = vpop.permute.xlu1 %871  ;;  %v858_v22 = vpop.permute.xlu0 %857 }
 0x109   : > { %v938_v6 = vsel %vm920_vm5, %v820_v12, %v872_v19  ;;  %v924_v26 = vsel %vm920_vm5, %v2599_v16, %v858_v22 }
 0x10c   : > { %v874_v59 = vpop.permute.xlu1 %873  ;;  %v889_v23 = vpop.permute.xlu0 %888 }
 0x10d   : > { %v955_v0 = vsel %vm953_vm6, %v922_v8, %v889_v23  ;;  %v940_v33 = vsel %vm920_vm5, %v2608_v21, %v874_v59 }
 0x10e   : > { %2175 = vmatprep.mubr.msk.bf16.mxu0 %vm1013_vm7, %v955_v0 }
 0x110   : > { %v905_v28 = vpop.permute.xlu1 %904  ;;  %v891_v29 = vpop.permute.xlu0 %890 }
 0x111   : > { %v957_v30 = vsel %vm953_vm6, %v924_v26, %v891_v29  ;;  %v971_v47 = vsel %vm953_vm6, %v938_v6, %v905_v28 }
 0x112   : > { %2176 = vmatmul.mubr.msk.bf16.vlgmr.msra.gmra.mxu0 %vm1013_vm7, %v957_v30  ;;  %2191 = vmatprep.mubr.msk.bf16.mxu1 %vm1013_vm7, %v971_v47 }
 0x114   : > { %v907_v34 = vpop.permute.xlu1 %906  ;;  %v860_v25 = vpop.permute.xlu0 %859 }
 0x115   : > { %v973_v35 = vsel %vm953_vm6, %v940_v33, %v907_v34  ;;  %v926_v40 = vsel %vm920_vm5, %v2611_v2, %v860_v25 }
 0x116   : > { %2192 = vmatmul.mubr.msk.bf16.vlgmr.msra.gmra.mxu1 %vm1013_vm7, %v973_v35 }
 0x118   : > { %v876_v16 = vpop.permute.xlu1 %875 }
 0x119   : > { %v942_v41 = vsel %vm920_vm5, %v2620_v24, %v876_v16 }
 0x11b   : > { %v862_v36 = vpop.permute.xlu0 %861 }
 0x11c   : > { %v878_v49 = vpop.permute.xlu1 %877  ;;  %v928_v53 = vsel %vm920_vm5, %v2629_v27, %v862_v36 }
 0x11d   : > { %v944_v2 = vsel %vm920_vm5, %v2638_v32, %v878_v49 }
 0x11f   : > { %v893_v58 = vpop.permute.xlu0 %892 }
 0x120   : > { %v959_v43 = vsel %vm953_vm6, %v926_v40, %v893_v58  ;;  %v909_v45 = vpop.permute.xlu1 %908 }
 0x121   : > { %v975_v21 = vsel %vm953_vm6, %v942_v41, %v909_v45  ;;  %2179 = vmatprep.mubr.msk.bf16.mxu0 %vm1013_vm7, %v959_v43 }
 0x122   : > { %2195 = vmatprep.mubr.msk.bf16.mxu1 %vm1013_vm7, %v975_v21 }
 0x123   : > { %v895_v54 = vpop.permute.xlu0 %894 }
 0x124   : > { %v961_v63 = vsel %vm953_vm6, %v928_v53, %v895_v54  ;;  %v911_v31 = vpop.permute.xlu1 %910 }
 0x125   : > { %v977_v24 = vsel %vm953_vm6, %v944_v2, %v911_v31  ;;  %2180 = vmatmul.mubr.msk.bf16.gmra.mxu0 %vm1013_vm7, %v961_v63 }
 0x126   : > { %2196 = vmatmul.mubr.msk.bf16.gmra.mxu1 %vm1013_vm7, %v977_v24 }
 0x127   : > { %v864_v55 = vpop.permute.xlu0 %863 }
 0x128   : > { %v880_v56 = vpop.permute.xlu1 %879  ;;  %v930_v27 = vsel %vm920_vm5, %v2654_v39, %v864_v55 }
 0x129   : > { %v946_v32 = vsel %vm920_vm5, %v2651_v37, %v880_v56 }
 0x12b   : > { %v866_v44 = vpop.permute.xlu0 %865 }
 0x12c   : > { %v882_v1 = vpop.permute.xlu1 %881  ;;  %v932_v9 = vsel %vm920_vm5, %v2669_v50, %v866_v44 }
 0x12d   : > { %v948_v39 = vsel %vm920_vm5, %v2674_v52, %v882_v1 }
 0x12f   : > { %v897_v48 = vpop.permute.xlu0 %896 }
 0x130   : > { %v963_v51 = vsel %vm953_vm6, %v930_v27, %v897_v48  ;;  %v913_v3 = vpop.permute.xlu1 %912 }
 0x131   : > { %v979_v5 = vsel %vm953_vm6, %v946_v32, %v913_v3  ;;  %2183 = vmatprep.mubr.msk.bf16.mxu0 %vm1013_vm7, %v963_v51 }
 0x132   : > { %2199 = vmatprep.mubr.msk.bf16.mxu1 %vm1013_vm7, %v979_v5 }
 0x133   : > { %v899_v10 = vpop.permute.xlu0 %898 }
 0x134   : > { %v965_v62 = vsel %vm953_vm6, %v932_v9, %v899_v10  ;;  %v915_v4 = vpop.permute.xlu1 %914 }
 0x135   : > { %v981_v37 = vsel %vm953_vm6, %v948_v39, %v915_v4  ;;  %2184 = vmatmul.mubr.msk.bf16.gmra.mxu0 %vm1013_vm7, %v965_v62 }
 0x136   : > { %2200 = vmatmul.mubr.msk.bf16.gmra.mxu1 %vm1013_vm7, %v981_v37 }
 0x137   : > { %v868_v11 = vpop.permute.xlu0 %867 }
 0x138   : > { %v884_v13 = vpop.permute.xlu1 %883  ;;  %v934_v50 = vsel %vm920_vm5, %v2690_v60, %v868_v11 }
 0x139   : > { %v950_v52 = vsel %vm920_vm5, %v2687_v46, %v884_v13 }
 0x13b   : > { %v870_v14 = vpop.permute.xlu0 %869 }
 0x13c   : > { %v886_v15 = vpop.permute.xlu1 %885  ;;  %v936_v20 = vsel %vm920_vm5, %v2705_v61, %v870_v14  ;;  %v2312_v61 = vmov 0  }
 0x13d   : > { %v952_v60 = vsel %vm920_vm5, %v2710_v7, %v886_v15  ;;  %1265 = vst [vmem:[%s2804_s5 + $0x18] sm:$0xf] %v2312_v61  ;;  %1259 = vst [vmem:[%s2804_s5] sm:$0xf] %v2312_v61  ;;  %v2863_v7 = vld [vmem:[%s3148_s2] ss:$0 sm:$0xff] }
 0x13e   : > { %1260 = vst [vmem:[%s2804_s5 + $0x4] sm:$0xf] %v2312_v61  ;;  %1261 = vst [vmem:[%s2804_s5 + $0x8] sm:$0x1] %v2312_v61 }
 0x13f   : > { %v901_v12 = vpop.permute.xlu0 %900  ;;  %1262 = vst [vmem:[%s2804_s5 + $0xc] sm:$0xf] %v2312_v61  ;;  %1263 = vst [vmem:[%s2804_s5 + $0x10] sm:$0xf] %v2312_v61 }
 0x140   : > { %v967_v17 = vsel %vm953_vm6, %v934_v50, %v901_v12  ;;  %v917_v57 = vpop.permute.xlu1 %916  ;;  %1264 = vst [vmem:[%s2804_s5 + $0x14] sm:$0x1] %v2312_v61  ;;  %1266 = vst [vmem:[%s2804_s5 + $0x1c] sm:$0xf] %v2312_v61 }
 0x141   : > { %v983_v18 = vsel %vm953_vm6, %v950_v52, %v917_v57  ;;  %2187 = vmatprep.mubr.msk.bf16.mxu0 %vm1013_vm7, %v967_v17  ;;  %1267 = vst [vmem:[%s2804_s5 + $0x20] sm:$0x1] %v2312_v61  ;;  %1268 = vst [vmem:[%s2804_s5 + $0x24] sm:$0xf] %v2312_v61 }
 0x142   : > { %2203 = vmatprep.mubr.msk.bf16.mxu1 %vm1013_vm7, %v983_v18  ;;  %1269 = vst [vmem:[%s2804_s5 + $0x28] sm:$0xf] %v2312_v61  ;;  %1270 = vst [vmem:[%s2804_s5 + $0x2c] sm:$0x1] %v2312_v61 }
 0x143   : > { %v903_v38 = vpop.permute.xlu0 %902  ;;  %1271 = vst [vmem:[%s2804_s5 + $0x30] sm:$0xf] %v2312_v61  ;;  %1272 = vst [vmem:[%s2804_s5 + $0x34] sm:$0xf] %v2312_v61 }
 0x144   : > { %v969_v42 = vsel %vm953_vm6, %v936_v20, %v903_v38  ;;  %v919_v19 = vpop.permute.xlu1 %918  ;;  %1273 = vst [vmem:[%s2804_s5 + $0x38] sm:$0x1] %v2312_v61  ;;  %1274 = vst [vmem:[%s2804_s5 + $0x3c] sm:$0xf] %v2312_v61  ;;  %v2041_v54 = vld [vmem:[%s2804_s5 + $0x18] sm:$0xf] }
 0x145   : > { %v985_v46 = vsel %vm953_vm6, %v952_v60, %v919_v19  ;;  %2188 = vmatmul.mubr.msk.bf16.gmra.mxu0 %vm1013_vm7, %v969_v42  ;;  %1275 = vst [vmem:[%s2804_s5 + $0x40] sm:$0xf] %v2312_v61  ;;  %1276 = vst [vmem:[%s2804_s5 + $0x44] sm:$0x1] %v2312_v61 }
 0x146   : > { %2204 = vmatmul.mubr.msk.bf16.gmra.mxu1 %vm1013_vm7, %v985_v46  ;;  %1277 = vst [vmem:[%s2804_s5 + $0x48] sm:$0xf] %v2312_v61  ;;  %1278 = vst [vmem:[%s2804_s5 + $0x4c] sm:$0xf] %v2312_v61  ;;  %v2036_v48 = vld [vmem:[%s2804_s5 + $0xc] sm:$0xf] }
 0x147   : > { %1279 = vst [vmem:[%s2804_s5 + $0x50] sm:$0x1] %v2312_v61  ;;  %1280 = vst [vmem:[%s2804_s5 + $0x54] sm:$0xf] %v2312_v61 }
 0x148   : > { %1281 = vst [vmem:[%s2804_s5 + $0x58] sm:$0xf] %v2312_v61  ;;  %1282 = vst [vmem:[%s2804_s5 + $0x5c] sm:$0x1] %v2312_v61  ;;  %v2044_v11 = vld [vmem:[%s2804_s5 + $0x20] sm:$0x1] }
 0x149   : > { %1283 = vst [vmem:[%s2804_s5 + $0x60] sm:$0xf] %v2312_v61  ;;  %1284 = vst [vmem:[%s2804_s5 + $0x64] sm:$0xf] %v2312_v61 }
 0x14a   : > { %1285 = vst [vmem:[%s2804_s5 + $0x68] sm:$0x1] %v2312_v61  ;;  %1286 = vst [vmem:[%s2804_s5 + $0x6c] sm:$0xf] %v2312_v61 }
 0x14b   : > { %1287 = vst [vmem:[%s2804_s5 + $0x70] sm:$0xf] %v2312_v61  ;;  %1288 = vst [vmem:[%s2804_s5 + $0x74] sm:$0x1] %v2312_v61 }
 0x14c   : > { %1289 = vst [vmem:[%s2804_s5 + $0x78] sm:$0xf] %v2312_v61  ;;  %1290 = vst [vmem:[%s2804_s5 + $0x7c] sm:$0xf] %v2312_v61 }
 0x14d   : > { %1291 = vst [vmem:[%s2804_s5 + $0x80] sm:$0x1] %v2312_v61  ;;  %1292 = vst [vmem:[%s2804_s5 + $0x84] sm:$0xf] %v2312_v61 }
 0x14e   : > { %1293 = vst [vmem:[%s2804_s5 + $0x88] sm:$0xf] %v2312_v61  ;;  %1294 = vst [vmem:[%s2804_s5 + $0x8c] sm:$0x1] %v2312_v61 }
 0x14f   : > { %1295 = vst [vmem:[%s2804_s5 + $0x90] sm:$0xf] %v2312_v61  ;;  %1296 = vst [vmem:[%s2804_s5 + $0x94] sm:$0xf] %v2312_v61 }
 0x150   : > { %1297 = vst [vmem:[%s2804_s5 + $0x98] sm:$0x1] %v2312_v61  ;;  %1298 = vst [vmem:[%s2804_s5 + $0x9c] sm:$0xf] %v2312_v61 }
 0x151   : > { %1299 = vst [vmem:[%s2804_s5 + $0xa0] sm:$0xf] %v2312_v61  ;;  %1300 = vst [vmem:[%s2804_s5 + $0xa4] sm:$0x1] %v2312_v61 }
 0x152   : > { %1301 = vst [vmem:[%s2804_s5 + $0xa8] sm:$0xf] %v2312_v61  ;;  %1302 = vst [vmem:[%s2804_s5 + $0xac] sm:$0xf] %v2312_v61 }
 0x153   : > { %1303 = vst [vmem:[%s2804_s5 + $0xb0] sm:$0x1] %v2312_v61  ;;  %1304 = vst [vmem:[%s2804_s5 + $0xb4] sm:$0xf] %v2312_v61  ;;  %v2081_v17 = vld [vmem:[%s2804_s5 + $0x78] sm:$0xf] }
 0x154   : > { %1305 = vst [vmem:[%s2804_s5 + $0xb8] sm:$0xf] %v2312_v61  ;;  %1306 = vst [vmem:[%s2804_s5 + $0xbc] sm:$0x1] %v2312_v61 }
 0x155   : > { %1307 = vst [vmem:[%s2804_s5 + $0xc0] sm:$0xf] %v2312_v61  ;;  %1308 = vst [vmem:[%s2804_s5 + $0xc4] sm:$0xf] %v2312_v61 }
 0x156   : > { %1309 = vst [vmem:[%s2804_s5 + $0xc8] sm:$0x1] %v2312_v61  ;;  %1310 = vst [vmem:[%s2804_s5 + $0xcc] sm:$0xf] %v2312_v61 }
 0x157   : > { %1311 = vst [vmem:[%s2804_s5 + $0xd0] sm:$0xf] %v2312_v61  ;;  %1312 = vst [vmem:[%s2804_s5 + $0xd4] sm:$0x1] %v2312_v61  ;;  %v2039_v61 = vld [vmem:[%s2804_s5 + $0x14] sm:$0x1] }
 0x1d2   : > { %v2177_v22 = vpop.f32.mrf.mxu0 }
 0x1d3   : > { %v1093_v8 = vadd.f32 %v2177_v22, %v2863_v7 }
 0x1d4   : > { %v1084_v59 = vpop.f32.mrf.mxu0 }
 0x1d5   : > { %v1213_v23 = vmax.f32 %v1093_v8, 0.0  ;;  %v1085_v0 = vadd.f32 %v2863_v7, %v1084_v59 }
 0x1d6   : > { %v2178_v6 = vpop.f32.mrf.mxu0  ;;  %v2193_v26 = vpop.f32.mrf.mxu1 }
 0x1d7   : > { %v2120_v28 = vpack.c.bf16 %v1213_v23, %v1213_v23  ;;  %v1211_v29 = vmax.f32 %v1085_v0, 0.0  ;;  %v1096_v30 = vadd.f32 %v2178_v6, %v2863_v7  ;;  %v1157_v47 = vadd.f32 %v2193_v26, %v2863_v7  ;;  %v2076_v26 = vld [vmem:[%s2804_s5 + $0x6c] sm:$0xf] }
 0x1d8   : > { %v1087_v33 = vpop.f32.mrf.mxu0  ;;  %v1148_v34 = vpop.f32.mrf.mxu1 }
 0x1d9   : > { %v1414_v35 = vshrl.u32 %v2120_v28, 16  ;;  %v2118_v25 = vpack.c.bf16 %v1211_v29, %v1211_v29  ;;  %v1214_v16 = vmax.f32 %v1096_v30, 0.0  ;;  %v1229_v36 = vmax.f32 %v1157_v47, 0.0 }
 0x1da   : > { %v1088_v49 = vadd.f32 %v2863_v7, %v1087_v33  ;;  %v1149_v40 = vadd.f32 %v2863_v7, %v1148_v34  ;;  %v2194_v58 = vpop.f32.mrf.mxu1  ;;  %v1417_v43 = vshll.u32 %v2120_v28, 16 }
 0x1db   : > { %v1416_v41 = vrot.slane %v1414_v35, 7  ;;  %v1397_v45 = vshrl.u32 %v2118_v25, 16  ;;  %v2121_v21 = vpack.c.bf16 %v1214_v16, %v1214_v16  ;;  %v1400_v2 = vshll.u32 %v2118_v25, 16 }
 0x1dc   : > { %v2136_v63 = vpack.c.bf16 %v1229_v36, %v1229_v36  ;;  %v1212_v31 = vmax.f32 %v1088_v49, 0.0  ;;  %v1227_v24 = vmax.f32 %v1149_v40, 0.0  ;;  %v1160_v1 = vadd.f32 %v2194_v58, %v2863_v7  ;;  %v1151_v42 = vpop.f32.mrf.mxu1 }
 0x1dd   : > { %v1419_v55 = vor.u32 %v1417_v43, %v1416_v41  ;;  %v1399_v56 = vrot.slane %v1397_v45, 7  ;;  %v1422_v44 = vshrl.u32 %v2121_v21, 16  ;;  %v1420_v27 = vrot.slane %v1416_v41, 4 }
 0x1de   : > { %v1425_v32 = vshll.u32 %v2121_v21, 16  ;;  %v1550_v51 = vshrl.u32 %v2136_v63, 16  ;;  %v2119_v3 = vpack.c.bf16 %v1212_v31, %v1212_v31  ;;  %v1553_v62 = vshll.u32 %v2136_v63, 16  ;;  %v2084_v21 = vld [vmem:[%s2804_s5 + $0x80] sm:$0x1] }
 0x1df   : > { %v1730_v5 = vsel %vm2873_vm13, %v1419_v55, %v2041_v54  ;;  %v1402_v9 = vor.u32 %v1400_v2, %v1399_v56  ;;  %v1424_v39 = vrot.slane %v1422_v44, 7  ;;  %v1403_v4 = vrot.slane %v1399_v56, 4 }
 0x1e0   : > { %2042 = vst [vmem:[%s2804_s5 + $0x18] sm:$0xf] %v1730_v5  ;;  %v1552_v13 = vrot.slane %v1550_v51, 7  ;;  %v1405_v14 = vshrl.u32 %v2119_v3, 16  ;;  %v2134_v15 = vpack.c.bf16 %v1227_v24, %v1227_v24  ;;  %v1230_v57 = vmax.f32 %v1160_v1, 0.0 }
 0x1e1   : > { %v1721_v50 = vsel %vm2873_vm13, %v1402_v9, %v2036_v48  ;;  %v1427_v12 = vor.u32 %v1425_v32, %v1424_v39  ;;  %v1429_v52 = vrot.slane %v1424_v39, 4  ;;  %v1408_v38 = vshll.u32 %v2119_v3, 16 }
 0x1e2   : > { %2037 = vst [vmem:[%s2804_s5 + $0xc] sm:$0xf] %v1721_v50  ;;  %v1555_v18 = vor.u32 %v1553_v62, %v1552_v13  ;;  %v1407_v20 = vrot.slane %v1405_v14, 7  ;;  %v1533_v60 = vshrl.u32 %v2134_v15, 16  ;;  %v1536_v22 = vshll.u32 %v2134_v15, 16 }
 0x1e3   : > { %v1428_v19 = vsel %vm2884_vm14, %v1420_v27, %v1427_v12  ;;  %v1734_v46 = vsel %vm2891_vm15, %v1429_v52, %v2044_v11  ;;  %v2137_v8 = vpack.c.bf16 %v1230_v57, %v1230_v57  ;;  %v1152_v29 = vadd.f32 %v2863_v7, %v1151_v42  ;;  %v2079_v52 = vld [vmem:[%s2804_s5 + $0x74] sm:$0x1] }
 0x1e4   : > { %2043 = vst [vmem:[%s2804_s5 + $0x1c] sm:$0xf] %v1428_v19  ;;  %2045 = vst [vmem:[%s2804_s5 + $0x20] sm:$0x1] %v1734_v46  ;;  %v1786_v59 = vsel %vm2873_vm13, %v1555_v18, %v2081_v17  ;;  %v1410_v23 = vor.u32 %v1408_v38, %v1407_v20  ;;  %v1412_v0 = vrot.slane %v1407_v20, 4  ;;  %v2909_v6 = vrot.slane %v1533_v60, 7 }
 0x1e5   : > { %2082 = vst [vmem:[%s2804_s5 + $0x78] sm:$0xf] %v1786_v59  ;;  %v1558_v28 = vshrl.u32 %v2137_v8, 16  ;;  %v2181_v30 = vpop.f32.mrf.mxu0  ;;  %v1561_v35 = vshll.u32 %v2137_v8, 16  ;;  %v1228_v36 = vmax.f32 %v1152_v29, 0.0  ;;  %v1556_v41 = vrot.slane %v1552_v13, 4 }
 0x1e6   : > { %v1411_v47 = vsel %vm2884_vm14, %v1403_v4, %v1410_v23  ;;  %v1727_v33 = vsel %vm2891_vm15, %v1412_v0, %v2039_v61  ;;  %v1538_v34 = vor.u32 %v1536_v22, %v2909_v6  ;;  %v2197_v25 = vpop.f32.mrf.mxu1  ;;  %v1109_v49 = vadd.f32 %v2181_v30, %v2863_v7  ;;  %v2051_v0 = vld [vmem:[%s2804_s5 + $0x30] sm:$0xf] }
 0x1e7   : > { %2038 = vst [vmem:[%s2804_s5 + $0x10] sm:$0xf] %v1411_v47  ;;  %2040 = vst [vmem:[%s2804_s5 + $0x14] sm:$0x1] %v1727_v33  ;;  %v1560_v16 = vrot.slane %v1558_v28, 7  ;;  %v1173_v40 = vadd.f32 %v2197_v25, %v2863_v7  ;;  %v1100_v58 = vpop.f32.mrf.mxu0  ;;  %v1539_v43 = vrot.slane %v2909_v6, 4  ;;  %v2135_v24 = vpack.c.bf16 %v1228_v36, %v1228_v36 }
 0x1e8   : > { %v1779_v45 = vsel %vm2873_vm13, %v1538_v34, %v2076_v26  ;;  %v1101_v54 = vadd.f32 %v2863_v7, %v1100_v58  ;;  %v1164_v2 = vpop.f32.mrf.mxu1  ;;  %v1217_v55 = vmax.f32 %v1109_v49, 0.0  ;;  %v2091_v6 = vld [vmem:[%s2804_s5 + $0x90] sm:$0xf]  ;;  %v2046_v33 = vld [vmem:[%s2804_s5 + $0x24] sm:$0xf] }
 0x1e9   : > { %2077 = vst [vmem:[%s2804_s5 + $0x6c] sm:$0xf] %v1779_v45  ;;  %v1563_v63 = vor.u32 %v1561_v35, %v1560_v16  ;;  %v1565_v31 = vrot.slane %v1560_v16, 4  ;;  %v2182_v56 = vpop.f32.mrf.mxu0  ;;  %v1233_v44 = vmax.f32 %v1173_v40, 0.0  ;;  %v1165_v27 = vadd.f32 %v2863_v7, %v1164_v2 }
 0x1ea   : > { %v1215_v1 = vmax.f32 %v1101_v54, 0.0  ;;  %v1112_v48 = vadd.f32 %v2182_v56, %v2863_v7  ;;  %v2198_v32 = vpop.f32.mrf.mxu1  ;;  %v1541_v5 = vshrl.u32 %v2135_v24, 16  ;;  %v1544_v9 = vshll.u32 %v2135_v24, 16 }
 0x1eb   : > { %v1564_v51 = vsel %vm2884_vm14, %v1556_v41, %v1563_v63  ;;  %v1790_v3 = vsel %vm2891_vm15, %v1565_v31, %v2084_v21  ;;  %v1103_v39 = vpop.f32.mrf.mxu0  ;;  %v2124_v62 = vpack.c.bf16 %v1217_v55, %v1217_v55  ;;  %v2140_v4 = vpack.c.bf16 %v1233_v44, %v1233_v44  ;;  %v2086_v63 = vld [vmem:[%s2804_s5 + $0x84] sm:$0xf] }
 0x1ec   : > { %2083 = vst [vmem:[%s2804_s5 + $0x7c] sm:$0xf] %v1564_v51  ;;  %2085 = vst [vmem:[%s2804_s5 + $0x80] sm:$0x1] %v1790_v3  ;;  %v2122_v11 = vpack.c.bf16 %v1215_v1, %v1215_v1  ;;  %v1231_v13 = vmax.f32 %v1165_v27, 0.0  ;;  %v1543_v14 = vrot.slane %v1541_v5, 7  ;;  %v1176_v50 = vadd.f32 %v2198_v32, %v2863_v7  ;;  %v1167_v36 = vpop.f32.mrf.mxu1 }
 0x1ed   : > { %v1218_v15 = vmax.f32 %v1112_v48, 0.0  ;;  %v1104_v12 = vadd.f32 %v2863_v7, %v1103_v39  ;;  %v1448_v17 = vshrl.u32 %v2124_v62, 16  ;;  %v1451_v57 = vshll.u32 %v2124_v62, 16  ;;  %v2054_v48 = vld [vmem:[%s2804_s5 + $0x38] sm:$0x1] }
 0x1ee   : > { %v1584_v18 = vshrl.u32 %v2140_v4, 16  ;;  %v1587_v20 = vshll.u32 %v2140_v4, 16  ;;  %v1546_v38 = vor.u32 %v1544_v9, %v1543_v14  ;;  %v1548_v60 = vrot.slane %v1543_v14, 4 }
 0x1ef   : > { %v1431_v42 = vshrl.u32 %v2122_v11, 16  ;;  %v1434_v19 = vshll.u32 %v2122_v11, 16  ;;  %v1450_v46 = vrot.slane %v1448_v17, 7  ;;  %v2138_v22 = vpack.c.bf16 %v1231_v13, %v1231_v13 }
 0x1f0   : > { %v2940_v61 = vrot.slane %v1584_v18, 7  ;;  %v2125_v8 = vpack.c.bf16 %v1218_v15, %v1218_v15  ;;  %v1547_v59 = vsel %vm2884_vm14, %v1539_v43, %v1546_v38  ;;  %v1783_v23 = vsel %vm2891_vm15, %v1548_v60, %v2079_v52  ;;  %v2094_v52 = vld [vmem:[%s2804_s5 + $0x98] sm:$0x1] }
 0x1f1   : > { %v2948_v26 = vrot.slane %v1431_v42, 7  ;;  %v1234_v28 = vmax.f32 %v1176_v50, 0.0  ;;  %2078 = vst [vmem:[%s2804_s5 + $0x70] sm:$0xf] %v1547_v59  ;;  %2080 = vst [vmem:[%s2804_s5 + $0x74] sm:$0x1] %v1783_v23  ;;  %v1453_v29 = vor.u32 %v1451_v57, %v1450_v46  ;;  %v1168_v55 = vadd.f32 %v2863_v7, %v1167_v36 }
 0x1f2   : > { %v1454_v30 = vrot.slane %v1450_v46, 4  ;;  %v1589_v47 = vor.u32 %v1587_v20, %v2940_v61  ;;  %v1590_v34 = vrot.slane %v2940_v61, 4  ;;  %v1567_v16 = vshrl.u32 %v2138_v22, 16  ;;  %v2049_v59 = vld [vmem:[%s2804_s5 + $0x2c] sm:$0x1] }
 0x1f3   : > { %v1436_v35 = vor.u32 %v1434_v19, %v2948_v26  ;;  %v1437_v25 = vrot.slane %v2948_v26, 4  ;;  %v1744_v49 = vsel %vm2873_vm13, %v1453_v29, %v2051_v0  ;;  %v1570_v58 = vshll.u32 %v2138_v22, 16  ;;  %v2061_v26 = vld [vmem:[%s2804_s5 + $0x48] sm:$0xf] }
 0x1f4   : > { %v1800_v40 = vsel %vm2873_vm13, %v1589_v47, %v2091_v6  ;;  %v1456_v41 = vshrl.u32 %v2125_v8, 16  ;;  %2052 = vst [vmem:[%s2804_s5 + $0x30] sm:$0xf] %v1744_v49  ;;  %v2965_v45 = vrot.slane %v1567_v16, 7  ;;  %v2141_v21 = vpack.c.bf16 %v1234_v28, %v1234_v28 }
 0x1f5   : > { %2092 = vst [vmem:[%s2804_s5 + $0x90] sm:$0xf] %v1800_v40  ;;  %v1737_v43 = vsel %vm2873_vm13, %v1436_v35, %v2046_v33  ;;  %v1216_v54 = vmax.f32 %v1104_v12, 0.0  ;;  %v2185_v2 = vpop.f32.mrf.mxu0  ;;  %v1459_v24 = vshll.u32 %v2125_v8, 16  ;;  %v1232_v39 = vmax.f32 %v1168_v55, 0.0 }
 0x1f6   : > { %2047 = vst [vmem:[%s2804_s5 + $0x24] sm:$0xf] %v1737_v43  ;;  %v1458_v31 = vrot.slane %v1456_v41, 7  ;;  %v1125_v56 = vadd.f32 %v2185_v2, %v2863_v7  ;;  %v2201_v44 = vpop.f32.mrf.mxu1  ;;  %v1572_v1 = vor.u32 %v1570_v58, %v2965_v45  ;;  %v1573_v27 = vrot.slane %v2965_v45, 4  ;;  %v2089_v40 = vld [vmem:[%s2804_s5 + $0x8c] sm:$0x1] }
 0x1f7   : > { %v1592_v32 = vshrl.u32 %v2141_v21, 16  ;;  %v1595_v51 = vshll.u32 %v2141_v21, 16  ;;  %v2123_v9 = vpack.c.bf16 %v1216_v54, %v1216_v54  ;;  %v1189_v13 = vadd.f32 %v2201_v44, %v2863_v7  ;;  %v1116_v14 = vpop.f32.mrf.mxu0 }
 0x1f8   : > { %v1461_v3 = vor.u32 %v1459_v24, %v1458_v31  ;;  %v1463_v5 = vrot.slane %v1458_v31, 4  ;;  %v1793_v62 = vsel %vm2873_vm13, %v1572_v1, %v2086_v63  ;;  %v1221_v11 = vmax.f32 %v1125_v56, 0.0  ;;  %v1180_v15 = vpop.f32.mrf.mxu1 }
 0x1f9   : > { %v1594_v4 = vrot.slane %v1592_v32, 7  ;;  %2087 = vst [vmem:[%s2804_s5 + $0x84] sm:$0xf] %v1793_v62  ;;  %v1439_v17 = vshrl.u32 %v2123_v9, 16  ;;  %v1442_v57 = vshll.u32 %v2123_v9, 16  ;;  %v2139_v38 = vpack.c.bf16 %v1232_v39, %v1232_v39  ;;  %v2186_v6 = vpop.f32.mrf.mxu0 }
 0x1fa   : > { %v1462_v50 = vsel %vm2884_vm14, %v1454_v30, %v1461_v3  ;;  %v1748_v12 = vsel %vm2891_vm15, %v1463_v5, %v2054_v48  ;;  %v2128_v60 = vpack.c.bf16 %v1221_v11, %v1221_v11  ;;  %v1237_v19 = vmax.f32 %v1189_v13, 0.0  ;;  %v2202_v43 = vpop.f32.mrf.mxu1  ;;  %v2101_v3 = vld [vmem:[%s2804_s5 + $0xa8] sm:$0xf] }
 0x1fb   : > { %2053 = vst [vmem:[%s2804_s5 + $0x34] sm:$0xf] %v1462_v50  ;;  %2055 = vst [vmem:[%s2804_s5 + $0x38] sm:$0x1] %v1748_v12  ;;  %v1597_v18 = vor.u32 %v1595_v51, %v1594_v4  ;;  %v1599_v20 = vrot.slane %v1594_v4, 4  ;;  %v1441_v42 = vrot.slane %v1439_v17, 7  ;;  %v1117_v46 = vadd.f32 %v2863_v7, %v1116_v14  ;;  %v1119_v32 = vpop.f32.mrf.mxu0 }
 0x1fc   : > { %v1181_v61 = vadd.f32 %v2863_v7, %v1180_v15  ;;  %v1575_v23 = vshrl.u32 %v2139_v38, 16  ;;  %v1578_v0 = vshll.u32 %v2139_v38, 16  ;;  %v1482_v30 = vshrl.u32 %v2128_v60, 16  ;;  %v1183_v39 = vpop.f32.mrf.mxu1  ;;  %v2056_v17 = vld [vmem:[%s2804_s5 + $0x3c] sm:$0xf] }
 0x1fd   : > { %v1598_v22 = vsel %vm2884_vm14, %v1590_v34, %v1597_v18  ;;  %v1804_v8 = vsel %vm2891_vm15, %v1599_v20, %v2094_v52  ;;  %v1444_v28 = vor.u32 %v1442_v57, %v1441_v42  ;;  %v1446_v29 = vrot.slane %v1441_v42, 4  ;;  %v2096_v57 = vld [vmem:[%s2804_s5 + $0x9c] sm:$0xf] }
 0x1fe   : > { %2093 = vst [vmem:[%s2804_s5 + $0x94] sm:$0xf] %v1598_v22  ;;  %2095 = vst [vmem:[%s2804_s5 + $0x98] sm:$0x1] %v1804_v8  ;;  %v1485_v47 = vshll.u32 %v2128_v60, 16  ;;  %v1577_v33 = vrot.slane %v1575_v23, 7  ;;  %v2144_v35 = vpack.c.bf16 %v1237_v19, %v1237_v19  ;;  %v1128_v41 = vadd.f32 %v2186_v6, %v2863_v7 }
 0x1ff   : > { %v1219_v34 = vmax.f32 %v1117_v46, 0.0  ;;  %v1235_v16 = vmax.f32 %v1181_v61, 0.0  ;;  %v1445_v36 = vsel %vm2884_vm14, %v1437_v25, %v1444_v28  ;;  %v1741_v49 = vsel %vm2891_vm15, %v1446_v29, %v2049_v59  ;;  %v2064_v29 = vld [vmem:[%s2804_s5 + $0x50] sm:$0x1] }
 0x200   : > { %v3001_v58 = vrot.slane %v1482_v30, 7  ;;  %2048 = vst [vmem:[%s2804_s5 + $0x28] sm:$0xf] %v1445_v36  ;;  %2050 = vst [vmem:[%s2804_s5 + $0x2c] sm:$0x1] %v1741_v49  ;;  %v1580_v21 = vor.u32 %v1578_v0, %v1577_v33  ;;  %v1582_v54 = vrot.slane %v1577_v33, 4  ;;  %v1192_v50 = vadd.f32 %v2202_v43, %v2863_v7 }
 0x201   : > { %v1618_v2 = vshrl.u32 %v2144_v35, 16  ;;  %v1621_v63 = vshll.u32 %v2144_v35, 16  ;;  %v2126_v24 = vpack.c.bf16 %v1219_v34, %v1219_v34  ;;  %v2142_v55 = vpack.c.bf16 %v1235_v16, %v1235_v16 }
 0x202   : > { %v1487_v25 = vor.u32 %v1485_v47, %v3001_v58  ;;  %v1488_v31 = vrot.slane %v3001_v58, 4  ;;  %v1581_v56 = vsel %vm2884_vm14, %v1573_v27, %v1580_v21  ;;  %v1797_v44 = vsel %vm2891_vm15, %v1582_v54, %v2089_v40 }
 0x203   : > { %v3015_v1 = vrot.slane %v1618_v2, 7  ;;  %v1222_v48 = vmax.f32 %v1128_v41, 0.0  ;;  %2088 = vst [vmem:[%s2804_s5 + $0x88] sm:$0xf] %v1581_v56  ;;  %2090 = vst [vmem:[%s2804_s5 + $0x8c] sm:$0x1] %v1797_v44  ;;  %v1120_v12 = vadd.f32 %v2863_v7, %v1119_v32  ;;  %v1184_v38 = vadd.f32 %v2863_v7, %v1183_v39 }
 0x204   : > { %v1758_v51 = vsel %vm2873_vm13, %v1487_v25, %v2061_v26  ;;  %v1465_v5 = vshrl.u32 %v2126_v24, 16  ;;  %v1468_v45 = vshll.u32 %v2126_v24, 16  ;;  %v1601_v9 = vshrl.u32 %v2142_v55, 16  ;;  %v2104_v32 = vld [vmem:[%s2804_s5 + $0xb0] sm:$0x1] }
 0x205   : > { %2062 = vst [vmem:[%s2804_s5 + $0x48] sm:$0xf] %v1758_v51  ;;  %v1623_v27 = vor.u32 %v1621_v63, %v3015_v1  ;;  %v1624_v62 = vrot.slane %v3015_v1, 4  ;;  %v1604_v4 = vshll.u32 %v2142_v55, 16  ;;  %v2129_v11 = vpack.c.bf16 %v1222_v48, %v1222_v48  ;;  %v2189_v13 = vpop.f32.mrf.mxu0 }
 0x206   : > { %v3025_v14 = vrot.slane %v1465_v5, 7  ;;  %v3027_v15 = vrot.slane %v1601_v9, 7  ;;  %v2205_v60 = vpop.f32.mrf.mxu1  ;;  %v1238_v8 = vmax.f32 %v1192_v50, 0.0  ;;  %v1220_v59 = vmax.f32 %v1120_v12, 0.0 }
 0x207   : > { %v1814_v52 = vsel %vm2873_vm13, %v1623_v27, %v2101_v3  ;;  %v1490_v18 = vshrl.u32 %v2129_v11, 16  ;;  %v1493_v20 = vshll.u32 %v2129_v11, 16  ;;  %v1236_v23 = vmax.f32 %v1184_v38, 0.0  ;;  %v1132_v0 = vpop.f32.mrf.mxu0  ;;  %v2059_v3 = vld [vmem:[%s2804_s5 + $0x44] sm:$0x1] }
 0x208   : > { %2102 = vst [vmem:[%s2804_s5 + $0xa8] sm:$0xf] %v1814_v52  ;;  %v1470_v42 = vor.u32 %v1468_v45, %v3025_v14  ;;  %v1471_v19 = vrot.slane %v3025_v14, 4  ;;  %v1606_v46 = vor.u32 %v1604_v4, %v3027_v15  ;;  %v1607_v61 = vrot.slane %v3027_v15, 4  ;;  %v1196_v26 = vpop.f32.mrf.mxu1  ;;  %v2099_v4 = vld [vmem:[%s2804_s5 + $0xa4] sm:$0x1] }
 0x209   : > { %v1492_v22 = vrot.slane %v1490_v18, 7  ;;  %v1141_v30 = vadd.f32 %v2189_v13, %v2863_v7  ;;  %v1205_v47 = vadd.f32 %v2205_v60, %v2863_v7  ;;  %v2145_v34 = vpack.c.bf16 %v1238_v8, %v1238_v8  ;;  %v2190_v2 = vpop.f32.mrf.mxu0 }
 0x20a   : > { %v1751_v6 = vsel %vm2873_vm13, %v1470_v42, %v2056_v17  ;;  %v1807_v28 = vsel %vm2873_vm13, %v1606_v46, %v2096_v57  ;;  %v2127_v16 = vpack.c.bf16 %v1220_v59, %v1220_v59  ;;  %v2143_v36 = vpack.c.bf16 %v1236_v23, %v1236_v23  ;;  %v2206_v52 = vpop.f32.mrf.mxu1  ;;  %v2071_v42 = vld [vmem:[%s2804_s5 + $0x60] sm:$0xf] }
 0x20b   : > { %2057 = vst [vmem:[%s2804_s5 + $0x3c] sm:$0xf] %v1751_v6  ;;  %2097 = vst [vmem:[%s2804_s5 + $0x9c] sm:$0xf] %v1807_v28  ;;  %v1495_v33 = vor.u32 %v1493_v20, %v1492_v22  ;;  %v1497_v35 = vrot.slane %v1492_v22, 4  ;;  %v1225_v49 = vmax.f32 %v1141_v30, 0.0  ;;  %v1133_v58 = vadd.f32 %v2863_v7, %v1132_v0  ;;  %v1135_v46 = vpop.f32.mrf.mxu0 }
 0x20c   : > { %v1241_v40 = vmax.f32 %v1205_v47, 0.0  ;;  %v1626_v21 = vshrl.u32 %v2145_v34, 16  ;;  %v1629_v54 = vshll.u32 %v2145_v34, 16  ;;  %v1473_v63 = vshrl.u32 %v2127_v16, 16  ;;  %v2111_v59 = vld [vmem:[%s2804_s5 + $0xc0] sm:$0xf]  ;;  %v1199_v28 = vpop.f32.mrf.mxu1 }
 0x20d   : > { %v1496_v41 = vsel %vm2884_vm14, %v1488_v31, %v1495_v33  ;;  %v1762_v43 = vsel %vm2891_vm15, %v1497_v35, %v2064_v29  ;;  %v1476_v25 = vshll.u32 %v2127_v16, 16  ;;  %v1609_v24 = vshrl.u32 %v2143_v36, 16 }
 0x20e   : > { %2063 = vst [vmem:[%s2804_s5 + $0x4c] sm:$0xf] %v1496_v41  ;;  %2065 = vst [vmem:[%s2804_s5 + $0x50] sm:$0x1] %v1762_v43  ;;  %v1612_v55 = vshll.u32 %v2143_v36, 16  ;;  %v1628_v56 = vrot.slane %v1626_v21, 7  ;;  %v2132_v44 = vpack.c.bf16 %v1225_v49, %v1225_v49  ;;  %v2148_v48 = vpack.c.bf16 %v1241_v40, %v1241_v40 }
 0x20f   : > { %v1223_v31 = vmax.f32 %v1133_v58, 0.0  ;;  %v1475_v51 = vrot.slane %v1473_v63, 7  ;;  %v1611_v5 = vrot.slane %v1609_v24, 7  ;;  %v1197_v45 = vadd.f32 %v2863_v7, %v1196_v26 }
 0x210   : > { %v1144_v9 = vadd.f32 %v2190_v2, %v2863_v7  ;;  %v1631_v39 = vor.u32 %v1629_v54, %v1628_v56  ;;  %v1633_v27 = vrot.slane %v1628_v56, 4  ;;  %v1516_v11 = vshrl.u32 %v2132_v44, 16  ;;  %v2066_v54 = vld [vmem:[%s2804_s5 + $0x54] sm:$0xf] }
 0x211   : > { %v1519_v13 = vshll.u32 %v2132_v44, 16  ;;  %v1478_v14 = vor.u32 %v1476_v25, %v1475_v51  ;;  %v1480_v15 = vrot.slane %v1475_v51, 4  ;;  %v1614_v50 = vor.u32 %v1612_v55, %v1611_v5 }
 0x212   : > { %v1616_v12 = vrot.slane %v1611_v5, 4  ;;  %v1632_v17 = vsel %vm2884_vm14, %v1624_v62, %v1631_v39  ;;  %v1818_v57 = vsel %vm2891_vm15, %v1633_v27, %v2104_v32  ;;  %v3068_v18 = vrot.slane %v1516_v11, 7 }
 0x213   : > { %v1652_v20 = vshrl.u32 %v2148_v48, 16  ;;  %2103 = vst [vmem:[%s2804_s5 + $0xac] sm:$0xf] %v1632_v17  ;;  %2105 = vst [vmem:[%s2804_s5 + $0xb0] sm:$0x1] %v1818_v57  ;;  %v1479_v38 = vsel %vm2884_vm14, %v1471_v19, %v1478_v14  ;;  %v1755_v60 = vsel %vm2891_vm15, %v1480_v15, %v2059_v3  ;;  %v1615_v1 = vsel %vm2884_vm14, %v1607_v61, %v1614_v50 }
 0x214   : > { %v1811_v62 = vsel %vm2891_vm15, %v1616_v12, %v2099_v4  ;;  %2058 = vst [vmem:[%s2804_s5 + $0x40] sm:$0xf] %v1479_v38  ;;  %2060 = vst [vmem:[%s2804_s5 + $0x44] sm:$0x1] %v1755_v60  ;;  %v1521_v22 = vor.u32 %v1519_v13, %v3068_v18  ;;  %v1655_v19 = vshll.u32 %v2148_v48, 16  ;;  %v2130_v23 = vpack.c.bf16 %v1223_v31, %v1223_v31 }
 0x215   : > { %2098 = vst [vmem:[%s2804_s5 + $0xa0] sm:$0xf] %v1615_v1  ;;  %2100 = vst [vmem:[%s2804_s5 + $0xa4] sm:$0x1] %v1811_v62  ;;  %v3086_v8 = vrot.slane %v1652_v20, 7  ;;  %v1239_v0 = vmax.f32 %v1197_v45, 0.0  ;;  %v1208_v6 = vadd.f32 %v2206_v52, %v2863_v7  ;;  %v1136_v47 = vadd.f32 %v2863_v7, %v1135_v46 }
 0x216   : > { %v1226_v61 = vmax.f32 %v1144_v9, 0.0  ;;  %v1772_v29 = vsel %vm2873_vm13, %v1521_v22, %v2071_v42  ;;  %v1499_v33 = vshrl.u32 %v2130_v23, 16  ;;  %v1200_v40 = vadd.f32 %v2863_v7, %v1199_v28  ;;  %v2106_v7 = vld [vmem:[%s2804_s5 + $0xb4] sm:$0xf]  ;;  %v2074_v9 = vld [vmem:[%s2804_s5 + $0x68] sm:$0x1] }
 0x217   : > { %v1657_v30 = vor.u32 %v1655_v19, %v3086_v8  ;;  %2072 = vst [vmem:[%s2804_s5 + $0x60] sm:$0xf] %v1772_v29  ;;  %v2146_v35 = vpack.c.bf16 %v1239_v0, %v1239_v0  ;;  %v1242_v36 = vmax.f32 %v1208_v6, 0.0  ;;  %v1224_v49 = vmax.f32 %v1136_v47, 0.0  ;;  %v2114_v52 = vld [vmem:[%s2804_s5 + $0xc8] sm:$0x1] }
 0x218   : > { %v2133_v34 = vpack.c.bf16 %v1226_v61, %v1226_v61  ;;  %v1501_v58 = vrot.slane %v1499_v33, 7  ;;  %v1502_v41 = vshll.u32 %v2130_v23, 16  ;;  %v1240_v25 = vmax.f32 %v1200_v40, 0.0  ;;  %v2069_v38 = vld [vmem:[%s2804_s5 + $0x5c] sm:$0x1] }
 0x219   : > { %v1828_v16 = vsel %vm2873_vm13, %v1657_v30, %v2111_v59  ;;  %v1635_v43 = vshrl.u32 %v2146_v35, 16  ;;  %v1638_v26 = vshll.u32 %v2146_v35, 16  ;;  %v2149_v2 = vpack.c.bf16 %v1242_v36, %v1242_v36  ;;  %v2109_v19 = vld [vmem:[%s2804_s5 + $0xbc] sm:$0x1] }
 0x21a   : > { %2112 = vst [vmem:[%s2804_s5 + $0xc0] sm:$0xf] %v1828_v16  ;;  %v1524_v21 = vshrl.u32 %v2133_v34, 16  ;;  %v2131_v63 = vpack.c.bf16 %v1224_v49, %v1224_v49  ;;  %v1504_v24 = vor.u32 %v1502_v41, %v1501_v58  ;;  %v1527_v44 = vshll.u32 %v2133_v34, 16 }
 0x21b   : > { %v1637_v55 = vrot.slane %v1635_v43, 7  ;;  %v1522_v48 = vrot.slane %v3068_v18, 4  ;;  %v1660_v31 = vshrl.u32 %v2149_v2, 16  ;;  %v1663_v32 = vshll.u32 %v2149_v2, 16 }
 0x21c   : > { %v1526_v56 = vrot.slane %v1524_v21, 7  ;;  %v1507_v51 = vshrl.u32 %v2131_v63, 16  ;;  %v1765_v3 = vsel %vm2873_vm13, %v1504_v24, %v2066_v54  ;;  %v1510_v39 = vshll.u32 %v2131_v63, 16 }
 0x21d   : > { %v1640_v5 = vor.u32 %v1638_v26, %v1637_v55  ;;  %2067 = vst [vmem:[%s2804_s5 + $0x54] sm:$0xf] %v1765_v3  ;;  %v1662_v4 = vrot.slane %v1660_v31, 7  ;;  %v2147_v13 = vpack.c.bf16 %v1240_v25, %v1240_v25  ;;  %v1658_v14 = vrot.slane %v3086_v8, 4 }
 0x21e   : > { %v1529_v45 = vor.u32 %v1527_v44, %v1526_v56  ;;  %v1531_v27 = vrot.slane %v1526_v56, 4  ;;  %v1509_v11 = vrot.slane %v1507_v51, 7  ;;  %v1505_v15 = vrot.slane %v1501_v58, 4 }
 0x21f   : > { %v1821_v50 = vsel %vm2873_vm13, %v1640_v5, %v2106_v7  ;;  %v1665_v57 = vor.u32 %v1663_v32, %v1662_v4  ;;  %v1667_v18 = vrot.slane %v1662_v4, 4  ;;  %v1643_v60 = vshrl.u32 %v2147_v13, 16 }
 0x220   : > { %v1530_v12 = vsel %vm2884_vm14, %v1522_v48, %v1529_v45  ;;  %2107 = vst [vmem:[%s2804_s5 + $0xb4] sm:$0xf] %v1821_v50  ;;  %v1776_v17 = vsel %vm2891_vm15, %v1531_v27, %v2074_v9  ;;  %v1512_v20 = vor.u32 %v1510_v39, %v1509_v11  ;;  %v1514_v53 = vrot.slane %v1509_v11, 4 }
 0x221   : > { %2073 = vst [vmem:[%s2804_s5 + $0x64] sm:$0xf] %v1530_v12  ;;  %2075 = vst [vmem:[%s2804_s5 + $0x68] sm:$0x1] %v1776_v17  ;;  %v1666_v1 = vsel %vm2884_vm14, %v1658_v14, %v1665_v57  ;;  %v1832_v62 = vsel %vm2891_vm15, %v1667_v18, %v2114_v52  ;;  %v1645_v22 = vrot.slane %v1643_v60, 7  ;;  %v1646_v8 = vshll.u32 %v2147_v13, 16 }
 0x222   : > { %v1513_v42 = vsel %vm2884_vm14, %v1505_v15, %v1512_v20  ;;  %2113 = vst [vmem:[%s2804_s5 + $0xc4] sm:$0xf] %v1666_v1  ;;  %2115 = vst [vmem:[%s2804_s5 + $0xc8] sm:$0x1] %v1832_v62  ;;  %v1769_v46 = vsel %vm2891_vm15, %v1514_v53, %v2069_v38  ;;  %v1641_v59 = vrot.slane %v1637_v55, 4 }
 0x223   : > { %2068 = vst [vmem:[%s2804_s5 + $0x58] sm:$0xf] %v1513_v42  ;;  %2070 = vst [vmem:[%s2804_s5 + $0x5c] sm:$0x1] %v1769_v46  ;;  %v1648_v23 = vor.u32 %v1646_v8, %v1645_v22  ;;  %v1650_v0 = vrot.slane %v1645_v22, 4 }
 0x225   : > { %v1649_v61 = vsel %vm2884_vm14, %v1641_v59, %v1648_v23  ;;  %v1825_v6 = vsel %vm2891_vm15, %v1650_v0, %v2109_v19 }
 0x226   : > { %2108 = vst [vmem:[%s2804_s5 + $0xb8] sm:$0xf] %v1649_v61  ;;  %2110 = vst [vmem:[%s2804_s5 + $0xbc] sm:$0x1] %v1825_v6 }
 0x227 PF: > { %s13_s14 = sadd.s32 1, %s2306_s14   ;;  %s3156_s12 = smov %s2302_s13 }
 0x228   : > { %p10_p5 = scmp.ge.s32.totalorder %s13_s14, 4   ;;  %s3157_s13 = smov %s3159_s15 }
 0x22a   :  { %12 = sbr.rel (!%p10_p5) target bundleno = 2 (0x2), region = 69 }

// kernel: conv_block_forward.3
= control target key start
LH: loop header
LB: loop body
LE: loop exit
PB: predicated region body
PF: predicated region fallthrough
CT: control target
= control target key end

     0   :  { %8 = vsyncpa [#allocation3], 0  ;;  %s6518_s0 = inlined_call_operand.vmem [shape: bf16[2,18,18,128], index: 0, kind: input, shape index: {}]   ;;  %s6519_s1 = inlined_call_operand.vmem [shape: bf16[1152,128], index: 1, kind: input, shape index: {}]   ;;  %s6520_s2 = inlined_call_operand.vmem [shape: f32[1,128], index: 2, kind: input, shape index: {}]   ;;  %s6521_s3 = inlined_call_operand.hbm [shape: f32[2,64,128], index: 3, kind: output, shape index: {}]  }
   0x1   :  { %10 = vsyncpa [#allocation3 + $0x1], 0  ;;  %s5078_s12 = smov 0   ;;  %s5080_s13 = smov 0  }
   0x2   :  { %s5082_s14 = smov 0   ;;  %s5084_s15 = smov 0  }
   0x3   :  { %s5086_s16 = smov 0   ;;  %s5088_s17 = smov 0  }
   0x4 LB: > { %s4016_s18 = sadd.s32 4294967295, %s5052_s17   ;;  %s4017_s19 = sadd.s32 4294967294, %s5052_s17   ;;  %s5052_s17 = sphi %s5088_s17, %s16_s17   ;;  %s5048_s16 = sphi %s5086_s16, %s6552_s16   ;;  %s5044_s15 = sphi %s5084_s15, %s6551_s15   ;;  %s5040_s14 = sphi %s5082_s14, %s6550_s14   ;;  %s5036_s13 = sphi %s5080_s13, %s6549_s13   ;;  %s5032_s12 = sphi %s5078_s12, %s6548_s12  }
   0x5   : > { %s25_s20 = sadd.s32 1, %s5048_s16  ;;  %s115_s21 = sadd.s32 1, %s5040_s14 }
   0x6   : > { %p26_p0 = scmp.ge.s32.totalorder %s25_s20, 2  ;;  %p125_p1 = scmp.ne.s32.totalorder %s5040_s14, %s5036_s13 }
   0x7   : > { %p126_p2 = scmp.eq.s32.totalorder %s4016_s18, 1  ;;  %p131_p3 = scmp.ne.s32.totalorder %s5036_s13, %s5032_s12 }
   0x8   : > { %s6554_s20 = smov (%p26_p0, %s25_s20), 0  ;;  %p132_p5 = scmp.eq.s32.totalorder %s4017_s19, 1 }
   0x9   : > { %p5118_p4 = por %p126_p2, %p125_p1  ;;  %s110_s23 = ssub.s32 %s5048_s16, %s6554_s20 }
   0xa   : > { %p4022_p6 = scmp.ge.s32.totalorder %s5052_s17, 1  ;;  %p113_p7 = scmp.eq.s32.totalorder %s110_s23, 0 }
   0xb   : > { %p5125_p8 = por %p132_p5, %p131_p3  ;;  %p171_p9 = scmp.lt.s32.totalorder %s5052_s17, 3 }
   0xc   : > { %s5131_s25 = scalar_select %p113_p7, %s5040_s14, %s115_s21  }
   0xd   : > { %p172_p10 = pnand %p4022_p6, %p171_p9 }
   0xf   : > { %175 = sbr.rel (%p172_p10) target bundleno = 686 (0x2ae), region = 32 }
  0x14   : > { %v4863_v0 = vld [vmem:[%s6519_s1 + $0x78] sm:$0xff]   ;;  %v4865_v2 = vld [vmem:[%s6519_s1 + $0x70] sm:$0xff]   ;;  %p202_p11 = scmp.lt.s32.totalorder %s5044_s15, 1  ;;  %v4867_v4 = vld [vmem:[%s6519_s1 + $0x68] sm:$0xff]   ;;  %vm431_vm0 = vsmask.f32 7424 }
  0x15   : > { %v4864_v1 = vld [vmem:[%s6519_s1 + $0x38] sm:$0xff]   ;;  %4268 = vmatprep.subr.bf16.mxu0 %v4863_v0  ;;  %4788 = vmatprep.subr.bf16.mxu1 %v4863_v0  ;;  %v4866_v3 = vld [vmem:[%s6519_s1 + $0x30] sm:$0xff]   ;;  %v4868_v5 = vld [vmem:[%s6519_s1 + $0x28] sm:$0xff]   ;;  %vm666_vm1 = vcmask 1046528   ;;  %vm3823_vm2 = vcmask 1041409   ;;  %vm3825_vm3 = vcmask 1042434  }
  0x16   : > { %4269 = vmatpush3.bf16.msra.mxu0 %v4864_v1  ;;  %4796 = vmatpush3.bf16.msra.mxu1 %v4864_v1  ;;  %s203_s9 = scalar_select %p202_p11, %s5044_s15, 1  ;;  %v4869_v6 = vld [vmem:[%s6519_s1 + $0x60] sm:$0xff]   ;;  %v4871_v8 = vld [vmem:[%s6519_s1 + $0x58] sm:$0xff]   ;;  %v4873_v10 = vld [vmem:[%s6519_s1 + $0x50] sm:$0xff]   ;;  %vm3827_vm4 = vcmask 1043459   ;;  %vm3829_vm5 = vcmask 1044484  }
  0x17   : > { %4270 = vmatprep.subr.bf16.mxu0 %v4865_v2  ;;  %4789 = vmatprep.subr.bf16.mxu1 %v4865_v2  ;;  %v4870_v7 = vld [vmem:[%s6519_s1 + $0x20] sm:$0xff]   ;;  %v4872_v9 = vld [vmem:[%s6519_s1 + $0x18] sm:$0xff]   ;;  %v4874_v11 = vld [vmem:[%s6519_s1 + $0x10] sm:$0xff]   ;;  %vm3831_vm6 = vcmask 1045509   ;;  %vm3833_vm7 = vcmask 1046534   ;;  %vm3835_vm8 = vcmask 1047559  }
  0x18   : > { %s4804_s21 = smul.u32 216, %s203_s9  ;;  %v4875_v18 = vld [vmem:[%s6519_s1 + $0x48] sm:$0xff]   ;;  %v4877_v28 = vld [vmem:[%s6519_s1 + $0x40] sm:$0xff]   ;;  %v4883_v33 = vld [vmem:[%s6519_s1 + $0xf8] sm:$0xff]   ;;  %s4267_s7 = sshll.u32 %s5044_s15, 10 }
  0x19   : > { %v4876_v25 = vld [vmem:[%s6519_s1 + $0x8] sm:$0xff]   ;;  %v4878_v30 = vld [vmem:[%s6519_s1] sm:$0xff]   ;;  %v4886_v34 = vld [vmem:[%s6519_s1 + $0x178] sm:$0xff]   ;;  %s6464_s11 = scalar_lea.hbm %s6521_s3, %s4267_s7  ;;  %s5055_s19 = smov [#allocation2]  }
  0x1a   : > { %4271 = vmatpush3.bf16.msra.mxu0 %v4866_v3  ;;  %4797 = vmatpush3.bf16.msra.mxu1 %v4866_v3  ;;  %s5168_s6 = scalar_lea.vmem %s6518_s0, %s4804_s21  ;;  %v4884_v39 = vld [vmem:[%s6519_s1 + $0xb8] sm:$0xff]   ;;  %v4885_v48 = vld [vmem:[%s6519_s1 + $0xf0] sm:$0xff]   ;;  %v4893_v57 = vld [vmem:[%s6519_s1 + $0xe8] sm:$0xff]   ;;  %s4980_s21 = sshll.u32 %s5055_s19, 4  ;;  %s4981_s21 = int_to_ptr.vmem [resolvable:$false] %s4980_s21 }
  0x1b   : > { %4272 = vmatprep.subr.bf16.mxu0 %v4867_v4  ;;  %4790 = vmatprep.subr.bf16.mxu1 %v4867_v4  ;;  %v5177_v12 = vld [vmem:[%s5168_s6] sm:$0xff]   ;;  %v5180_v13 = vld [vmem:[%s5168_s6 + $0x8] ss:$0 sps:$4 sm:$0x11]   ;;  %v4881_v17 = vld [vmem:[%s5168_s6 + $0x90] sm:$0xff]   ;;  %s4982_s23 = scalar_lea.vmem %s4981_s21, 2048 }
  0x1c   : > { %v433_v14 = vshrl.u32 %v5177_v12, 16  ;;  %v435_v15 = vshll.u32 %v5177_v12, 16  ;;  %v440_v16 = vshll.u32 %v5180_v13, 16  ;;  %v4882_v19 = vld [vmem:[%s5168_s6 + $0x98] ss:$0 sps:$4 sm:$0x11]  }
  0x1d   : > { %v577_v22 = vshrl.u32 %v4881_v17, 16  ;;  %v579_v23 = vshll.u32 %v4881_v17, 16  ;;  %v584_v24 = vshll.u32 %v4882_v19, 16  ;;  %v5210_v36 = vld [vmem:[%s5168_s6 + $0xc] sm:$0xff]   ;;  %v5216_v38 = vld [vmem:[%s5168_s6 + $0x9c] sm:$0xff]  }
  0x1e   : > { %4273 = vmatpush3.bf16.msra.mxu0 %v4868_v5  ;;  %4798 = vmatpush3.bf16.msra.mxu1 %v4868_v5  ;;  %v437_v20 = vrot.slane %v435_v15, 1  ;;  %v442_v21 = vrot.slane %v440_v16, 1  ;;  %v5213_v37 = vld [vmem:[%s5168_s6 + $0x14] ss:$0 sps:$4 sm:$0x11]   ;;  %v445_v40 = vshrl.u32 %v5210_v36, 16 }
  0x1f   : > { %4274 = vmatprep.subr.bf16.mxu0 %v4869_v6  ;;  %4791 = vmatprep.subr.bf16.mxu1 %v4869_v6  ;;  %v581_v27 = vrot.slane %v579_v23, 1  ;;  %v586_v29 = vrot.slane %v584_v24, 1  ;;  %v447_v41 = vshll.u32 %v5210_v36, 16  ;;  %v452_v42 = vshll.u32 %v5213_v37, 16  ;;  %v4888_v46 = vld [vmem:[%s6519_s1 + $0x138] sm:$0xff]   ;;  %v4887_v53 = vld [vmem:[%s6519_s1 + $0xb0] sm:$0xff]  }
  0x20   : > { %v438_v26 = vor.u32 %v437_v20, %v433_v14  ;;  %v5226_v43 = vld [vmem:[%s5168_s6 + $0xa4] ss:$0 sps:$4 sm:$0x11]   ;;  %v589_v44 = vshrl.u32 %v5216_v38, 16  ;;  %v591_v45 = vshll.u32 %v5216_v38, 16  ;;  %v5252_v59 = vld [vmem:[%s5168_s6 + $0x18] sm:$0xff]  }
  0x21   : > { %v582_v32 = vor.u32 %v581_v27, %v577_v22  ;;  %v449_v47 = vrot.slane %v447_v41, 1  ;;  %v454_v49 = vrot.slane %v452_v42, 1  ;;  %v596_v51 = vshll.u32 %v5226_v43, 16  ;;  %v5255_v60 = vld [vmem:[%s5168_s6 + $0x20] ss:$0 sps:$4 sm:$0x11]  }
  0x22   : > { %4275 = vmatpush3.bf16.msra.mxu0 %v4870_v7  ;;  %4799 = vmatpush3.bf16.msra.mxu1 %v4870_v7  ;;  %v443_v31 = vsel %vm431_vm0, %v438_v26, %v442_v21  ;;  %v593_v50 = vrot.slane %v591_v45, 1  ;;  %v4894_v61 = vld [vmem:[%s6519_s1 + $0xa8] sm:$0xff]   ;;  %v457_v62 = vshrl.u32 %v5252_v59, 16  ;;  %v459_v63 = vshll.u32 %v5252_v59, 16  ;;  %v4895_v2 = vld [vmem:[%s6519_s1 + $0xe0] sm:$0xff]   ;;  %v4904_v16 = vld [vmem:[%s6519_s1 + $0x130] sm:$0xff]  }
  0x23   : > { %4276 = vmatprep.subr.bf16.mxu0 %v4871_v8  ;;  %4792 = vmatprep.subr.bf16.mxu1 %v4871_v8  ;;  %v5207_v35 = vsel %vm431_vm0, %v582_v32, %v586_v29  ;;  %v450_v52 = vor.u32 %v449_v47, %v445_v40  ;;  %v598_v55 = vrot.slane %v596_v51, 1  ;;  %v464_v0 = vshll.u32 %v5255_v60, 16  ;;  %v5265_v1 = vld [vmem:[%s5168_s6 + $0xa8] sm:$0xff]   ;;  %v5271_v3 = vld [vmem:[%s5168_s6 + $0xb0] ss:$0 sps:$4 sm:$0x11]  }
  0x24   : > { %1354 = vmatprep.mubr.bf16.mxu0 %v443_v31  ;;  %1450 = vmatprep.mubr.bf16.mxu1 %v5207_v35  ;;  %v594_v54 = vor.u32 %v593_v50, %v589_v44  ;;  %v461_v4 = vrot.slane %v459_v63, 1  ;;  %v601_v6 = vshrl.u32 %v5265_v1, 16  ;;  %v603_v7 = vshll.u32 %v5265_v1, 16  ;;  %v4901_v19 = vld [vmem:[%s6519_s1 + $0xd8] sm:$0xff]   ;;  %v4905_v22 = vld [vmem:[%s6519_s1 + $0xd0] sm:$0xff]   ;;  %v5304_v23 = vld [vmem:[%s5168_s6 + $0x24] sm:$0xff]  }
  0x25   : > { %v5242_v56 = vsel %vm431_vm0, %v450_v52, %v454_v49  ;;  %v466_v5 = vrot.slane %v464_v0, 1  ;;  %v608_v8 = vshll.u32 %v5271_v3, 16  ;;  %v4903_v20 = vld [vmem:[%s6519_s1 + $0x98] sm:$0xff]   ;;  %v5308_v24 = vld [vmem:[%s5168_s6 + $0x2c] ss:$0 sps:$4 sm:$0x11]  }
  0x26   : > { %4277 = vmatpush3.bf16.msra.mxu0 %v4872_v9  ;;  %4800 = vmatpush3.bf16.msra.mxu1 %v4872_v9  ;;  %v5249_v58 = vsel %vm431_vm0, %v594_v54, %v598_v55  ;;  %v4902_v9 = vld [vmem:[%s6519_s1 + $0x170] sm:$0xff]   ;;  %v605_v14 = vrot.slane %v603_v7, 1  ;;  %v469_v26 = vshrl.u32 %v5304_v23, 16  ;;  %v471_v27 = vshll.u32 %v5304_v23, 16  ;;  %v4911_v41 = vld [vmem:[%s6519_s1 + $0xc8] sm:$0xff]   ;;  %v4913_v51 = vld [vmem:[%s6519_s1 + $0xc0] sm:$0xff]  }
  0x27   : > { %4278 = vmatprep.subr.bf16.mxu0 %v4873_v10  ;;  %4793 = vmatprep.subr.bf16.mxu1 %v4873_v10  ;;  %v4896_v10 = vld [vmem:[%s6519_s1 + $0xa0] sm:$0xff]   ;;  %v610_v15 = vrot.slane %v608_v8, 1  ;;  %v5317_v29 = vld [vmem:[%s5168_s6 + $0xbc] ss:$0 sps:$4 sm:$0x11]   ;;  %v4906_v32 = vld [vmem:[%s6519_s1 + $0x90] sm:$0xff]  }
  0x28   : > { %v620_v40 = vshll.u32 %v5317_v29, 16  ;;  %v668_v47 = vrot.slane %v5180_v13, 1  ;;  %v4914_v49 = vld [vmem:[%s6519_s1 + $0x168] sm:$0xff]   ;;  %v667_v52 = vrot.slane %v5177_v12, 1  ;;  %v5354_v54 = vld [vmem:[%s5168_s6 + $0x30] sm:$0xff]   ;;  %v4919_v0 = vld [vmem:[%s6519_s1 + $0x1f8] sm:$0xff]  }
  0x29   : > { %v4916_v13 = vld [vmem:[%s6519_s1 + $0x128] sm:$0xff]   ;;  %v5357_v55 = vld [vmem:[%s5168_s6 + $0x38] ss:$0 sps:$4 sm:$0x11]   ;;  %v4924_v8 = vld [vmem:[%s6519_s1 + $0x120] sm:$0xff]  }
  0x2a   : > { %4279 = vmatpush3.bf16.msra.mxu0 %v4874_v11  ;;  %4801 = vmatpush3.bf16.msra.mxu1 %v4874_v11  ;;  %v462_v11 = vor.u32 %v461_v4, %v457_v62  ;;  %v622_v45 = vrot.slane %v620_v40, 1  ;;  %v483_v62 = vshll.u32 %v5354_v54, 16  ;;  %v488_v63 = vshll.u32 %v5357_v55, 16  ;;  %v5382_v7 = vld [vmem:[%s5168_s6 + $0x44] ss:$0 sps:$4 sm:$0x11]  }
  0x2b   : > { %4280 = vmatprep.subr.bf16.mxu0 %v4875_v18  ;;  %4794 = vmatprep.subr.bf16.mxu1 %v4875_v18  ;;  %v606_v18 = vor.u32 %v605_v14, %v601_v6  ;;  %v4923_v6 = vld [vmem:[%s6519_s1 + $0x160] sm:$0xff]   ;;  %v500_v14 = vshll.u32 %v5382_v7, 16 }
  0x2c   : > { %v490_v4 = vrot.slane %v488_v63, 1 }
  0x2d   : > { %v5298_v21 = vsel %vm431_vm0, %v606_v18, %v610_v15  ;;  %v5392_v15 = vld [vmem:[%s5168_s6 + $0x48] sm:$0xff]  }
  0x2e   : > { %4281 = vmatpush3.bf16.msra.mxu0 %v4876_v25  ;;  %4802 = vmatpush3.bf16.msra.mxu1 %v4876_v25  ;;  %v5311_v25 = vld [vmem:[%s5168_s6 + $0xb4] sm:$0xff]  }
  0x2f   : > { %4282 = vmatprep.subr.bf16.mxu0 %v4877_v28  ;;  %4795 = vmatprep.subr.bf16.mxu1 %v4877_v28  ;;  %v476_v28 = vshll.u32 %v5308_v24, 16  ;;  %v615_v31 = vshll.u32 %v5311_v25, 16 }
  0x32   : > { %4283 = vmatpush3.bf16.msra.mxu0 %v4878_v30  ;;  %4803 = vmatpush3.bf16.msra.mxu1 %v4878_v30  ;;  %v613_v30 = vshrl.u32 %v5311_v25, 16 }
  0x33   : > { %4380 = vmatprep.subr.bf16.mxu1 %v4883_v33  ;;  %4492 = vmatprep.subr.bf16.mxu0 %v4886_v34  ;;  %v473_v33 = vrot.slane %v471_v27, 1  ;;  %v478_v34 = vrot.slane %v476_v28, 1  ;;  %v507_v27 = vshll.u32 %v5392_v15, 16 }
  0x35   : > { %1355 = vmatmul.mubr.bf16.vlgmr.msra.gmra.mxu0 %v5177_v12  ;;  %1451 = vmatmul.mubr.bf16.vlgmr.msra.gmra.mxu1 %v4881_v17  ;;  %v5288_v17 = vsel %vm431_vm0, %v462_v11, %v466_v5  ;;  %v474_v42 = vor.u32 %v473_v33, %v469_v26  ;;  %v4915_v12 = vld [vmem:[%s6519_s1 + $0x80] sm:$0xff]   ;;  %v505_v26 = vshrl.u32 %v5392_v15, 16  ;;  %v4929_v33 = vld [vmem:[%s6519_s1 + $0x158] sm:$0xff]  }
  0x36   : > { %4381 = vmatpush3.bf16.msra.mxu1 %v4884_v39  ;;  %4493 = vmatpush3.bf16.msra.mxu0 %v4888_v46  ;;  %v617_v39 = vrot.slane %v615_v31, 1  ;;  %v4912_v46 = vld [vmem:[%s6519_s1 + $0x88] sm:$0xff]   ;;  %v5376_v5 = vld [vmem:[%s5168_s6 + $0x3c] sm:$0xff]  }
  0x37   : > { %4382 = vmatprep.subr.bf16.mxu1 %v4885_v48  ;;  %1362 = vmatprep.mubr.bf16.mxu0 %v5242_v56  ;;  %v5335_v48 = vsel %vm431_vm0, %v474_v42, %v478_v34  ;;  %v495_v11 = vshll.u32 %v5376_v5, 16 }
  0x38   : > { %1458 = vmatprep.mubr.bf16.mxu1 %v5249_v58  ;;  %4494 = vmatprep.subr.bf16.mxu0 %v4902_v9  ;;  %v618_v44 = vor.u32 %v617_v39, %v613_v30  ;;  %v669_v9 = vsel %vm666_vm1, %v667_v52, %v668_v47  ;;  %v509_v30 = vrot.slane %v507_v27, 1  ;;  %v673_v52 = vrot.slane %v5252_v59, 1 }
  0x39   : > { %v497_v18 = vrot.slane %v495_v11, 1  ;;  %v5474_v11 = vld [vmem:[%s5168_s6 + $0x74] ss:$0 sps:$4 sm:$0x11]  }
  0x3a   : > { %4383 = vmatpush3.bf16.msra.mxu1 %v4887_v53  ;;  %4495 = vmatpush3.bf16.msra.mxu0 %v4904_v16  ;;  %v5342_v50 = vsel %vm431_vm0, %v618_v44, %v622_v45  ;;  %v670_v53 = vrot.slane %v5210_v36, 1  ;;  %v510_v39 = vor.u32 %v509_v30, %v505_v26  ;;  %v5426_v44 = vld [vmem:[%s5168_s6 + $0x54] sm:$0xff]   ;;  %v5429_v45 = vld [vmem:[%s5168_s6 + $0x5c] ss:$0 sps:$4 sm:$0x11]   ;;  %v4945_v30 = vld [vmem:[%s6519_s1 + $0x1e0] sm:$0xff]  }
  0x3b   : > { %4384 = vmatprep.subr.bf16.mxu1 %v4893_v57  ;;  %4496 = vmatprep.subr.bf16.mxu0 %v4914_v49  ;;  %v671_v57 = vrot.slane %v5213_v37, 1  ;;  %v4920_v37 = vld [vmem:[%s6519_s1 + $0x1b8] sm:$0xff]   ;;  %v517_v49 = vshrl.u32 %v5426_v44, 16 }
  0x3d   : > { %1363 = vmatmul.mubr.bf16.gmra.mxu0 %v5210_v36  ;;  %1459 = vmatmul.mubr.bf16.gmra.mxu1 %v5216_v38  ;;  %v5423_v42 = vsel %vm666_vm1, %v670_v53, %v671_v57  ;;  %v524_v53 = vshll.u32 %v5429_v45, 16 }
  0x3e   : > { %4385 = vmatpush3.bf16.msra.mxu1 %v4894_v61  ;;  %1370 = vmatprep.mubr.bf16.mxu0 %v5288_v17  ;;  %v481_v61 = vshrl.u32 %v5354_v54, 16 }
  0x3f   : > { %4386 = vmatprep.subr.bf16.mxu1 %v4895_v2  ;;  %1466 = vmatprep.mubr.bf16.mxu1 %v5298_v21  ;;  %v485_v2 = vrot.slane %v483_v62, 1  ;;  %v4935_v62 = vld [vmem:[%s6519_s1 + $0x150] sm:$0xff]   ;;  %v526_v63 = vrot.slane %v524_v53, 1  ;;  %v5516_v53 = vld [vmem:[%s5168_s6 + $0x80] ss:$0 sps:$4 sm:$0x11]  }
  0x40   : > { %4497 = vmatpush3.bf16.msra.mxu0 %v4916_v13  ;;  %v674_v13 = vrot.slane %v5255_v60, 1 }
  0x41   : > { %4498 = vmatprep.subr.bf16.mxu0 %v4923_v6 }
  0x42   : > { %4387 = vmatpush3.bf16.msra.mxu1 %v4896_v10  ;;  %v493_v10 = vshrl.u32 %v5376_v5, 16 }
  0x43   : > { %4388 = vmatprep.subr.bf16.mxu1 %v4901_v19  ;;  %v4927_v19 = vld [vmem:[%s6519_s1 + $0x1f0] sm:$0xff]  }
  0x44   : > { %4499 = vmatpush3.bf16.msra.mxu0 %v4924_v8  ;;  %v498_v28 = vor.u32 %v497_v18, %v493_v10  ;;  %v4938_v8 = vld [vmem:[%s6519_s1 + $0x1a8] sm:$0xff]   ;;  %v676_v18 = vrot.slane %v5304_v23, 1 }
  0x45   : > { %1371 = vmatmul.mubr.bf16.gmra.mxu0 %v5252_v59  ;;  %1467 = vmatmul.mubr.bf16.gmra.mxu1 %v5265_v1 }
  0x46   : > { %4389 = vmatpush3.bf16.msra.mxu1 %v4903_v20  ;;  %1378 = vmatprep.mubr.bf16.mxu0 %v5335_v48  ;;  %v502_v20 = vrot.slane %v500_v14, 1  ;;  %v4941_v14 = vld [vmem:[%s6519_s1 + $0x148] sm:$0xff]  }
  0x47   : > { %4390 = vmatprep.subr.bf16.mxu1 %v4905_v22  ;;  %1474 = vmatprep.mubr.bf16.mxu1 %v5342_v50  ;;  %v5402_v22 = vld [vmem:[%s5168_s6 + $0x50] ss:$0 sps:$4 sm:$0x11]  }
  0x48   : > { %v512_v31 = vshll.u32 %v5402_v22, 16  ;;  %v5416_v34 = vsel %vm431_vm0, %v498_v28, %v502_v20  ;;  %4500 = vmatprep.subr.bf16.mxu0 %v4929_v33  ;;  %v4942_v20 = vld [vmem:[%s6519_s1 + $0x108] sm:$0xff]  }
  0x4a   : > { %4391 = vmatpush3.bf16.msra.mxu1 %v4906_v32  ;;  %v4928_v32 = vld [vmem:[%s6519_s1 + $0x1b0] sm:$0xff]   ;;  %v514_v40 = vrot.slane %v512_v31, 1 }
  0x4b   : > { %4392 = vmatprep.subr.bf16.mxu1 %v4911_v41  ;;  %v4930_v41 = vld [vmem:[%s6519_s1 + $0x118] sm:$0xff]  }
  0x4c   : > { %4501 = vmatpush3.bf16.msra.mxu0 %v4930_v41  ;;  %v5435_v47 = vsel %vm431_vm0, %v510_v39, %v514_v40  ;;  %v5504_v41 = vld [vmem:[%s5168_s6 + $0x78] sm:$0xff]  }
  0x4d   : > { %1379 = vmatmul.mubr.bf16.gmra.mxu0 %v5304_v23  ;;  %1475 = vmatmul.mubr.bf16.gmra.mxu1 %v5311_v25 }
  0x4e   : > { %4393 = vmatpush3.bf16.msra.mxu1 %v4912_v46  ;;  %1515 = vmatprep.mubr.bf16.mxu1 %v5210_v36  ;;  %v486_v36 = vor.u32 %v485_v2, %v481_v61  ;;  %v5432_v46 = vld [vmem:[%s5168_s6 + $0x60] sm:$0xff]   ;;  %v5448_v61 = vld [vmem:[%s5168_s6 + $0x68] ss:$0 sps:$4 sm:$0x11]  }
  0x4f   : > { %4394 = vmatprep.subr.bf16.mxu1 %v4913_v51  ;;  %v519_v51 = vshll.u32 %v5426_v44, 16  ;;  %v531_v57 = vshll.u32 %v5432_v46, 16  ;;  %v529_v2 = vshrl.u32 %v5432_v46, 16  ;;  %4502 = vmatprep.subr.bf16.mxu0 %v4935_v62  ;;  %v555_v62 = vshll.u32 %v5504_v41, 16 }
  0x50   : > { %v5395_v16 = vsel %vm431_vm0, %v486_v36, %v490_v4  ;;  %v4937_v4 = vld [vmem:[%s6519_s1 + $0x110] sm:$0xff]   ;;  %v536_v36 = vshll.u32 %v5448_v61, 16 }
  0x51   : > { %1386 = vmatprep.mubr.bf16.mxu0 %v5395_v16  ;;  %v533_v6 = vrot.slane %v531_v57, 1  ;;  %4503 = vmatpush3.bf16.msra.mxu0 %v4937_v4  ;;  %v560_v4 = vshll.u32 %v5516_v53, 16 }
  0x52   : > { %4395 = vmatpush3.bf16.msra.mxu1 %v4915_v12  ;;  %v521_v12 = vrot.slane %v519_v51, 1  ;;  %4504 = vmatprep.subr.bf16.mxu0 %v4941_v14  ;;  %v538_v27 = vrot.slane %v536_v36, 1  ;;  %v4949_v51 = vld [vmem:[%s6519_s1 + $0x140] sm:$0xff]   ;;  %v557_v36 = vrot.slane %v555_v62, 1  ;;  %v4954_v14 = vld [vmem:[%s6519_s1 + $0x1d0] sm:$0xff]  }
  0x53   : > { %4604 = vmatprep.subr.bf16.mxu1 %v4919_v0  ;;  %v4936_v0 = vld [vmem:[%s6519_s1 + $0x1e8] sm:$0xff]   ;;  %v534_v26 = vor.u32 %v533_v6, %v529_v2  ;;  %v5535_v2 = vld [vmem:[%s6519_s1 + $0x238] sm:$0xff]  }
  0x54   : > { %v522_v60 = vor.u32 %v521_v12, %v517_v49  ;;  %v679_v49 = vrot.slane %v5354_v54, 1  ;;  %v4950_v12 = vld [vmem:[%s6519_s1 + $0x100] sm:$0xff]  }
  0x55   : > { %1516 = vmatmul.mubr.bf16.vlgmr.msra.gmra.mxu1 %v669_v9  ;;  %1387 = vmatmul.mubr.bf16.gmra.mxu0 %v5354_v54  ;;  %v5468_v9 = vld [vmem:[%s5168_s6 + $0x6c] sm:$0xff]   ;;  %v5500_v33 = vsel %vm431_vm0, %v534_v26, %v538_v27  ;;  %v5539_v6 = vld [vmem:[%s5168_s6 + $0x84] sm:$0xff]   ;;  %v683_v26 = vrot.slane %v5382_v7, 1  ;;  %v562_v27 = vrot.slane %v560_v4, 1  ;;  %v688_v4 = vrot.slane %v5426_v44, 1 }
  0x56   : > { %4605 = vmatpush3.bf16.msra.mxu1 %v4920_v37  ;;  %1523 = vmatprep.mubr.bf16.mxu1 %v5252_v59  ;;  %v5461_v37 = vsel %vm666_vm1, %v673_v52, %v674_v13  ;;  %v5471_v10 = vsel %vm431_vm0, %v522_v60, %v526_v63  ;;  %v543_v28 = vshll.u32 %v5468_v9, 16  ;;  %v541_v39 = vshrl.u32 %v5468_v9, 16  ;;  %v4951_v60 = vld [vmem:[%s6519_s1 + $0x1d8] sm:$0xff]   ;;  %v4960_v7 = vld [vmem:[%s6519_s1 + $0x1c0] sm:$0xff]  }
  0x57   : > { %4606 = vmatprep.subr.bf16.mxu1 %v4927_v19  ;;  %1394 = vmatprep.mubr.bf16.mxu0 %v5416_v34  ;;  %v677_v19 = vrot.slane %v5308_v24, 1  ;;  %v548_v24 = vshll.u32 %v5474_v11, 16  ;;  %v680_v52 = vrot.slane %v5357_v55, 1  ;;  %v4952_v55 = vld [vmem:[%s6519_s1 + $0x198] sm:$0xff]  }
  0x58   : > { %4505 = vmatpush3.bf16.msra.mxu0 %v4942_v20  ;;  %v545_v40 = vrot.slane %v543_v28, 1  ;;  %v682_v20 = vrot.slane %v5376_v5, 1  ;;  %v4957_v28 = vld [vmem:[%s6519_s1 + $0x1c8] sm:$0xff]  }
  0x59   : > { %v5493_v31 = vsel %vm666_vm1, %v676_v18, %v677_v19  ;;  %v550_v13 = vrot.slane %v548_v24, 1  ;;  %4506 = vmatprep.subr.bf16.mxu0 %v4949_v51  ;;  %v5529_v63 = vsel %vm666_vm1, %v679_v49, %v680_v52  ;;  %v5550_v18 = vld [vmem:[%s5168_s6 + $0x8c] ss:$0 sps:$4 sm:$0x11]   ;;  %v4955_v19 = vld [vmem:[%s6519_s1 + $0x190] sm:$0xff]   ;;  %v567_v24 = vshll.u32 %v5539_v6, 16 }
  0x5a   : > { %4607 = vmatpush3.bf16.msra.mxu1 %v4928_v32  ;;  %v4946_v32 = vld [vmem:[%s6519_s1 + $0x1a0] sm:$0xff]   ;;  %v546_v57 = vor.u32 %v545_v40, %v541_v39  ;;  %v5568_v39 = vsel %vm666_vm1, %v682_v20, %v683_v26  ;;  %v565_v40 = vshrl.u32 %v5539_v6, 16  ;;  %v572_v49 = vshll.u32 %v5550_v18, 16 }
  0x5b   : > { %4608 = vmatprep.subr.bf16.mxu1 %v4936_v0  ;;  %v553_v0 = vshrl.u32 %v5504_v41, 16  ;;  %v569_v52 = vrot.slane %v567_v24, 1  ;;  %v694_v26 = vrot.slane %v5468_v9, 1  ;;  %v4965_v24 = vld [vmem:[%s6519_s1 + $0x210] sm:$0xff]  }
  0x5c   : > { %4507 = vmatpush3.bf16.msra.mxu0 %v4950_v12  ;;  %v685_v12 = vrot.slane %v5392_v15, 1 }
  0x5d   : > { %1524 = vmatmul.mubr.bf16.gmra.mxu1 %v5423_v42  ;;  %1395 = vmatmul.mubr.bf16.gmra.mxu0 %v5376_v5  ;;  %v570_v62 = vor.u32 %v569_v52, %v565_v40  ;;  %v4966_v40 = vld [vmem:[%s6519_s1 + $0x208] sm:$0xff]   ;;  %v4967_v52 = vld [vmem:[%s6519_s1 + $0x200] sm:$0xff]  }
  0x5e   : > { %1531 = vmatprep.mubr.bf16.mxu1 %v5304_v23  ;;  %1402 = vmatprep.mubr.bf16.mxu0 %v5435_v47 }
  0x5f   : > { %4609 = vmatpush3.bf16.msra.mxu1 %v4938_v8  ;;  %v5542_v8 = vsel %vm431_vm0, %v546_v57, %v550_v13  ;;  %4740 = vmatprep.subr.bf16.mxu0 %v5535_v2  ;;  %v4961_v13 = vld [vmem:[%s6519_s1 + $0x180] sm:$0xff]   ;;  %v686_v57 = vrot.slane %v5402_v22, 1  ;;  %v689_v22 = vrot.slane %v5429_v45, 1  ;;  %v4956_v45 = vld [vmem:[%s6519_s1 + $0x230] sm:$0xff]  }
  0x60   : > { %4610 = vmatprep.subr.bf16.mxu1 %v4945_v30  ;;  %v558_v30 = vor.u32 %v557_v36, %v553_v0 }
  0x61   : > { %v5600_v36 = vsel %vm666_vm1, %v688_v4, %v689_v22  ;;  %v709_v22 = vrot.slane %v5265_v1, 1 }
  0x62   : > { %v5576_v51 = vsel %vm431_vm0, %v558_v30, %v562_v27  ;;  %v695_v27 = vrot.slane %v5474_v11, 1  ;;  %v697_v11 = vrot.slane %v5504_v41, 1 }
  0x63   : > { %4611 = vmatpush3.bf16.msra.mxu1 %v4946_v32  ;;  %v4958_v32 = vld [vmem:[%s6519_s1 + $0x188] sm:$0xff]  }
  0x64   : > { %4612 = vmatprep.subr.bf16.mxu1 %v4951_v60  ;;  %v574_v60 = vrot.slane %v572_v49, 1 }
  0x65   : > { %1532 = vmatmul.mubr.bf16.gmra.mxu1 %v5461_v37  ;;  %1403 = vmatmul.mubr.bf16.gmra.mxu0 %v5392_v15 }
  0x66   : > { %1539 = vmatprep.mubr.bf16.mxu1 %v5354_v54  ;;  %1410 = vmatprep.mubr.bf16.mxu0 %v5471_v10  ;;  %v5591_v0 = vsel %vm431_vm0, %v570_v62, %v574_v60  ;;  %v706_v62 = vrot.slane %v5216_v38, 1  ;;  %v707_v60 = vrot.slane %v5226_v43, 1  ;;  %v5691_v43 = vld [vmem:[%s5168_s6 + $0xc0] sm:$0xff]  }
  0x67   : > { %4613 = vmatpush3.bf16.msra.mxu1 %v4952_v55  ;;  %v5588_v55 = vsel %vm666_vm1, %v685_v12, %v686_v57 }
  0x68   : > { %4614 = vmatprep.subr.bf16.mxu1 %v4954_v14  ;;  %v691_v14 = vrot.slane %v5432_v46, 1  ;;  %v5679_v4 = vsel %vm666_vm1, %v706_v62, %v707_v60 }
  0x6b   : > { %4615 = vmatpush3.bf16.msra.mxu1 %v4955_v19  ;;  %v692_v19 = vrot.slane %v5448_v61, 1  ;;  %v5625_v61 = vsel %vm666_vm1, %v694_v26, %v695_v27 }
  0x6c   : > { %4616 = vmatprep.subr.bf16.mxu1 %v4957_v28  ;;  %v4964_v28 = vld [vmem:[%s6519_s1 + $0x218] sm:$0xff]  }
  0x6d   : > { %1540 = vmatmul.mubr.bf16.gmra.mxu1 %v5493_v31  ;;  %1411 = vmatmul.mubr.bf16.gmra.mxu0 %v5426_v44  ;;  %v5609_v20 = vsel %vm666_vm1, %v691_v14, %v692_v19  ;;  %v710_v14 = vrot.slane %v5271_v3, 1  ;;  %v712_v19 = vrot.slane %v5311_v25, 1 }
  0x6e   : > { %1547 = vmatprep.mubr.bf16.mxu1 %v5376_v5  ;;  %1418 = vmatprep.mubr.bf16.mxu0 %v5500_v33 }
  0x6f   : > { %4617 = vmatpush3.bf16.msra.mxu1 %v4958_v32  ;;  %v700_v32 = vrot.slane %v5539_v6, 1 }
  0x70   : > { %4618 = vmatprep.subr.bf16.mxu1 %v4960_v7  ;;  %v701_v7 = vrot.slane %v5550_v18, 1 }
  0x72   : > { %v5658_v49 = vsel %vm666_vm1, %v700_v32, %v701_v7 }
  0x73   : > { %4619 = vmatpush3.bf16.msra.mxu1 %v4961_v13  ;;  %v4972_v13 = vld [vmem:[%s5168_s6 + $0x98] ss:$0 sps:$4 sm:$0x11]  }
  0x74   : > { %v704_v12 = vrot.slane %v4972_v13, 1 }
  0x75   : > { %1548 = vmatmul.mubr.bf16.gmra.mxu1 %v5529_v63  ;;  %1419 = vmatmul.mubr.bf16.gmra.mxu0 %v5432_v46 }
  0x76   : > { %1555 = vmatprep.mubr.bf16.mxu1 %v5392_v15  ;;  %1426 = vmatprep.mubr.bf16.mxu0 %v5542_v8 }
  0x7d   : > { %1556 = vmatmul.mubr.bf16.gmra.mxu1 %v5568_v39  ;;  %1427 = vmatmul.mubr.bf16.gmra.mxu0 %v5468_v9 }
  0x7e   : > { %1563 = vmatprep.mubr.bf16.mxu1 %v5426_v44  ;;  %1434 = vmatprep.mubr.bf16.mxu0 %v5576_v51 }
  0x85   : > { %1564 = vmatmul.mubr.bf16.gmra.mxu1 %v5588_v55  ;;  %1435 = vmatmul.mubr.bf16.gmra.mxu0 %v5504_v41 }
  0x86   : > { %1571 = vmatprep.mubr.bf16.mxu1 %v5432_v46  ;;  %1442 = vmatprep.mubr.bf16.mxu0 %v5591_v0 }
  0x8d   : > { %1572 = vmatmul.mubr.bf16.gmra.mxu1 %v5600_v36  ;;  %1443 = vmatmul.mubr.bf16.gmra.mxu0 %v5539_v6 }
  0x8e   : > { %1579 = vmatprep.mubr.bf16.mxu1 %v5468_v9  ;;  %1676 = vmatprep.mubr.bf16.mxu0 %v5423_v42  ;;  %v4959_v42 = vld [vmem:[%s6519_s1 + $0x228] sm:$0xff]  }
  0x95   : > { %1580 = vmatmul.mubr.bf16.gmra.mxu1 %v5609_v20  ;;  %1677 = vmatmul.mubr.bf16.vlgmr.msra.gmra.mxu0 %v5242_v56  ;;  %v4962_v56 = vld [vmem:[%s6519_s1 + $0x220] sm:$0xff]  }
  0x96   : > { %1587 = vmatprep.mubr.bf16.mxu1 %v5504_v41  ;;  %4741 = vmatpush3.bf16.msra.mxu0 %v5535_v2  ;;  %v698_v2 = vrot.slane %v5516_v53, 1  ;;  %v5648_v53 = vld [vmem:[%s5168_s6 + $0x90] sm:$0xff]  }
  0x97   : > { %1684 = vmatprep.mubr.bf16.mxu0 %v5461_v37  ;;  %4742 = vmatprep.subr.bf16.mxu0 %v4956_v45  ;;  %v703_v18 = vrot.slane %v5648_v53, 1 }
  0x98   : > { %v5640_v30 = vsel %vm666_vm1, %v697_v11, %v698_v2 }
  0x99   : > { %v5670_v57 = vsel %vm666_vm1, %v703_v18, %v704_v12 }
  0x9a   : > { %4743 = vmatpush3.bf16.msra.mxu0 %v4956_v45  ;;  %v713_v45 = vrot.slane %v5317_v29, 1 }
  0x9b   : > { %4744 = vmatprep.subr.bf16.mxu0 %v4959_v42 }
  0x9d   : > { %1588 = vmatmul.mubr.bf16.gmra.mxu1 %v5625_v61  ;;  %1685 = vmatmul.mubr.bf16.gmra.mxu0 %v5288_v17 }
  0x9e   : > { %1595 = vmatprep.mubr.bf16.mxu1 %v5539_v6  ;;  %1692 = vmatprep.mubr.bf16.mxu0 %v5493_v31 }
  0x9f   : > { %4745 = vmatpush3.bf16.msra.mxu0 %v4959_v42 }
  0xa0   : > { %4746 = vmatprep.subr.bf16.mxu0 %v4962_v56 }
  0xa3   : > { %4747 = vmatpush3.bf16.msra.mxu0 %v4962_v56  ;;  %v627_v56 = vshll.u32 %v5691_v43, 16 }
  0xa4   : > { %4748 = vmatprep.subr.bf16.mxu0 %v4964_v28 }
  0xa5   : > { %1596 = vmatmul.mubr.bf16.gmra.mxu1 %v5640_v30  ;;  %1693 = vmatmul.mubr.bf16.gmra.mxu0 %v5335_v48 }
  0xa6   : > { %1603 = vmatprep.mubr.bf16.mxu1 %v5648_v53  ;;  %1700 = vmatprep.mubr.bf16.mxu0 %v5529_v63 }
  0xa7   : > { %4749 = vmatpush3.bf16.msra.mxu0 %v4964_v28  ;;  %v715_v28 = vrot.slane %v5691_v43, 1 }
  0xa8   : > { %4750 = vmatprep.subr.bf16.mxu0 %v4965_v24 }
  0xab   : > { %4751 = vmatpush3.bf16.msra.mxu0 %v4965_v24 }
  0xac   : > { %4752 = vmatprep.subr.bf16.mxu0 %v4966_v40 }
  0xad   : > { %1604 = vmatmul.mubr.bf16.gmra.mxu1 %v5658_v49  ;;  %1701 = vmatmul.mubr.bf16.gmra.mxu0 %v5395_v16 }
  0xae   : > { %1611 = vmatprep.mubr.bf16.mxu1 %v5216_v38  ;;  %1708 = vmatprep.mubr.bf16.mxu0 %v5568_v39  ;;  %v5688_v38 = vsel %vm666_vm1, %v709_v22, %v710_v14 }
  0xaf   : > { %4753 = vmatpush3.bf16.msra.mxu0 %v4966_v40 }
  0xb0   : > { %4754 = vmatprep.subr.bf16.mxu0 %v4967_v52 }
  0xb3   : > { %4755 = vmatpush3.bf16.msra.mxu0 %v4967_v52  ;;  %v625_v52 = vshrl.u32 %v5691_v43, 16 }
  0xb5   : > { %1612 = vmatmul.mubr.bf16.gmra.mxu1 %v5670_v57  ;;  %1709 = vmatmul.mubr.bf16.gmra.mxu0 %v5416_v34 }
  0xb6   : > { %1619 = vmatprep.mubr.bf16.mxu1 %v5265_v1  ;;  %1716 = vmatprep.mubr.bf16.mxu0 %v5588_v55  ;;  %v5700_v1 = vsel %vm666_vm1, %v712_v19, %v713_v45 }
  0xbd   : > { %1620 = vmatmul.mubr.bf16.gmra.mxu1 %v5679_v4  ;;  %1717 = vmatmul.mubr.bf16.gmra.mxu0 %v5435_v47 }
  0xbe   : > { %1627 = vmatprep.mubr.bf16.mxu1 %v5311_v25  ;;  %1724 = vmatprep.mubr.bf16.mxu0 %v5600_v36 }
  0xc5   : > { %1628 = vmatmul.mubr.bf16.gmra.mxu1 %v5688_v38  ;;  %1725 = vmatmul.mubr.bf16.gmra.mxu0 %v5471_v10 }
  0xc6   : > { %1635 = vmatprep.mubr.bf16.mxu1 %v5691_v43  ;;  %1732 = vmatprep.mubr.bf16.mxu0 %v5609_v20 }
  0xcd   : > { %1636 = vmatmul.mubr.bf16.gmra.mxu1 %v5700_v1  ;;  %1733 = vmatmul.mubr.bf16.gmra.mxu0 %v5500_v33 }
  0xce   : > { %1837 = vmatprep.mubr.bf16.mxu1 %v5288_v17  ;;  %1740 = vmatprep.mubr.bf16.mxu0 %v5625_v61 }
  0xd5   : > { %1838 = vmatmul.mubr.bf16.vlgmr.msra.gmra.mxu1 %v5252_v59  ;;  %1741 = vmatmul.mubr.bf16.gmra.mxu0 %v5542_v8 }
  0xd6   : > { %1845 = vmatprep.mubr.bf16.mxu1 %v5335_v48  ;;  %1748 = vmatprep.mubr.bf16.mxu0 %v5640_v30 }
  0xdd   : > { %1846 = vmatmul.mubr.bf16.gmra.mxu1 %v5304_v23  ;;  %1749 = vmatmul.mubr.bf16.gmra.mxu0 %v5576_v51 }
  0xde   : > { %1853 = vmatprep.mubr.bf16.mxu1 %v5395_v16  ;;  %1756 = vmatprep.mubr.bf16.mxu0 %v5658_v49 }
  0xe5   : > { %1854 = vmatmul.mubr.bf16.gmra.mxu1 %v5354_v54  ;;  %1757 = vmatmul.mubr.bf16.gmra.mxu0 %v5591_v0 }
  0xe6   : > { %1861 = vmatprep.mubr.bf16.mxu1 %v5416_v34  ;;  %1764 = vmatprep.mubr.bf16.mxu0 %v5670_v57 }
  0xed   : > { %1862 = vmatmul.mubr.bf16.gmra.mxu1 %v5376_v5  ;;  %1765 = vmatmul.mubr.bf16.gmra.mxu0 %v5207_v35 }
  0xee   : > { %1869 = vmatprep.mubr.bf16.mxu1 %v5435_v47  ;;  %1772 = vmatprep.mubr.bf16.mxu0 %v5679_v4 }
  0xf5   : > { %v4284_v59 = vpop.f32.mrf.mxu0  ;;  %v4356_v3 = vpop.f32.mrf.mxu1  ;;  %1870 = vmatmul.mubr.bf16.gmra.mxu1 %v5392_v15  ;;  %1773 = vmatmul.mubr.bf16.gmra.mxu0 %v5249_v58  ;;  %v4968_v15 = vld [vmem:[%s5168_s6 + $0xc8] ss:$0 sps:$4 sm:$0x11]  }
  0xf6   : > { %1877 = vmatprep.mubr.bf16.mxu1 %v5471_v10  ;;  %1780 = vmatprep.mubr.bf16.mxu0 %v5688_v38  ;;  %v716_v24 = vrot.slane %v4968_v15, 1  ;;  %v632_v18 = vshll.u32 %v4968_v15, 16 }
  0xf7   : > { %v4285_v17 = vpop.f32.mrf.mxu0  ;;  %v4357_v23 = vpop.f32.mrf.mxu1 }
  0xf8   : > { %v5726_v25 = vadd.f32 %v4285_v17, %v4284_v59  ;;  %v5728_v29 = vadd.f32 %v4357_v23, %v4356_v3  ;;  %v5751_v62 = vsel %vm666_vm1, %v715_v28, %v716_v24  ;;  %v634_v59 = vrot.slane %v632_v18, 1 }
  0xf9   : > { %v4287_v48 = vpop.f32.mrf.mxu0  ;;  %v4359_v54 = vpop.f32.mrf.mxu1 }
  0xfb   : > { %v4288_v5 = vpop.f32.mrf.mxu0  ;;  %v4360_v16 = vpop.f32.mrf.mxu1 }
  0xfc   : > { %v5730_v34 = vadd.f32 %v4288_v5, %v4287_v48  ;;  %v5732_v47 = vadd.f32 %v4360_v16, %v4359_v54 }
  0xfd   : > { %v4290_v26 = vpop.f32.mrf.mxu0  ;;  %v4362_v27 = vpop.f32.mrf.mxu1  ;;  %1878 = vmatmul.mubr.bf16.gmra.mxu1 %v5426_v44  ;;  %1781 = vmatmul.mubr.bf16.gmra.mxu0 %v5298_v21 }
  0xfe   : > { %1885 = vmatprep.mubr.bf16.mxu1 %v5500_v33  ;;  %1788 = vmatprep.mubr.bf16.mxu0 %v5700_v1  ;;  %v629_v33 = vrot.slane %v627_v56, 1 }
  0xff   : > { %v4291_v10 = vpop.f32.mrf.mxu0  ;;  %v4363_v42 = vpop.f32.mrf.mxu1 }
 0x100   : > { %v5740_v11 = vadd.f32 %v4291_v10, %v4290_v26  ;;  %v5742_v2 = vadd.f32 %v4363_v42, %v4362_v27  ;;  %v630_v45 = vor.u32 %v629_v33, %v625_v52 }
 0x101   : > { %v4293_v32 = vpop.f32.mrf.mxu0  ;;  %v4365_v7 = vpop.f32.mrf.mxu1 }
 0x103   : > { %v4294_v44 = vpop.f32.mrf.mxu0  ;;  %v4366_v40 = vpop.f32.mrf.mxu1 }
 0x104   : > { %v5746_v13 = vadd.f32 %v4294_v44, %v4293_v32  ;;  %v5748_v12 = vadd.f32 %v4366_v40, %v4365_v7 }
 0x105   : > { %v4296_v60 = vpop.f32.mrf.mxu0  ;;  %v4368_v22 = vpop.f32.mrf.mxu1  ;;  %1886 = vmatmul.mubr.bf16.gmra.mxu1 %v5432_v46  ;;  %1789 = vmatmul.mubr.bf16.gmra.mxu0 %v5342_v50  ;;  %v5762_v46 = vsel %vm431_vm0, %v630_v45, %v634_v59 }
 0x106   : > { %1893 = vmatprep.mubr.bf16.mxu1 %v5542_v8  ;;  %1796 = vmatprep.mubr.bf16.mxu0 %v5751_v62 }
 0x107   : > { %v4297_v14 = vpop.f32.mrf.mxu0  ;;  %v4369_v19 = vpop.f32.mrf.mxu1 }
 0x108   : > { %v5757_v3 = vadd.f32 %v4297_v14, %v4296_v60  ;;  %v5759_v17 = vadd.f32 %v4369_v19, %v4368_v22 }
 0x109   : > { %v4299_v23 = vpop.f32.mrf.mxu0  ;;  %v4371_v48 = vpop.f32.mrf.mxu1 }
 0x10b   : > { %v4300_v54 = vpop.f32.mrf.mxu0  ;;  %v4372_v5 = vpop.f32.mrf.mxu1 }
 0x10c   : > { %v5764_v16 = vadd.f32 %v4300_v54, %v4299_v23  ;;  %v5766_v8 = vadd.f32 %v4372_v5, %v4371_v48 }
 0x10d   : > { %v4302_v15 = vpop.f32.mrf.mxu0  ;;  %v4374_v26 = vpop.f32.mrf.mxu1  ;;  %1894 = vmatmul.mubr.bf16.gmra.mxu1 %v5468_v9  ;;  %1797 = vmatmul.mubr.bf16.gmra.mxu0 %v5762_v46 }
 0x10e   : > { %1901 = vmatprep.mubr.bf16.mxu1 %v5576_v51  ;;  %4756 = vmatprep.mubr.bf16.mxu0 %v5461_v37  ;;  %v5786_v37 = vld [vmem:[%s6520_s2] ss:$0 sm:$0xff] }
 0x10f   : > { %v4303_v27 = vpop.f32.mrf.mxu0  ;;  %v4375_v10 = vpop.f32.mrf.mxu1  ;;  %v1357_v33 = vadd.f32 %v5726_v25, %v5786_v37  ;;  %v1360_v19 = vadd.f32 %v5730_v34, %v5786_v37  ;;  %v1365_v34 = vadd.f32 %v5740_v11, %v5786_v37 }
 0x110   : > { %v5772_v42 = vadd.f32 %v4303_v27, %v4302_v15  ;;  %v5774_v56 = vadd.f32 %v4375_v10, %v4374_v26 }
 0x111   : > { %v4305_v28 = vpop.f32.mrf.mxu0  ;;  %v4377_v24 = vpop.f32.mrf.mxu1 }
 0x113   : > { %v4306_v32 = vpop.f32.mrf.mxu0  ;;  %v4378_v7 = vpop.f32.mrf.mxu1 }
 0x114   : > { %v5776_v44 = vadd.f32 %v4306_v32, %v4305_v28  ;;  %v5778_v40 = vadd.f32 %v4378_v7, %v4377_v24 }
 0x115   : > { %v4396_v9 = vpop.f32.mrf.mxu1  ;;  %1902 = vmatmul.mubr.bf16.gmra.mxu1 %v5504_v41  ;;  %v4308_v51 = vpop.f32.mrf.mxu0  ;;  %4757 = vmatmul.mubr.bf16.vlgmr.msra.gmra.mxu0 %v5493_v31 }
 0x116   : > { %1909 = vmatprep.mubr.bf16.mxu1 %v5591_v0  ;;  %4760 = vmatprep.mubr.bf16.mxu0 %v5529_v63 }
 0x117   : > { %v4397_v52 = vpop.f32.mrf.mxu1  ;;  %v4309_v18 = vpop.f32.mrf.mxu0 }
 0x118   : > { %v4398_v60 = vadd.f32 %v4397_v52, %v4396_v9  ;;  %v5791_v22 = vadd.f32 %v4309_v18, %v4308_v51 }
 0x119   : > { %v4399_v41 = vpop.f32.mrf.mxu1  ;;  %v4311_v31 = vpop.f32.mrf.mxu0 }
 0x11a   : > { %v5793_v14 = vadd.f32 %v4398_v60, %v1357_v33 }
 0x11b   : > { %v4400_v0 = vpop.f32.mrf.mxu1  ;;  %v4312_v45 = vpop.f32.mrf.mxu0 }
 0x11c   : > { %v4401_v59 = vadd.f32 %v4400_v0, %v4399_v41  ;;  %v5797_v23 = vadd.f32 %v4312_v45, %v4311_v31 }
 0x11d   : > { %v4402_v63 = vpop.f32.mrf.mxu1  ;;  %1910 = vmatmul.mubr.bf16.gmra.mxu1 %v5539_v6  ;;  %v4314_v48 = vpop.f32.mrf.mxu0  ;;  %4761 = vmatmul.mubr.bf16.gmra.mxu0 %v5568_v39  ;;  %v1368_v39 = vadd.f32 %v5746_v13, %v5786_v37  ;;  %v1373_v13 = vadd.f32 %v5757_v3, %v5786_v37 }
 0x11e   : > { %v5800_v25 = vadd.f32 %v4401_v59, %v1360_v19  ;;  %1917 = vmatprep.mubr.bf16.mxu1 %v5207_v35  ;;  %4764 = vmatprep.mubr.bf16.mxu0 %v5588_v55  ;;  %v4973_v19 = vld [vmem:[%s5168_s6 + $0x9c] sm:$0xff]  }
 0x11f   : > { %v4403_v54 = vpop.f32.mrf.mxu1  ;;  %v4315_v5 = vpop.f32.mrf.mxu0 }
 0x120   : > { %v4404_v15 = vadd.f32 %v4403_v54, %v4402_v63  ;;  %v5807_v26 = vadd.f32 %v4315_v5, %v4314_v48 }
 0x121   : > { %v4405_v27 = vpop.f32.mrf.mxu1  ;;  %v4317_v6 = vpop.f32.mrf.mxu0 }
 0x122   : > { %v5809_v10 = vadd.f32 %v4404_v15, %v1365_v34 }
 0x123   : > { %v4406_v28 = vpop.f32.mrf.mxu1  ;;  %v4318_v24 = vpop.f32.mrf.mxu0 }
 0x124   : > { %v4407_v35 = vadd.f32 %v4406_v28, %v4405_v27  ;;  %v5813_v32 = vadd.f32 %v4318_v24, %v4317_v6 }
 0x125   : > { %v4408_v55 = vpop.f32.mrf.mxu1  ;;  %1918 = vmatmul.mubr.bf16.gmra.mxu1 %v5648_v53  ;;  %v4320_v7 = vpop.f32.mrf.mxu0  ;;  %4765 = vmatmul.mubr.bf16.gmra.mxu0 %v5600_v36  ;;  %v1376_v36 = vadd.f32 %v5764_v16, %v5786_v37  ;;  %v1381_v16 = vadd.f32 %v5772_v42, %v5786_v37 }
 0x126   : > { %v5816_v11 = vadd.f32 %v4407_v35, %v1368_v39  ;;  %1925 = vmatprep.mubr.bf16.mxu1 %v5249_v58  ;;  %4768 = vmatprep.mubr.bf16.mxu0 %v5609_v20  ;;  %v4974_v39 = vld [vmem:[%s5168_s6 + $0xa8] sm:$0xff]  }
 0x127   : > { %v4409_v9 = vpop.f32.mrf.mxu1  ;;  %v4321_v51 = vpop.f32.mrf.mxu0 }
 0x128   : > { %v4410_v52 = vadd.f32 %v4409_v9, %v4408_v55  ;;  %v5823_v33 = vadd.f32 %v4321_v51, %v4320_v7  ;;  %v4970_v7 = vld [vmem:[%s5168_s6 + $0xd4] ss:$0 sps:$4 sm:$0x11]   ;;  %v1389_v9 = vadd.f32 %v5791_v22, %v5786_v37 }
 0x129   : > { %v4411_v18 = vpop.f32.mrf.mxu1  ;;  %v4323_v60 = vpop.f32.mrf.mxu0 }
 0x12a   : > { %v5825_v53 = vadd.f32 %v4410_v52, %v1373_v13 }
 0x12b   : > { %v4412_v41 = vpop.f32.mrf.mxu1  ;;  %v4324_v58 = vpop.f32.mrf.mxu0 }
 0x12c   : > { %v4413_v31 = vadd.f32 %v4412_v41, %v4411_v18  ;;  %v5829_v0 = vadd.f32 %v4324_v58, %v4323_v60  ;;  %v1392_v58 = vadd.f32 %v5797_v23, %v5786_v37  ;;  %v1397_v23 = vadd.f32 %v5807_v26, %v5786_v37 }
 0x12d   : > { %v4414_v20 = vpop.f32.mrf.mxu1  ;;  %1926 = vmatmul.mubr.bf16.gmra.mxu1 %v4973_v19  ;;  %v4326_v45 = vpop.f32.mrf.mxu0  ;;  %4769 = vmatmul.mubr.bf16.gmra.mxu0 %v5625_v61  ;;  %v5844_v61 = vld [vmem:[%s5168_s6 + $0xcc] sm:$0xff]  }
 0x12e   : > { %v5832_v3 = vadd.f32 %v4413_v31, %v1376_v36  ;;  %1933 = vmatprep.mubr.bf16.mxu1 %v5298_v21  ;;  %4772 = vmatprep.mubr.bf16.mxu0 %v5640_v30  ;;  %v1384_v21 = vadd.f32 %v5776_v44, %v5786_v37  ;;  %v639_v44 = vshll.u32 %v5844_v61, 16 }
 0x12f   : > { %v4415_v59 = vpop.f32.mrf.mxu1  ;;  %v4327_v63 = vpop.f32.mrf.mxu0 }
 0x130   : > { %v4416_v48 = vadd.f32 %v4415_v59, %v4414_v20  ;;  %v5839_v54 = vadd.f32 %v4327_v63, %v4326_v45  ;;  %v641_v36 = vrot.slane %v639_v44, 1  ;;  %v4975_v45 = vld [vmem:[%s5168_s6 + $0xb4] sm:$0xff]   ;;  %s199_s6 = sand.u32 1, %s5036_s13  }
 0x131   : > { %v4417_v34 = vpop.f32.mrf.mxu1  ;;  %v4329_v15 = vpop.f32.mrf.mxu0  ;;  %s4023_s4 = sshll.u32 %s199_s6, 6  ;;  %s6473_s15 = scalar_lea.sflag [#allocation3], %s199_s6 }
 0x132   : > { %v5841_v5 = vadd.f32 %v4416_v48, %v1381_v16  ;;  %s6222_s5 = scalar_lea.vmem [#allocation2], %s4023_s4 }
 0x133   : > { %v4418_v27 = vpop.f32.mrf.mxu1  ;;  %v4330_v6 = vpop.f32.mrf.mxu0  ;;  %s3917_s8 = sshll.u32 %s6222_s5, 4  ;;  %s6466_s8 = int_to_ptr.vmem [resolvable:$true] %s3917_s8 }
 0x134   : > { %v4419_v30 = vadd.f32 %v4418_v27, %v4417_v34  ;;  %v5848_v28 = vadd.f32 %v4330_v6, %v4329_v15  ;;  %s4976_s18 = scalar_lea.vmem %s6466_s8, 1024  ;;  %p4983_p1 = scmp.lt.s32.totalorder %s6466_s8, %s4981_s21 }
 0x135   : > { %v4420_v42 = vpop.f32.mrf.mxu1  ;;  %1934 = vmatmul.mubr.bf16.gmra.mxu1 %v4974_v39  ;;  %v4332_v35 = vpop.f32.mrf.mxu0  ;;  %4773 = vmatmul.mubr.bf16.gmra.mxu0 %v5658_v49  ;;  %p4977_p12 = scmp.ne.s32.totalorder %s6466_s8, %s4976_s18  ;;  %p4984_p2 = scmp.lt.s32.totalorder %s4982_s23, %s4976_s18 }
 0x136   : > { %v5851_v24 = vadd.f32 %v4419_v30, %v1384_v21  ;;  %1941 = vmatprep.mubr.bf16.mxu1 %v5342_v50  ;;  %4776 = vmatprep.mubr.bf16.mxu0 %v5670_v57  ;;  %v637_v50 = vshrl.u32 %v5844_v61, 16  ;;  %v644_v57 = vshll.u32 %v4970_v7, 16 }
 0x137   : > { %v4421_v55 = vpop.f32.mrf.mxu1  ;;  %v4333_v13 = vpop.f32.mrf.mxu0  ;;  %p4978_p13 = pnand %p4977_p12, %p5118_p4  ;;  %p4985_p3 = por %p4984_p2, %p4983_p1 }
 0x138   : > { %v4422_v51 = vadd.f32 %v4421_v55, %v4420_v42  ;;  %v5860_v52 = vadd.f32 %v4333_v13, %v4332_v35  ;;  %v642_v48 = vor.u32 %v641_v36, %v637_v50  ;;  %v646_v34 = vrot.slane %v644_v57, 1 }
 0x139   : > { %v4423_v18 = vpop.f32.mrf.mxu1  ;;  %v4335_v49 = vpop.f32.mrf.mxu0  ;;  %p4979_p0 = pneg %p4978_p13 }
 0x13a   : > { %v5862_v60 = vadd.f32 %v4422_v51, %v1389_v9  ;;  %v718_v51 = vrot.slane %v5844_v61, 1 }
 0x13b   : > { %v4424_v41 = vpop.f32.mrf.mxu1  ;;  %v4336_v31 = vpop.f32.mrf.mxu0  ;;  %p4986_p5 = pnand %p4985_p3, %p4979_p0 }
 0x13c   : > { %v4425_v20 = vadd.f32 %v4424_v41, %v4423_v18  ;;  %v5867_v22 = vadd.f32 %v4336_v31, %v4335_v49  ;;  %v719_v18 = vrot.slane %v4970_v7, 1 }
 0x13d   : > { %v4426_v19 = vpop.f32.mrf.mxu1  ;;  %1942 = vmatmul.mubr.bf16.gmra.mxu1 %v4975_v45  ;;  %v4338_v16 = vpop.f32.mrf.mxu0  ;;  %4777 = vmatmul.mubr.bf16.gmra.mxu0 %v5679_v4  ;;  %v647_v4 = vsel %vm431_vm0, %v642_v48, %v646_v34 }
 0x13e   : > { %v5870_v59 = vadd.f32 %v4425_v20, %v1392_v58  ;;  %1949 = vmatprep.mubr.bf16.mxu1 %v5762_v46  ;;  %4780 = vmatprep.mubr.bf16.mxu0 %v5688_v38  ;;  %v1400_v46 = vadd.f32 %v5813_v32, %v5786_v37  ;;  %v1405_v32 = vadd.f32 %v5823_v33, %v5786_v37 }
 0x13f   : > { %v4427_v63 = vpop.f32.mrf.mxu1  ;;  %v4339_v15 = vpop.f32.mrf.mxu0 }
 0x140   : > { %v4428_v27 = vadd.f32 %v4427_v63, %v4426_v19  ;;  %v5877_v21 = vadd.f32 %v4339_v15, %v4338_v16  ;;  %v1413_v63 = vadd.f32 %v5839_v54, %v5786_v37 }
 0x141   : > { %v4429_v6 = vpop.f32.mrf.mxu1  ;;  %v4341_v42 = vpop.f32.mrf.mxu0 }
 0x142   : > { %v5879_v30 = vadd.f32 %v4428_v27, %v1397_v23 }
 0x143   : > { %v4430_v39 = vpop.f32.mrf.mxu1  ;;  %v4342_v38 = vpop.f32.mrf.mxu0 }
 0x144   : > { %v4431_v35 = vadd.f32 %v4430_v39, %v4429_v6  ;;  %v5884_v55 = vadd.f32 %v4342_v38, %v4341_v42 }
 0x145   : > { %v4432_v44 = vpop.f32.mrf.mxu1  ;;  %1950 = vmatmul.mubr.bf16.gmra.mxu1 %v5691_v43  ;;  %v4344_v9 = vpop.f32.mrf.mxu0  ;;  %4781 = vmatmul.mubr.bf16.gmra.mxu0 %v5700_v1  ;;  %v720_v1 = vsel %vm666_vm1, %v718_v51, %v719_v18 }
 0x146   : > { %v5887_v26 = vadd.f32 %v4431_v35, %v1400_v46  ;;  %1957 = vmatprep.mubr.bf16.mxu1 %v647_v4  ;;  %4784 = vmatprep.mubr.bf16.mxu0 %v5751_v62  ;;  %v1408_v62 = vadd.f32 %v5829_v0, %v5786_v37 }
 0x147   : > { %v4433_v13 = vpop.f32.mrf.mxu1  ;;  %v4345_v49 = vpop.f32.mrf.mxu0 }
 0x148   : > { %v4434_v41 = vadd.f32 %v4433_v13, %v4432_v44  ;;  %v5894_v50 = vadd.f32 %v4345_v49, %v4344_v9  ;;  %v1421_v44 = vadd.f32 %v5860_v52, %v5786_v37 }
 0x149   : > { %v4435_v43 = vpop.f32.mrf.mxu1  ;;  %v4347_v57 = vpop.f32.mrf.mxu0 }
 0x14a   : > { %v5896_v36 = vadd.f32 %v4434_v41, %v1405_v32 }
 0x14b   : > { %v4436_v58 = vpop.f32.mrf.mxu1  ;;  %v4348_v31 = vpop.f32.mrf.mxu0 }
 0x14c   : > { %v4437_v20 = vadd.f32 %v4436_v58, %v4435_v43  ;;  %v5901_v7 = vadd.f32 %v4348_v31, %v4347_v57  ;;  %v1424_v43 = vadd.f32 %v5867_v22, %v5786_v37 }
 0x14d   : > { %v4438_v19 = vpop.f32.mrf.mxu1  ;;  %1958 = vmatmul.mubr.bf16.gmra.mxu1 %v5844_v61  ;;  %v4350_v45 = vpop.f32.mrf.mxu0  ;;  %4785 = vmatmul.mubr.bf16.gmra.mxu0 %v720_v1  ;;  %v1416_v61 = vadd.f32 %v5848_v28, %v5786_v37 }
 0x14e   : > { %v5904_v33 = vadd.f32 %v4437_v20, %v1408_v62 }
 0x14f   : > { %v4439_v16 = vpop.f32.mrf.mxu1  ;;  %v4351_v48 = vpop.f32.mrf.mxu0 }
 0x150   : > { %v4440_v34 = vadd.f32 %v4439_v16, %v4438_v19  ;;  %v5908_v23 = vadd.f32 %v4351_v48, %v4350_v45  ;;  %v1429_v45 = vadd.f32 %v5877_v21, %v5786_v37 }
 0x151   : > { %v4441_v0 = vpop.f32.mrf.mxu1  ;;  %v4353_v27 = vpop.f32.mrf.mxu0 }
 0x152   : > { %v5910_v15 = vadd.f32 %v4440_v34, %v1413_v63 }
 0x153   : > { %v4442_v6 = vpop.f32.mrf.mxu1  ;;  %v4354_v42 = vpop.f32.mrf.mxu0 }
 0x154   : > { %v4443_v39 = vadd.f32 %v4442_v6, %v4441_v0  ;;  %v5914_v4 = vadd.f32 %v4354_v42, %v4353_v27  ;;  %v1432_v6 = vadd.f32 %v5884_v55, %v5786_v37 }
 0x155   : > { %v4444_v46 = vpop.f32.mrf.mxu1  ;;  %v4508_v54 = vpop.f32.mrf.mxu0 }
 0x156   : > { %v5916_v38 = vadd.f32 %v4443_v39, %v1416_v61 }
 0x157   : > { %v4445_v35 = vpop.f32.mrf.mxu1  ;;  %v4509_v13 = vpop.f32.mrf.mxu0 }
 0x158   : > { %v4446_v9 = vadd.f32 %v4445_v35, %v4444_v46  ;;  %v4510_v51 = vadd.f32 %v4509_v13, %v4508_v54 }
 0x159   : > { %v4447_v18 = vpop.f32.mrf.mxu1  ;;  %v4511_v49 = vpop.f32.mrf.mxu0 }
 0x15a   : > { %v5920_v32 = vadd.f32 %v4446_v9, %v1421_v44  ;;  %v5923_v28 = vadd.f32 %v4510_v51, %v5793_v14  ;;  %v1437_v44 = vadd.f32 %v5894_v50, %v5786_v37 }
 0x15b   : > { %v4448_v41 = vpop.f32.mrf.mxu1  ;;  %v4512_v58 = vpop.f32.mrf.mxu0 }
 0x15c   : > { %v4449_v57 = vadd.f32 %v4448_v41, %v4447_v18  ;;  %v4513_v1 = vadd.f32 %v4512_v58, %v4511_v49 }
 0x15d   : > { %v4450_v62 = vpop.f32.mrf.mxu1  ;;  %v4514_v52 = vpop.f32.mrf.mxu0 }
 0x15e   : > { %v5927_v31 = vadd.f32 %v4449_v57, %v1424_v43  ;;  %v5930_v20 = vadd.f32 %v4513_v1, %v5800_v25  ;;  %v1440_v43 = vadd.f32 %v5901_v7, %v5786_v37 }
 0x15f   : > { %v4451_v19 = vpop.f32.mrf.mxu1  ;;  %v4515_v16 = vpop.f32.mrf.mxu0 }
 0x160   : > { %v4452_v14 = vadd.f32 %v4451_v19, %v4450_v62  ;;  %v4516_v63 = vadd.f32 %v4515_v16, %v4514_v52 }
 0x161   : > { %v4453_v48 = vpop.f32.mrf.mxu1  ;;  %v4517_v22 = vpop.f32.mrf.mxu0 }
 0x162   : > { %v5934_v34 = vadd.f32 %v4452_v14, %v1429_v45  ;;  %v5937_v0 = vadd.f32 %v4516_v63, %v5809_v10  ;;  %v1445_v45 = vadd.f32 %v5908_v23, %v5786_v37 }
 0x163   : > { %v4454_v27 = vpop.f32.mrf.mxu1  ;;  %v4518_v61 = vpop.f32.mrf.mxu0 }
 0x164   : > { %v4455_v25 = vadd.f32 %v4454_v27, %v4453_v48  ;;  %v4519_v42 = vadd.f32 %v4518_v61, %v4517_v22 }
 0x165   : > { %v4456_v39 = vpop.f32.mrf.mxu1  ;;  %v4520_v21 = vpop.f32.mrf.mxu0 }
 0x166   : > { %v5941_v46 = vadd.f32 %v4455_v25, %v1432_v6  ;;  %v5944_v54 = vadd.f32 %v4519_v42, %v5816_v11  ;;  %v1448_v6 = vadd.f32 %v5914_v4, %v5786_v37 }
 0x167   : > { %v4457_v35 = vpop.f32.mrf.mxu1  ;;  %v4521_v9 = vpop.f32.mrf.mxu0 }
 0x168   : > { %v4458_v10 = vadd.f32 %v4457_v35, %v4456_v39  ;;  %v4522_v13 = vadd.f32 %v4521_v9, %v4520_v21 }
 0x169   : > { %v4459_v51 = vpop.f32.mrf.mxu1  ;;  %v4523_v55 = vpop.f32.mrf.mxu0 }
 0x16a   : > { %v5948_v18 = vadd.f32 %v4458_v10, %v1437_v44  ;;  %v5951_v49 = vadd.f32 %v4522_v13, %v5825_v53  ;;  %v1453_v44 = vadd.f32 %v5728_v29, %v5786_v37 }
 0x16b   : > { %v4460_v41 = vpop.f32.mrf.mxu1  ;;  %v4524_v57 = vpop.f32.mrf.mxu0 }
 0x16c   : > { %v4461_v11 = vadd.f32 %v4460_v41, %v4459_v51  ;;  %v4525_v58 = vadd.f32 %v4524_v57, %v4523_v55 }
 0x16d   : > { %v4462_v1 = vpop.f32.mrf.mxu1  ;;  %v4526_v50 = vpop.f32.mrf.mxu0 }
 0x16e   : > { %v5955_v62 = vadd.f32 %v4461_v11, %v1440_v43  ;;  %v5958_v52 = vadd.f32 %v4525_v58, %v5832_v3  ;;  %v1456_v43 = vadd.f32 %v5732_v47, %v5786_v37 }
 0x16f   : > { %v4463_v19 = vpop.f32.mrf.mxu1  ;;  %v4527_v14 = vpop.f32.mrf.mxu0 }
 0x170   : > { %v4464_v53 = vadd.f32 %v4463_v19, %v4462_v1  ;;  %v4528_v16 = vadd.f32 %v4527_v14, %v4526_v50 }
 0x171   : > { %v4465_v63 = vpop.f32.mrf.mxu1  ;;  %v4529_v7 = vpop.f32.mrf.mxu0 }
 0x172   : > { %v5962_v48 = vadd.f32 %v4464_v53, %v1445_v45  ;;  %v5965_v22 = vadd.f32 %v4528_v16, %v5841_v5  ;;  %v1461_v45 = vadd.f32 %v5742_v2, %v5786_v37 }
 0x173   : > { %v4466_v27 = vpop.f32.mrf.mxu1  ;;  %v4530_v25 = vpop.f32.mrf.mxu0 }
 0x174   : > { %v4467_v3 = vadd.f32 %v4466_v27, %v4465_v63  ;;  %v4531_v61 = vadd.f32 %v4530_v25, %v4529_v7 }
 0x175   : > { %v4468_v42 = vpop.f32.mrf.mxu1  ;;  %v4532_v23 = vpop.f32.mrf.mxu0 }
 0x176   : > { %v5969_v39 = vadd.f32 %v4467_v3, %v1448_v6  ;;  %v5972_v21 = vadd.f32 %v4531_v61, %v5851_v24  ;;  %v1464_v6 = vadd.f32 %v5748_v12, %v5786_v37 }
 0x177   : > { %v4469_v35 = vpop.f32.mrf.mxu1  ;;  %v4533_v10 = vpop.f32.mrf.mxu0 }
 0x178   : > { %v4470_v5 = vadd.f32 %v4469_v35, %v4468_v42  ;;  %v4534_v9 = vadd.f32 %v4533_v10, %v4532_v23 }
 0x179   : > { %v4471_v13 = vpop.f32.mrf.mxu1  ;;  %v4535_v4 = vpop.f32.mrf.mxu0 }
 0x17a   : > { %v5976_v51 = vadd.f32 %v4470_v5, %v1453_v44  ;;  %v5979_v55 = vadd.f32 %v4534_v9, %v5862_v60  ;;  %v1469_v44 = vadd.f32 %v5759_v17, %v5786_v37 }
 0x17b   : > { %v4472_v41 = vpop.f32.mrf.mxu1  ;;  %v4536_v11 = vpop.f32.mrf.mxu0 }
 0x17c   : > { %v4473_v24 = vadd.f32 %v4472_v41, %v4471_v13  ;;  %v4537_v57 = vadd.f32 %v4536_v11, %v4535_v4 }
 0x17d   : > { %v4474_v58 = vpop.f32.mrf.mxu1  ;;  %v4538_v29 = vpop.f32.mrf.mxu0 }
 0x17e   : > { %v5983_v1 = vadd.f32 %v4473_v24, %v1456_v43  ;;  %v5986_v50 = vadd.f32 %v4537_v57, %v5870_v59  ;;  %v1472_v43 = vadd.f32 %v5766_v8, %v5786_v37 }
 0x17f   : > { %v4475_v19 = vpop.f32.mrf.mxu1  ;;  %v4539_v53 = vpop.f32.mrf.mxu0 }
 0x180   : > { %v4476_v60 = vadd.f32 %v4475_v19, %v4474_v58  ;;  %v4540_v14 = vadd.f32 %v4539_v53, %v4538_v29 }
 0x181   : > { %v4477_v16 = vpop.f32.mrf.mxu1  ;;  %v4541_v47 = vpop.f32.mrf.mxu0 }
 0x182   : > { %v5990_v63 = vadd.f32 %v4476_v60, %v1461_v45  ;;  %v5993_v7 = vadd.f32 %v4540_v14, %v5879_v30  ;;  %v1477_v45 = vadd.f32 %v5774_v56, %v5786_v37 }
 0x183   : > { %v4478_v27 = vpop.f32.mrf.mxu1  ;;  %v4542_v3 = vpop.f32.mrf.mxu0 }
 0x184   : > { %v4479_v59 = vadd.f32 %v4478_v27, %v4477_v16  ;;  %v4543_v25 = vadd.f32 %v4542_v3, %v4541_v47 }
 0x185   : > { %v4480_v61 = vpop.f32.mrf.mxu1  ;;  %v4544_v2 = vpop.f32.mrf.mxu0 }
 0x186   : > { %v5997_v42 = vadd.f32 %v4479_v59, %v1464_v6  ;;  %v6000_v23 = vadd.f32 %v4543_v25, %v5887_v26  ;;  %v1480_v6 = vadd.f32 %v5778_v40, %v5786_v37 }
 0x187   : > { %v4481_v35 = vpop.f32.mrf.mxu1  ;;  %v4545_v5 = vpop.f32.mrf.mxu0 }
 0x188   : > { %v4482_v30 = vadd.f32 %v4481_v35, %v4480_v61  ;;  %v4546_v10 = vadd.f32 %v4545_v5, %v4544_v2 }
 0x189   : > { %v4483_v9 = vpop.f32.mrf.mxu1  ;;  %v4547_v12 = vpop.f32.mrf.mxu0 }
 0x18a   : > { %v6004_v13 = vadd.f32 %v4482_v30, %v1469_v44  ;;  %v6007_v4 = vadd.f32 %v4546_v10, %v5896_v36 }
 0x18b   : > { %v4484_v41 = vpop.f32.mrf.mxu1  ;;  %v4548_v24 = vpop.f32.mrf.mxu0 }
 0x18c   : > { %v4485_v26 = vadd.f32 %v4484_v41, %v4483_v9  ;;  %v4549_v11 = vadd.f32 %v4548_v24, %v4547_v12 }
 0x18d   : > { %v4486_v57 = vpop.f32.mrf.mxu1  ;;  %v4550_v17 = vpop.f32.mrf.mxu0 }
 0x18e   : > { %v6011_v58 = vadd.f32 %v4485_v26, %v1472_v43  ;;  %v6014_v29 = vadd.f32 %v4549_v11, %v5904_v33 }
 0x18f   : > { %v4487_v19 = vpop.f32.mrf.mxu1  ;;  %v4551_v60 = vpop.f32.mrf.mxu0 }
 0x190   : > { %v4488_v36 = vadd.f32 %v4487_v19, %v4486_v57  ;;  %v4552_v53 = vadd.f32 %v4551_v60, %v4550_v17 }
 0x191   : > { %v4489_v14 = vpop.f32.mrf.mxu1  ;;  %v4553_v8 = vpop.f32.mrf.mxu0 }
 0x192   : > { %v6018_v16 = vadd.f32 %v4488_v36, %v1477_v45  ;;  %v6021_v47 = vadd.f32 %v4552_v53, %v5910_v15 }
 0x193   : > { %v4490_v27 = vpop.f32.mrf.mxu1  ;;  %v4554_v59 = vpop.f32.mrf.mxu0 }
 0x194   : > { %v4491_v33 = vadd.f32 %v4490_v27, %v4489_v14  ;;  %v4555_v3 = vadd.f32 %v4554_v59, %v4553_v8 }
 0x195   : > { %v6025_v25 = vpop.f32.mrf.mxu1  ;;  %v4556_v61 = vpop.f32.mrf.mxu0 }
 0x196   : > { %v6027_v56 = vadd.f32 %v4491_v33, %v1480_v6  ;;  %v6030_v2 = vadd.f32 %v4555_v3, %v5916_v38 }
 0x197   : > { %v6032_v35 = vpop.f32.mrf.mxu1  ;;  %v4557_v44 = vpop.f32.mrf.mxu0 }
 0x198   : > { %6524 = vst [vmem:[#allocation5_spill] sm:$0xff] %v6030_v2  ;;  %v4558_v15 = vadd.f32 %v4557_v44, %v4556_v61 }
 0x199   : > { %v6034_v30 = vpop.f32.mrf.mxu1  ;;  %v4559_v5 = vpop.f32.mrf.mxu0 }
 0x19a   : > { %v6037_v40 = vadd.f32 %v4558_v15, %v5920_v32 }
 0x19b   : > { %v6039_v37 = vpop.f32.mrf.mxu1  ;;  %v4560_v10 = vpop.f32.mrf.mxu0 }
 0x19c   : > { %6525 = vst [vmem:[#allocation6_spill] sm:$0xff] %v6037_v40  ;;  %v4561_v9 = vadd.f32 %v4560_v10, %v4559_v5 }
 0x19d   : > { %v6041_v12 = vpop.f32.mrf.mxu1  ;;  %v4562_v41 = vpop.f32.mrf.mxu0 }
 0x19e   : > { %v6044_v38 = vadd.f32 %v4561_v9, %v5927_v31 }
 0x19f   : > { %v6046_v43 = vpop.f32.mrf.mxu1  ;;  %v4563_v26 = vpop.f32.mrf.mxu0 }
 0x1a0   : > { %6526 = vst [vmem:[#allocation7_spill] sm:$0xff] %v6044_v38  ;;  %v4564_v24 = vadd.f32 %v4563_v26, %v4562_v41 }
 0x1a1   : > { %v6048_v11 = vpop.f32.mrf.mxu1  ;;  %v4565_v57 = vpop.f32.mrf.mxu0 }
 0x1a2   : > { %v6051_v32 = vadd.f32 %v4564_v24, %v5934_v34 }
 0x1a3   : > { %v6053_v17 = vpop.f32.mrf.mxu1  ;;  %v4566_v19 = vpop.f32.mrf.mxu0 }
 0x1a4   : > { %6527 = vst [vmem:[#allocation8_spill] sm:$0xff] %v6051_v32  ;;  %v4567_v45 = vadd.f32 %v4566_v19, %v4565_v57  ;;  %v5054_v32 = vmov 1983009808  }
 0x1a5   : > { %v6055_v36 = vpop.f32.mrf.mxu1  ;;  %v4568_v60 = vpop.f32.mrf.mxu0 }
 0x1a6   : > { %v6058_v31 = vadd.f32 %v4567_v45, %v5941_v46 }
 0x1a7   : > { %v6060_v53 = vpop.f32.mrf.mxu1  ;;  %v4569_v14 = vpop.f32.mrf.mxu0 }
 0x1a8   : > { %6528 = vst [vmem:[#allocation9_spill] sm:$0xff] %v6058_v31  ;;  %v4570_v8 = vadd.f32 %v4569_v14, %v4568_v60 }
 0x1a9   : > { %v6062_v27 = vpop.f32.mrf.mxu1  ;;  %v4571_v6 = vpop.f32.mrf.mxu0 }
 0x1aa   : > { %v6065_v34 = vadd.f32 %v4570_v8, %v5948_v18 }
 0x1ab   : > { %v6067_v33 = vpop.f32.mrf.mxu1  ;;  %v4572_v59 = vpop.f32.mrf.mxu0 }
 0x1ac   : > { %6529 = vst [vmem:[#allocation10_spill] sm:$0xff] %v6065_v34  ;;  %v4573_v3 = vadd.f32 %v4572_v59, %v4571_v6 }
 0x1ad   : > { %v6069_v61 = vpop.f32.mrf.mxu1  ;;  %v4574_v44 = vpop.f32.mrf.mxu0 }
 0x1ae   : > { %v6072_v46 = vadd.f32 %v4573_v3, %v5955_v62 }
 0x1af   : > { %v6074_v15 = vpop.f32.mrf.mxu1  ;;  %v4575_v5 = vpop.f32.mrf.mxu0 }
 0x1b0   : > { %6530 = vst [vmem:[#allocation11_spill] sm:$0xff] %v6072_v46  ;;  %v4576_v10 = vadd.f32 %v4575_v5, %v4574_v44 }
 0x1b1   : > { %v6076_v9 = vpop.f32.mrf.mxu1  ;;  %v4577_v41 = vpop.f32.mrf.mxu0 }
 0x1b2   : > { %v6079_v18 = vadd.f32 %v4576_v10, %v5962_v48 }
 0x1b3   : > { %v6081_v26 = vpop.f32.mrf.mxu1  ;;  %v4578_v24 = vpop.f32.mrf.mxu0 }
 0x1b4   : > { %6531 = vst [vmem:[#allocation12_spill] sm:$0xff] %v6079_v18  ;;  %v4579_v57 = vadd.f32 %v4578_v24, %v4577_v41 }
 0x1b5   : > { %v6083_v19 = vpop.f32.mrf.mxu1  ;;  %v4580_v45 = vpop.f32.mrf.mxu0 }
 0x1b6   : > { %v6086_v62 = vadd.f32 %v4579_v57, %v5969_v39 }
 0x1b7   : > { %v6088_v60 = vpop.f32.mrf.mxu1  ;;  %v4581_v14 = vpop.f32.mrf.mxu0 }
 0x1b8   : > { %6532 = vst [vmem:[#allocation13_spill] sm:$0xff] %v6086_v62  ;;  %v4582_v8 = vadd.f32 %v4581_v14, %v4580_v45 }
 0x1b9   : > { %v4647_v6 = vpop.f32.mrf.mxu1  ;;  %v4583_v59 = vpop.f32.mrf.mxu0 }
 0x1ba   : > { %v6091_v3 = vadd.f32 %v4582_v8, %v5976_v51 }
 0x1bb   : > { %v4648_v48 = vpop.f32.mrf.mxu1  ;;  %v4584_v44 = vpop.f32.mrf.mxu0 }
 0x1bc   : > { %6533 = vst [vmem:[#allocation14_spill] sm:$0xff] %v6091_v3  ;;  %v4585_v5 = vadd.f32 %v4584_v44, %v4583_v59 }
 0x1bd   : > { %v4650_v10 = vpop.f32.mrf.mxu1  ;;  %v4586_v41 = vpop.f32.mrf.mxu0 }
 0x1be   : > { %v6094_v24 = vadd.f32 %v4585_v5, %v5983_v1 }
 0x1bf   : > { %v4651_v46 = vpop.f32.mrf.mxu1  ;;  %v4587_v39 = vpop.f32.mrf.mxu0 }
 0x1c0   : > { %6534 = vst [vmem:[#allocation15_spill] sm:$0xff] %v6094_v24  ;;  %v4588_v57 = vadd.f32 %v4587_v39, %v4586_v41  ;;  %v2193_v41 = vunpack.c.l.s4 %v5054_v32  ;;  %v2195_v39 = vlaneseq  ;;  %v4625_v32 = vadd.f32 %v6039_v37, %v6034_v30 }
 0x1c1   : > { %v4653_v62 = vpop.f32.mrf.mxu1  ;;  %v4589_v34 = vpop.f32.mrf.mxu0  ;;  %v4637_v30 = vadd.f32 %v6067_v33, %v6062_v27  ;;  %v4640_v37 = vadd.f32 %v6074_v15, %v6069_v61  ;;  %v4646_v27 = vadd.f32 %v6088_v60, %v6083_v19  ;;  %v4649_v33 = vadd.f32 %v4648_v48, %v4647_v6 }
 0x1c2   : > { %v6097_v45 = vadd.f32 %v4588_v57, %v5990_v63  ;;  %v2194_v40 = vunpack.c.0.s8 %v2193_v41  ;;  %v2196_v2 = vshrl.u32 %v2195_v39, 7 }
 0x1c3   : > { %v4654_v14 = vpop.f32.mrf.mxu1  ;;  %v4590_v18 = vpop.f32.mrf.mxu0  ;;  %v6147_v19 = vadd.f32 %v4637_v30, %v5958_v52 }
 0x1c4   : > { %6535 = vst [vmem:[#allocation16_spill] sm:$0xff] %v6097_v45  ;;  %v4591_v51 = vadd.f32 %v4590_v18, %v4589_v34 }
 0x1c5   : > { %v4656_v8 = vpop.f32.mrf.mxu1  ;;  %v4592_v3 = vpop.f32.mrf.mxu0 }
 0x1c6   : > { %v6100_v59 = vadd.f32 %v4591_v51, %v5997_v42  ;;  %v4622_v42 = vadd.f32 %v6032_v35, %v6025_v25  ;;  %v6118_v35 = vsub.s32 %v2194_v40, %v2196_v2 }
 0x1c7   : > { %v4657_v44 = vpop.f32.mrf.mxu1  ;;  %v4593_v31 = vpop.f32.mrf.mxu0 }
 0x1c8   : > { %v4594_v1 = vadd.f32 %v4593_v31, %v4592_v3 }
 0x1c9   : > { %v4659_v5 = vpop.f32.mrf.mxu1  ;;  %v4595_v24 = vpop.f32.mrf.mxu0 }
 0x1ca   : > { %v6103_v38 = vadd.f32 %v4594_v1, %v6004_v13  ;;  %v4628_v13 = vadd.f32 %v6046_v43, %v6041_v12  ;;  %v4634_v1 = vadd.f32 %v6060_v53, %v6055_v36  ;;  %v1843_v53 = vadd.f32 %v4625_v32, %v5930_v20 }
 0x1cb   : > { %v4660_v63 = vpop.f32.mrf.mxu1  ;;  %v4596_v57 = vpop.f32.mrf.mxu0  ;;  %v6144_v20 = vadd.f32 %v4640_v37, %v5965_v22  ;;  %v6538_v37 = vld [vmem:[#allocation7_spill] sm:$0xff] }
 0x1cc   : > { %v4597_v45 = vadd.f32 %v4596_v57, %v4595_v24  ;;  %v4631_v24 = vadd.f32 %v6053_v17, %v6048_v11  ;;  %v1840_v11 = vadd.f32 %v4622_v42, %v5923_v28  ;;  %v4643_v17 = vadd.f32 %v6081_v26, %v6076_v9 }
 0x1cd   : > { %v4662_v34 = vpop.f32.mrf.mxu1  ;;  %v4598_v18 = vpop.f32.mrf.mxu0  ;;  %v1848_v40 = vadd.f32 %v4628_v13, %v5937_v0  ;;  %v6138_v15 = vadd.f32 %v4634_v1, %v5951_v49  ;;  %v4652_v28 = vadd.f32 %v4651_v46, %v4650_v10  ;;  %v4658_v57 = vadd.f32 %v4657_v44, %v4656_v8  ;;  %v6536_v13 = vld [vmem:[#allocation5_spill] sm:$0xff] }
 0x1ce   : > { %v6108_v31 = vadd.f32 %v4597_v45, %v6011_v58  ;;  %v6120_v58 = vsub.s32 0, %v2196_v2  ;;  %v1851_v2 = vadd.f32 %v4631_v24, %v5944_v54  ;;  %v4655_v45 = vadd.f32 %v4654_v14, %v4653_v62  ;;  %v6537_v24 = vld [vmem:[#allocation6_spill] sm:$0xff] }
 0x1cf   : > { %v4663_v3 = vpop.f32.mrf.mxu1  ;;  %v4599_v51 = vpop.f32.mrf.mxu0  ;;  %v4661_v9 = vadd.f32 %v4660_v63, %v4659_v5  ;;  %v6150_v46 = vadd.f32 %v4643_v17, %v5972_v21  ;;  %v6156_v8 = vadd.f32 %v4649_v33, %v5986_v50  ;;  %v6159_v52 = vadd.f32 %v4652_v28, %v5993_v7 }
 0x1d0   : > { %v4600_v41 = vadd.f32 %v4599_v51, %v4598_v18  ;;  %v4664_v60 = vadd.f32 %v4663_v3, %v4662_v34  ;;  %v6162_v44 = vadd.f32 %v4655_v45, %v6000_v23  ;;  %v6165_v5 = vadd.f32 %v4658_v57, %v6007_v4 }
 0x1d1   : > { %v4665_v39 = vpop.f32.mrf.mxu1  ;;  %v4601_v25 = vpop.f32.mrf.mxu0  ;;  %v6168_v21 = vadd.f32 %v4661_v9, %v6014_v29 }
 0x1d2   : > { %v6127_v12 = vadd.f32 %v4600_v41, %v6018_v16  ;;  %v6172_v7 = vadd.f32 %v4664_v60, %v6021_v47 }
 0x1d3   : > { %v4666_v43 = vpop.f32.mrf.mxu1  ;;  %v4602_v36 = vpop.f32.mrf.mxu0 }
 0x1d4   : > { %v4603_v61 = vadd.f32 %v4602_v36, %v4601_v25  ;;  %v4667_v6 = vadd.f32 %v4666_v43, %v4665_v39 }
 0x1d5   : > { %v4668_v16 = vpop.f32.mrf.mxu1  ;;  %v4758_v26 = vpop.f32.mrf.mxu0 }
 0x1d6   : > { %v6141_v0 = vadd.f32 %v4603_v61, %v6027_v56  ;;  %v2009_v54 = vadd.f32 %v4758_v26, %v1848_v40  ;;  %v6153_v56 = vadd.f32 %v4646_v27, %v5979_v55  ;;  %v6175_v23 = vadd.f32 %v4667_v6, %v6536_v13 }
 0x1d7   : > { %v4669_v18 = vpop.f32.mrf.mxu1  ;;  %v2000_v48 = vpop.f32.mrf.mxu0 }
 0x1d8   : > { %v4670_v49 = vadd.f32 %v4669_v18, %v4668_v16  ;;  %v2129_v62 = vmax.f32 %v2009_v54, 0.0  ;;  %v2001_v10 = vadd.f32 %v2000_v48, %v1840_v11 }
 0x1d9   : > { %v4671_v14 = vpop.f32.mrf.mxu1  ;;  %v4759_v22 = vpop.f32.mrf.mxu0 }
 0x1da   : > { %v2225_v63 = vcombine.high %v2129_v62, %v2129_v62  ;;  %v2232_v55 = vrot.slane %v2129_v62, %v6118_v35  ;;  %v2127_v34 = vmax.f32 %v2001_v10, 0.0  ;;  %v2012_v42 = vadd.f32 %v4759_v22, %v1851_v2 }
 0x1db   : > { %v4672_v50 = vpop.f32.mrf.mxu1  ;;  %v2003_v32 = vpop.f32.mrf.mxu0  ;;  %v6178_v4 = vadd.f32 %v4670_v49, %v6537_v24 }
 0x1dc   : > { %v4673_v3 = vadd.f32 %v4672_v50, %v4671_v14  ;;  %v2239_v29 = vrot.slane %v2225_v63, %v6118_v35  ;;  %v2240_v51 = vcombine.high %v2232_v55, %v2232_v55  ;;  %v4142_v1 = vrot.slane %v2232_v55, 9 }
 0x1dd   : > { %v2191_v41 = vcombine.high %v2127_v34, %v2127_v34  ;;  %v2198_v39 = vrot.slane %v2127_v34, %v6118_v35  ;;  %v2130_v25 = vmax.f32 %v2012_v42, 0.0  ;;  %v2004_v30 = vadd.f32 %v2003_v32, %v1843_v53  ;;  %v4762_v57 = vpop.f32.mrf.mxu0  ;;  %v4674_v48 = vpop.f32.mrf.mxu1 }
 0x1de   : > { %v6183_v43 = vadd.f32 %v4673_v3, %v6538_v37  ;;  %v2241_v47 = vcombine.high %v2239_v29, %v2239_v29  ;;  %v4143_v11 = vrot.slane %v2240_v51, 9  ;;  %v4144_v17 = vrot.slane %v2239_v29, 9 }
 0x1df   : > { %v3255_v36 = vadd.f32 %v4142_v1, %v2232_v55  ;;  %v2205_v40 = vrot.slane %v2191_v41, %v6118_v35  ;;  %v2206_v2 = vcombine.high %v2198_v39, %v2198_v39  ;;  %v4134_v27 = vrot.slane %v2198_v39, 9  ;;  %v2016_v50 = vpop.f32.mrf.mxu0 }
 0x1e0   : > { %v2242_v33 = vcombine.high %v2130_v25, %v2130_v25  ;;  %v4145_v61 = vrot.slane %v2241_v47, 9  ;;  %v3256_v16 = vadd.f32 %v4143_v11, %v2240_v51  ;;  %v3257_v28 = vadd.f32 %v4144_v17, %v2239_v29 }
 0x1e1   : > { %v2249_v45 = vrot.slane %v2130_v25, %v6118_v35  ;;  %v2207_v53 = vcombine.high %v2205_v40, %v2205_v40  ;;  %v4135_v9 = vrot.slane %v2206_v2, 9  ;;  %v4136_v26 = vrot.slane %v2205_v40, 9 }
 0x1e2   : > { %v3247_v54 = vadd.f32 %v4134_v27, %v2198_v39  ;;  %v3258_v18 = vadd.f32 %v4145_v61, %v2241_v47  ;;  %v2256_v60 = vrot.slane %v2242_v33, %v6118_v35  ;;  %v2128_v41 = vmax.f32 %v2004_v30, 0.0  ;;  %v4675_v39 = vpop.f32.mrf.mxu1  ;;  %v4763_v27 = vpop.f32.mrf.mxu0 }
 0x1e3   : > { %v2257_v6 = vcombine.high %v2249_v45, %v2249_v45  ;;  %v4146_v49 = vrot.slane %v2249_v45, 9  ;;  %v4137_v62 = vrot.slane %v2207_v53, 9  ;;  %v3248_v10 = vadd.f32 %v4135_v9, %v2206_v2 }
 0x1e4   : > { %v3249_v14 = vadd.f32 %v4136_v26, %v2205_v40  ;;  %v3375_v22 = vadd.f32 %v3255_v36, %v3247_v54  ;;  %v2258_v63 = vcombine.high %v2256_v60, %v2256_v60  ;;  %v4148_v34 = vrot.slane %v2256_v60, 9  ;;  %v6196_v26 = vpop.f32.mrf.mxu1 }
 0x1e5   : > { %v4147_v55 = vrot.slane %v2257_v6, 9  ;;  %v3259_v42 = vadd.f32 %v4146_v49, %v2249_v45  ;;  %v3250_v3 = vadd.f32 %v4137_v62, %v2207_v53  ;;  %v3376_v32 = vadd.f32 %v3256_v16, %v3248_v10 }
 0x1e6   : > { %v3377_v13 = vadd.f32 %v3257_v28, %v3249_v14  ;;  %v3439_v24 = vmul.f32 0.25, %v3375_v22  ;;  %v4149_v29 = vrot.slane %v2258_v63, 9  ;;  %v3261_v1 = vadd.f32 %v4148_v34, %v2256_v60 }
 0x1e7   : > { %v3260_v51 = vadd.f32 %v4147_v55, %v2257_v6  ;;  %v3378_v25 = vadd.f32 %v3258_v18, %v3250_v3  ;;  %v3440_v37 = vmul.f32 0.25, %v3376_v32  ;;  %v2208_v36 = vcombine.high %v2128_v41, %v2128_v41 }
 0x1e8   : > { %v3441_v47 = vmul.f32 0.25, %v3377_v13  ;;  %v3570_v11 = vrot.slane %v3439_v24, %v6120_v58  ;;  %v3262_v17 = vadd.f32 %v4149_v29, %v2258_v63  ;;  %v2215_v40 = vrot.slane %v2128_v41, %v6118_v35 }
 0x1e9   : > { %v2025_v2 = vadd.f32 %v4762_v57, %v6144_v20  ;;  %v3442_v33 = vmul.f32 0.25, %v3378_v25  ;;  %v3574_v61 = vrot.slane %v3440_v37, %v6120_v58  ;;  %v6193_v28 = vadd.f32 %v4675_v39, %v4674_v48 }
 0x1ea   : > { %v3578_v16 = vrot.slane %v3441_v47, %v6120_v58  ;;  %v2222_v30 = vrot.slane %v2208_v36, %v6118_v35  ;;  %v2223_v45 = vcombine.high %v2215_v40, %v2215_v40  ;;  %v4138_v53 = vrot.slane %v2215_v40, 9 }
 0x1eb   : > { %v2133_v9 = vmax.f32 %v2025_v2, 0.0  ;;  %v3582_v54 = vrot.slane %v3442_v33, %v6120_v58  ;;  %v3824_v20 = vsel %vm3823_vm2, %v3574_v61, %v3570_v11  ;;  %v2017_v57 = vadd.f32 %v2016_v50, %v6138_v15  ;;  %v4678_v50 = vpop.f32.mrf.mxu1  ;;  %v2019_v33 = vpop.f32.mrf.mxu0 }
 0x1ec   : > { %v2028_v18 = vadd.f32 %v4763_v27, %v6150_v46  ;;  %v3826_v60 = vsel %vm3825_vm3, %v3578_v16, %v3824_v20  ;;  %v2224_v6 = vcombine.high %v2222_v30, %v2222_v30  ;;  %v4139_v49 = vrot.slane %v2223_v45, 9 }
 0x1ed   : > { %v4140_v48 = vrot.slane %v2222_v30, 9  ;;  %v3251_v62 = vadd.f32 %v4138_v53, %v2215_v40  ;;  %v3828_v10 = vsel %vm3827_vm4, %v3582_v54, %v3826_v60  ;;  %v2293_v14 = vcombine.high %v2133_v9, %v2133_v9 }
 0x1ee   : > { %v2300_v22 = vrot.slane %v2133_v9, %v6118_v35  ;;  %v4141_v63 = vrot.slane %v2224_v6, 9  ;;  %v3252_v55 = vadd.f32 %v4139_v49, %v2223_v45  ;;  %v2131_v15 = vmax.f32 %v2017_v57, 0.0 }
 0x1ef   : > { %v3253_v34 = vadd.f32 %v4140_v48, %v2222_v30  ;;  %v3379_v46 = vadd.f32 %v3259_v42, %v3251_v62  ;;  %v2307_v3 = vrot.slane %v2293_v14, %v6118_v35  ;;  %v6207_v42 = vpop.f32.mrf.mxu1  ;;  %v2134_v57 = vmax.f32 %v2028_v18, 0.0  ;;  %v4766_v62 = vpop.f32.mrf.mxu0 }
 0x1f0   : > { %v2308_v32 = vcombine.high %v2300_v22, %v2300_v22  ;;  %v4158_v13 = vrot.slane %v2300_v22, 9  ;;  %v3254_v24 = vadd.f32 %v4141_v63, %v2224_v6  ;;  %v3380_v29 = vadd.f32 %v3260_v51, %v3252_v55 }
 0x1f1   : > { %v3381_v41 = vadd.f32 %v3261_v1, %v3253_v34  ;;  %v2259_v39 = vcombine.high %v2131_v15, %v2131_v15  ;;  %v3443_v25 = vmul.f32 0.25, %v3379_v46  ;;  %v2309_v37 = vcombine.high %v2307_v3, %v2307_v3  ;;  %v4681_v14 = vpop.f32.mrf.mxu1 }
 0x1f2   : > { %v4159_v47 = vrot.slane %v2308_v32, 9  ;;  %v4160_v11 = vrot.slane %v2307_v3, 9  ;;  %v3382_v36 = vadd.f32 %v3262_v17, %v3254_v24  ;;  %v3444_v40 = vmul.f32 0.25, %v3380_v29 }
 0x1f3   : > { %v3445_v2 = vmul.f32 0.25, %v3381_v41  ;;  %v3271_v27 = vadd.f32 %v4158_v13, %v2300_v22  ;;  %v3586_v61 = vrot.slane %v3443_v25, %v6120_v58  ;;  %v4161_v16 = vrot.slane %v2309_v37, 9 }
 0x1f4   : > { %v3272_v30 = vadd.f32 %v4159_v47, %v2308_v32  ;;  %v3273_v51 = vadd.f32 %v4160_v11, %v2307_v3  ;;  %v3446_v1 = vmul.f32 0.25, %v3382_v36  ;;  %v3590_v45 = vrot.slane %v3444_v40, %v6120_v58  ;;  %v4683_v47 = vpop.f32.mrf.mxu1 }
 0x1f5   : > { %v3594_v53 = vrot.slane %v3445_v2, %v6120_v58  ;;  %v2266_v17 = vrot.slane %v2131_v15, %v6118_v35  ;;  %v3830_v9 = vsel %vm3829_vm5, %v3586_v61, %v3828_v10  ;;  %v3274_v54 = vadd.f32 %v4161_v16, %v2309_v37  ;;  %v2032_v37 = vpop.f32.mrf.mxu0 }
 0x1f6   : > { %v2273_v20 = vrot.slane %v2259_v39, %v6118_v35  ;;  %v3598_v60 = vrot.slane %v3446_v1, %v6120_v58  ;;  %v3832_v6 = vsel %vm3831_vm6, %v3590_v45, %v3830_v9  ;;  %v2310_v34 = vcombine.high %v2134_v57, %v2134_v57 }
 0x1f7   : > { %v2274_v49 = vcombine.high %v2266_v17, %v2266_v17  ;;  %v4150_v48 = vrot.slane %v2266_v17, 9  ;;  %v3834_v22 = vsel %vm3833_vm7, %v3594_v53, %v3832_v6  ;;  %v2317_v3 = vrot.slane %v2134_v57, %v6118_v35  ;;  %v4684_v6 = vpop.f32.mrf.mxu1 }
 0x1f8   : > { %v2275_v63 = vcombine.high %v2273_v20, %v2273_v20  ;;  %v4152_v55 = vrot.slane %v2273_v20, 9  ;;  %v3836_v15 = vsel %vm3835_vm8, %v3598_v60, %v3834_v22  ;;  %v2324_v13 = vrot.slane %v2310_v34, %v6118_v35  ;;  %v4767_v60 = vpop.f32.mrf.mxu0 }
 0x1f9   : > { %v4151_v10 = vrot.slane %v2274_v49, 9  ;;  %v3263_v46 = vadd.f32 %v4150_v48, %v2266_v17  ;;  %3894 = vst [vmem:[%s6222_s5] sm:$0xff] %v3836_v15  ;;  %v6227_v24 = vadd.f32 %v4678_v50, %v6196_v26  ;;  %v2325_v39 = vcombine.high %v2317_v3, %v2317_v3 }
 0x1fa   : > { %v4153_v18 = vrot.slane %v2275_v63, 9  ;;  %v3265_v32 = vadd.f32 %v4152_v55, %v2273_v20  ;;  %v4162_v25 = vrot.slane %v2317_v3, 9  ;;  %v2326_v40 = vcombine.high %v2324_v13, %v2324_v13 }
 0x1fb   : > { %v3264_v29 = vadd.f32 %v4151_v10, %v2274_v49  ;;  %v3383_v41 = vadd.f32 %v3271_v27, %v3263_v46  ;;  %v4164_v2 = vrot.slane %v2324_v13, 9  ;;  %v4163_v1 = vrot.slane %v2325_v39, 9 }
 0x1fc   : > { %v3266_v11 = vadd.f32 %v4153_v18, %v2275_v63  ;;  %v3385_v36 = vadd.f32 %v3273_v51, %v3265_v32  ;;  %v3275_v45 = vadd.f32 %v4162_v25, %v2317_v3  ;;  %v4165_v9 = vrot.slane %v2326_v40, 9 }
 0x1fd   : > { %v3384_v61 = vadd.f32 %v3272_v30, %v3264_v29  ;;  %v3447_v16 = vmul.f32 0.25, %v3383_v41  ;;  %v3277_v20 = vadd.f32 %v4164_v2, %v2324_v13  ;;  %v3276_v27 = vadd.f32 %v4163_v1, %v2325_v39  ;;  %v6251_v1 = vpop.f32.mrf.mxu0 }
 0x1fe   : > { %v3386_v53 = vadd.f32 %v3274_v54, %v3266_v11  ;;  %v3449_v17 = vmul.f32 0.25, %v3385_v36  ;;  %v2020_v57 = vadd.f32 %v2019_v33, %v6147_v19  ;;  %v3278_v48 = vadd.f32 %v4165_v9, %v2326_v40 }
 0x1ff   : > { %v3448_v26 = vmul.f32 0.25, %v3384_v61  ;;  %v3602_v50 = vrot.slane %v3447_v16, %v6120_v58  ;;  %v2041_v30 = vadd.f32 %v4766_v62, %v6159_v52  ;;  %v6235_v63 = vadd.f32 %v4681_v14, %v6207_v42 }
 0x200   : > { %v3450_v49 = vmul.f32 0.25, %v3386_v53  ;;  %v3610_v51 = vrot.slane %v3449_v17, %v6120_v58  ;;  %v2132_v54 = vmax.f32 %v2020_v57, 0.0  ;;  %v2033_v55 = vadd.f32 %v2032_v37, %v6153_v56 }
 0x201   : > { %v3606_v22 = vrot.slane %v3448_v26, %v6120_v58  ;;  %v2137_v15 = vmax.f32 %v2041_v30, 0.0  ;;  %v2044_v19 = vadd.f32 %v4767_v60, %v6162_v44  ;;  %v6240_v33 = vadd.f32 %v4684_v6, %v4683_v47 }
 0x202   : > { %v3614_v34 = vrot.slane %v3450_v49, %v6120_v58  ;;  %v2276_v46 = vcombine.high %v2132_v54, %v2132_v54  ;;  %v2283_v52 = vrot.slane %v2132_v54, %v6118_v35  ;;  %v2135_v62 = vmax.f32 %v2033_v55, 0.0  ;;  %v4686_v54 = vpop.f32.mrf.mxu1 }
 0x203   : > { %v3837_v10 = vsel %vm3823_vm2, %v3606_v22, %v3602_v50  ;;  %v2361_v18 = vcombine.high %v2137_v15, %v2137_v15  ;;  %v2368_v42 = vrot.slane %v2137_v15, %v6118_v35  ;;  %v6246_v14 = vmax.f32 %v2044_v19, 0.0 }
 0x204   : > { %v3838_v3 = vsel %vm3825_vm3, %v3610_v51, %v3837_v10  ;;  %v2290_v56 = vrot.slane %v2276_v46, %v6118_v35  ;;  %v2291_v32 = vcombine.high %v2283_v52, %v2283_v52  ;;  %v4154_v13 = vrot.slane %v2283_v52, 9  ;;  %v4770_v10 = vpop.f32.mrf.mxu0 }
 0x205   : > { %v3839_v44 = vsel %vm3827_vm4, %v3614_v34, %v3838_v3  ;;  %v2375_v29 = vrot.slane %v2361_v18, %v6118_v35  ;;  %v2376_v41 = vcombine.high %v2368_v42, %v2368_v42  ;;  %v4174_v39 = vrot.slane %v2368_v42, 9 }
 0x206   : > { %v2327_v25 = vcombine.high %v2135_v62, %v2135_v62  ;;  %v2292_v37 = vcombine.high %v2290_v56, %v2290_v56  ;;  %v4155_v47 = vrot.slane %v2291_v32, 9  ;;  %v4156_v11 = vrot.slane %v2290_v56, 9 }
 0x207   : > { %v3267_v36 = vadd.f32 %v4154_v13, %v2283_v52  ;;  %v2377_v40 = vcombine.high %v2375_v29, %v2375_v29  ;;  %v4175_v2 = vrot.slane %v2376_v41, 9  ;;  %v4176_v61 = vrot.slane %v2375_v29, 9 }
 0x208   : > { %v3287_v16 = vadd.f32 %v4174_v39, %v2368_v42  ;;  %v4157_v53 = vrot.slane %v2292_v37, 9  ;;  %v3268_v17 = vadd.f32 %v4155_v47, %v2291_v32  ;;  %v3269_v9 = vadd.f32 %v4156_v11, %v2290_v56 }
 0x209   : > { %v3387_v26 = vadd.f32 %v3275_v45, %v3267_v36  ;;  %v4177_v50 = vrot.slane %v2377_v40, 9  ;;  %v3288_v57 = vadd.f32 %v4175_v2, %v2376_v41  ;;  %v3289_v60 = vadd.f32 %v4176_v61, %v2375_v29  ;;  %v4687_v29 = vpop.f32.mrf.mxu1 }
 0x20a   : > { %v2334_v6 = vrot.slane %v2135_v62, %v6118_v35  ;;  %v3270_v49 = vadd.f32 %v4157_v53, %v2292_v37  ;;  %v3388_v51 = vadd.f32 %v3276_v27, %v3268_v17  ;;  %v3389_v30 = vadd.f32 %v3277_v20, %v3269_v9  ;;  %v2048_v37 = vpop.f32.mrf.mxu0 }
 0x20b   : > { %v3451_v22 = vmul.f32 0.25, %v3387_v26  ;;  %v3290_v55 = vadd.f32 %v4177_v50, %v2377_v40  ;;  %v2341_v34 = vrot.slane %v2327_v25, %v6118_v35  ;;  %v2378_v36 = vcombine.high %v6246_v14, %v6246_v14  ;;  %v4689_v50 = vpop.f32.mrf.mxu1 }
 0x20c   : > { %v2342_v15 = vcombine.high %v2334_v6, %v2334_v6  ;;  %v4166_v19 = vrot.slane %v2334_v6, 9  ;;  %v3390_v46 = vadd.f32 %v3278_v48, %v3270_v49  ;;  %v3452_v52 = vmul.f32 0.25, %v3388_v51 }
 0x20d   : > { %v3453_v3 = vmul.f32 0.25, %v3389_v30  ;;  %v3618_v45 = vrot.slane %v3451_v22, %v6120_v58  ;;  %v2343_v18 = vcombine.high %v2341_v34, %v2341_v34  ;;  %v4168_v56 = vrot.slane %v2341_v34, 9  ;;  %v4771_v22 = vpop.f32.mrf.mxu0 }
 0x20e   : > { %v4167_v42 = vrot.slane %v2342_v15, 9  ;;  %v3279_v62 = vadd.f32 %v4166_v19, %v2334_v6  ;;  %v3454_v32 = vmul.f32 0.25, %v3390_v46  ;;  %v3622_v20 = vrot.slane %v3452_v52, %v6120_v58 }
 0x20f   : > { %v3626_v27 = vrot.slane %v3453_v3, %v6120_v58  ;;  %v3840_v13 = vsel %vm3829_vm5, %v3618_v45, %v3839_v44  ;;  %v4169_v41 = vrot.slane %v2343_v18, 9  ;;  %v3281_v25 = vadd.f32 %v4168_v56, %v2341_v34 }
 0x210   : > { %v3280_v39 = vadd.f32 %v4167_v42, %v2342_v15  ;;  %v3391_v48 = vadd.f32 %v3287_v16, %v3279_v62  ;;  %v3630_v47 = vrot.slane %v3454_v32, %v6120_v58  ;;  %v3841_v11 = vsel %vm3831_vm6, %v3622_v20, %v3840_v13  ;;  %v4690_v42 = vpop.f32.mrf.mxu1 }
 0x211   : > { %v2385_v40 = vrot.slane %v6246_v14, %v6118_v35  ;;  %v3842_v2 = vsel %vm3833_vm7, %v3626_v27, %v3841_v11  ;;  %v3282_v44 = vadd.f32 %v4169_v41, %v2343_v18  ;;  %v3393_v53 = vadd.f32 %v3289_v60, %v3281_v25  ;;  %v2051_v27 = vpop.f32.mrf.mxu0 }
 0x212   : > { %v3392_v61 = vadd.f32 %v3288_v57, %v3280_v39  ;;  %v3843_v17 = vsel %vm3835_vm8, %v3630_v47, %v3842_v2  ;;  %v3455_v9 = vmul.f32 0.25, %v3391_v48  ;;  %v2392_v16 = vrot.slane %v2378_v36, %v6118_v35 }
 0x213   : > { %v2393_v26 = vcombine.high %v2385_v40, %v2385_v40  ;;  %3895 = vst [vmem:[%s6222_s5 + $0x8] sm:$0xff] %v3843_v17  ;;  %v3394_v6 = vadd.f32 %v3290_v55, %v3282_v44  ;;  %v3457_v51 = vmul.f32 0.25, %v3393_v53  ;;  %v4178_v30 = vrot.slane %v2385_v40, 9 }
 0x214   : > { %v3456_v49 = vmul.f32 0.25, %v3392_v61  ;;  %v3634_v14 = vrot.slane %v3455_v9, %v6120_v58  ;;  %v2394_v34 = vcombine.high %v2392_v16, %v2392_v16  ;;  %v4180_v19 = vrot.slane %v2392_v16, 9 }
 0x215   : > { %v4179_v15 = vrot.slane %v2393_v26, 9  ;;  %v3458_v57 = vmul.f32 0.25, %v3394_v6  ;;  %v3642_v46 = vrot.slane %v3457_v51, %v6120_v58  ;;  %v3291_v52 = vadd.f32 %v4178_v30, %v2385_v40 }
 0x216   : > { %v3638_v60 = vrot.slane %v3456_v49, %v6120_v58  ;;  %v4181_v3 = vrot.slane %v2394_v34, 9  ;;  %v3293_v18 = vadd.f32 %v4180_v19, %v2392_v16  ;;  %v2036_v55 = vadd.f32 %v6251_v1, %v6156_v8 }
 0x217   : > { %v3292_v45 = vadd.f32 %v4179_v15, %v2393_v26  ;;  %v3646_v56 = vrot.slane %v3458_v57, %v6120_v58  ;;  %v2057_v32 = vadd.f32 %v4770_v10, %v6172_v7  ;;  %v6277_v20 = vadd.f32 %v4687_v29, %v4686_v54 }
 0x218   : > { %v3844_v62 = vsel %vm3823_vm2, %v3638_v60, %v3634_v14  ;;  %v3294_v41 = vadd.f32 %v4181_v3, %v2394_v34  ;;  %v2136_v39 = vmax.f32 %v2036_v55, 0.0  ;;  %v2049_v25 = vadd.f32 %v2048_v37, %v6165_v5  ;;  %v6539_v5 = vld [vmem:[#allocation8_spill] sm:$0xff] }
 0x219   : > { %v3845_v13 = vsel %vm3825_vm3, %v3642_v46, %v3844_v62  ;;  %v2141_v47 = vmax.f32 %v2057_v32, 0.0  ;;  %v2060_v8 = vadd.f32 %v4771_v22, %v6175_v23  ;;  %v6283_v1 = vadd.f32 %v4690_v42, %v4689_v50 }
 0x21a   : > { %v3846_v48 = vsel %vm3827_vm4, %v3646_v56, %v3845_v13  ;;  %v2344_v11 = vcombine.high %v2136_v39, %v2136_v39  ;;  %v2351_v36 = vrot.slane %v2136_v39, %v6118_v35  ;;  %v2139_v7 = vmax.f32 %v2049_v25, 0.0  ;;  %v4692_v39 = vpop.f32.mrf.mxu1 }
 0x21b   : > { %v6287_v54 = vadd.f32 %v2051_v27, %v6168_v21  ;;  %v2429_v10 = vcombine.high %v2141_v47, %v2141_v47  ;;  %v2436_v29 = vrot.slane %v2141_v47, %v6118_v35  ;;  %v6290_v40 = vmax.f32 %v2060_v8, 0.0 }
 0x21c   : > { %v6294_v37 = vadd.f32 %v6193_v28, %v6539_v5  ;;  %v2358_v23 = vrot.slane %v2344_v11, %v6118_v35  ;;  %v2359_v2 = vcombine.high %v2351_v36, %v2351_v36  ;;  %v4170_v44 = vrot.slane %v2351_v36, 9 }
 0x21d   : > { %v2395_v61 = vcombine.high %v2139_v7, %v2139_v7  ;;  %v2443_v53 = vrot.slane %v2429_v10, %v6118_v35  ;;  %v2444_v17 = vcombine.high %v2436_v29, %v2436_v29  ;;  %v4190_v9 = vrot.slane %v2436_v29, 9 }
 0x21e   : > { %v2402_v21 = vrot.slane %v2139_v7, %v6118_v35  ;;  %v2360_v16 = vcombine.high %v2358_v23, %v2358_v23  ;;  %v4171_v26 = vrot.slane %v2359_v2, 9  ;;  %v4172_v50 = vrot.slane %v2358_v23, 9 }
 0x21f   : > { %v3283_v6 = vadd.f32 %v4170_v44, %v2351_v36  ;;  %v2445_v49 = vcombine.high %v2443_v53, %v2443_v53  ;;  %v4191_v51 = vrot.slane %v2444_v17, 9  ;;  %v4192_v30 = vrot.slane %v2443_v53, 9 }
 0x220   : > { %v3303_v28 = vadd.f32 %v4190_v9, %v2436_v29  ;;  %v4173_v22 = vrot.slane %v2360_v16, 9  ;;  %v3284_v14 = vadd.f32 %v4171_v26, %v2359_v2  ;;  %v3285_v34 = vadd.f32 %v4172_v50, %v2358_v23 }
 0x221   : > { %v3395_v15 = vadd.f32 %v3291_v52, %v3283_v6  ;;  %v4193_v19 = vrot.slane %v2445_v49, 9  ;;  %v3304_v57 = vadd.f32 %v4191_v51, %v2444_v17  ;;  %v3305_v60 = vadd.f32 %v4192_v30, %v2443_v53 }
 0x222   : > { %v2409_v46 = vrot.slane %v2395_v61, %v6118_v35  ;;  %v3286_v3 = vadd.f32 %v4173_v22, %v2360_v16  ;;  %v3396_v55 = vadd.f32 %v3292_v45, %v3284_v14  ;;  %v3397_v42 = vadd.f32 %v3293_v18, %v3285_v34  ;;  %v4693_v61 = vpop.f32.mrf.mxu1  ;;  %v4774_v16 = vpop.f32.mrf.mxu0 }
 0x223   : > { %v3459_v56 = vmul.f32 0.25, %v3395_v15  ;;  %v3306_v62 = vadd.f32 %v4193_v19, %v2445_v49  ;;  %v2410_v32 = vcombine.high %v2402_v21, %v2402_v21  ;;  %v4182_v13 = vrot.slane %v2402_v21, 9 }
 0x224   : > { %v2411_v27 = vcombine.high %v2409_v46, %v2409_v46  ;;  %v3398_v25 = vadd.f32 %v3294_v41, %v3286_v3  ;;  %v3460_v47 = vmul.f32 0.25, %v3396_v55  ;;  %v3461_v8 = vmul.f32 0.25, %v3397_v42  ;;  %v4695_v19 = vpop.f32.mrf.mxu1 }
 0x225   : > { %v3650_v11 = vrot.slane %v3459_v56, %v6120_v58  ;;  %v4183_v52 = vrot.slane %v2410_v32, 9  ;;  %v4184_v36 = vrot.slane %v2409_v46, 9  ;;  %v3295_v10 = vadd.f32 %v4182_v13, %v2402_v21 }
 0x226   : > { %v4185_v7 = vrot.slane %v2411_v27, 9  ;;  %v3462_v29 = vmul.f32 0.25, %v3398_v25  ;;  %v3654_v5 = vrot.slane %v3460_v47, %v6120_v58  ;;  %v3658_v45 = vrot.slane %v3461_v8, %v6120_v58 }
 0x227   : > { %v3847_v18 = vsel %vm3829_vm5, %v3650_v11, %v3846_v48  ;;  %v3296_v23 = vadd.f32 %v4183_v52, %v2410_v32  ;;  %v3297_v2 = vadd.f32 %v4184_v36, %v2409_v46  ;;  %v3399_v41 = vadd.f32 %v3303_v28, %v3295_v10  ;;  %v4696_v36 = vpop.f32.mrf.mxu1 }
 0x228   : > { %v3298_v44 = vadd.f32 %v4185_v7, %v2411_v27  ;;  %v3662_v53 = vrot.slane %v3462_v29, %v6120_v58  ;;  %v3848_v17 = vsel %vm3831_vm6, %v3654_v5, %v3847_v18  ;;  %v2446_v9 = vcombine.high %v6290_v40, %v6290_v40 }
 0x229   : > { %v2453_v21 = vrot.slane %v6290_v40, %v6118_v35  ;;  %v3849_v26 = vsel %vm3833_vm7, %v3658_v45, %v3848_v17  ;;  %v3400_v48 = vadd.f32 %v3304_v57, %v3296_v23  ;;  %v3401_v50 = vadd.f32 %v3305_v60, %v3297_v2  ;;  %v2064_v57 = vpop.f32.mrf.mxu0 }
 0x22a   : > { %v3402_v6 = vadd.f32 %v3306_v62, %v3298_v44  ;;  %v3850_v49 = vsel %vm3835_vm8, %v3662_v53, %v3849_v26  ;;  %v3463_v51 = vmul.f32 0.25, %v3399_v41  ;;  %v2460_v30 = vrot.slane %v2446_v9, %v6118_v35 }
 0x22b   : > { %v2461_v28 = vcombine.high %v2453_v21, %v2453_v21  ;;  %3896 = vst [vmem:[%s6222_s5 + $0x10] sm:$0xff] %v3850_v49  ;;  %v3464_v22 = vmul.f32 0.25, %v3400_v48  ;;  %v3465_v14 = vmul.f32 0.25, %v3401_v50  ;;  %v4194_v15 = vrot.slane %v2453_v21, 9 }
 0x22c   : > { %v3466_v34 = vmul.f32 0.25, %v3402_v6  ;;  %v3666_v40 = vrot.slane %v3463_v51, %v6120_v58  ;;  %v2462_v46 = vcombine.high %v2460_v30, %v2460_v30  ;;  %v4196_v55 = vrot.slane %v2460_v30, 9 }
 0x22d   : > { %v4195_v3 = vrot.slane %v2461_v28, 9  ;;  %v3670_v60 = vrot.slane %v3464_v22, %v6120_v58  ;;  %v3674_v42 = vrot.slane %v3465_v14, %v6120_v58  ;;  %v3307_v62 = vadd.f32 %v4194_v15, %v2453_v21 }
 0x22e   : > { %v3678_v56 = vrot.slane %v3466_v34, %v6120_v58  ;;  %v4197_v32 = vrot.slane %v2462_v46, 9  ;;  %v3309_v13 = vadd.f32 %v4196_v55, %v2460_v30  ;;  %v2140_v25 = vmax.f32 %v6287_v54, 0.0  ;;  %v6540_v54 = vld [vmem:[#allocation9_spill] sm:$0xff] }
 0x22f   : > { %v3308_v27 = vadd.f32 %v4195_v3, %v2461_v28  ;;  %v3851_v47 = vsel %vm3823_vm2, %v3670_v60, %v3666_v40  ;;  %v2073_v8 = vadd.f32 %v4774_v16, %v6294_v37  ;;  %v6321_v11 = vadd.f32 %v4693_v61, %v4692_v39 }
 0x230   : > { %v2065_v52 = vadd.f32 %v2064_v57, %v6178_v4  ;;  %v3852_v7 = vsel %vm3825_vm3, %v3674_v42, %v3851_v47  ;;  %v3310_v10 = vadd.f32 %v4197_v32, %v2462_v46  ;;  %v2412_v29 = vcombine.high %v2140_v25, %v2140_v25 }
 0x231   : > { %v2419_v5 = vrot.slane %v2140_v25, %v6118_v35  ;;  %v3853_v45 = vsel %vm3827_vm4, %v3678_v56, %v3852_v7  ;;  %v2145_v18 = vmax.f32 %v2073_v8, 0.0  ;;  %v1915_v2 = vadd.f32 %v6227_v24, %v6540_v54 }
 0x232   : > { %v2143_v23 = vmax.f32 %v2065_v52, 0.0  ;;  %v2426_v37 = vrot.slane %v2412_v29, %v6118_v35  ;;  %v6330_v41 = vadd.f32 %v4696_v36, %v4695_v19  ;;  %v4775_v19 = vpop.f32.mrf.mxu0 }
 0x233   : > { %v2427_v39 = vcombine.high %v2419_v5, %v2419_v5  ;;  %v4186_v44 = vrot.slane %v2419_v5, 9  ;;  %v2497_v4 = vcombine.high %v2145_v18, %v2145_v18  ;;  %v2504_v61 = vrot.slane %v2145_v18, %v6118_v35 }
 0x234   : > { %v2463_v53 = vcombine.high %v2143_v23, %v2143_v23  ;;  %v2470_v17 = vrot.slane %v2143_v23, %v6118_v35  ;;  %v2428_v9 = vcombine.high %v2426_v37, %v2426_v37  ;;  %v4188_v16 = vrot.slane %v2426_v37, 9  ;;  %v2067_v29 = vpop.f32.mrf.mxu0 }
 0x235   : > { %v4187_v21 = vrot.slane %v2427_v39, 9  ;;  %v3299_v26 = vadd.f32 %v4186_v44, %v2419_v5  ;;  %v2511_v48 = vrot.slane %v2497_v4, %v6118_v35  ;;  %v2512_v50 = vcombine.high %v2504_v61, %v2504_v61 }
 0x236   : > { %v4206_v24 = vrot.slane %v2504_v61, 9  ;;  %v2477_v6 = vrot.slane %v2463_v53, %v6118_v35  ;;  %v4189_v49 = vrot.slane %v2428_v9, 9  ;;  %v3301_v30 = vadd.f32 %v4188_v16, %v2426_v37 }
 0x237   : > { %v3300_v51 = vadd.f32 %v4187_v21, %v2427_v39  ;;  %v3403_v28 = vadd.f32 %v3307_v62, %v3299_v26  ;;  %v2513_v22 = vcombine.high %v2511_v48, %v2511_v48  ;;  %v4207_v14 = vrot.slane %v2512_v50, 9  ;;  %v4698_v39 = vpop.f32.mrf.mxu1 }
 0x238   : > { %v4208_v34 = vrot.slane %v2511_v48, 9  ;;  %v3319_v15 = vadd.f32 %v4206_v24, %v2504_v61  ;;  %v3302_v40 = vadd.f32 %v4189_v49, %v2428_v9  ;;  %v3405_v3 = vadd.f32 %v3309_v13, %v3301_v30  ;;  %v6541_v30 = vld [vmem:[#allocation12_spill] sm:$0xff] }
 0x239   : > { %v3404_v46 = vadd.f32 %v3308_v27, %v3300_v51  ;;  %v3467_v55 = vmul.f32 0.25, %v3403_v28  ;;  %v4209_v57 = vrot.slane %v2513_v22, 9  ;;  %v3320_v60 = vadd.f32 %v4207_v14, %v2512_v50 }
 0x23a   : > { %v3321_v42 = vadd.f32 %v4208_v34, %v2511_v48  ;;  %v2478_v56 = vcombine.high %v2470_v17, %v2470_v17  ;;  %v3406_v32 = vadd.f32 %v3310_v10, %v3302_v40  ;;  %v3469_v47 = vmul.f32 0.25, %v3405_v3 }
 0x23b   : > { %v3468_v25 = vmul.f32 0.25, %v3404_v46  ;;  %v3682_v8 = vrot.slane %v3467_v55, %v6120_v58  ;;  %v3322_v52 = vadd.f32 %v4209_v57, %v2513_v22  ;;  %v2479_v62 = vcombine.high %v2477_v6, %v2477_v6  ;;  %v4778_v46 = vpop.f32.mrf.mxu0 }
 0x23c   : > { %v4198_v36 = vrot.slane %v2470_v17, 9  ;;  %v4199_v7 = vrot.slane %v2478_v56, 9  ;;  %v3470_v5 = vmul.f32 0.25, %v3406_v32  ;;  %v3690_v27 = vrot.slane %v3469_v47, %v6120_v58 }
 0x23d   : > { %v3686_v18 = vrot.slane %v3468_v25, %v6120_v58  ;;  %v3854_v13 = vsel %vm3829_vm5, %v3682_v8, %v3853_v45  ;;  %v4200_v23 = vrot.slane %v2477_v6, 9  ;;  %v4201_v54 = vrot.slane %v2479_v62, 9 }
 0x23e   : > { %v3311_v10 = vadd.f32 %v4198_v36, %v2470_v17  ;;  %v3312_v37 = vadd.f32 %v4199_v7, %v2478_v56  ;;  %v3694_v44 = vrot.slane %v3470_v5, %v6120_v58  ;;  %v2076_v61 = vadd.f32 %v4775_v19, %v1915_v2  ;;  %v4699_v2 = vpop.f32.mrf.mxu1 }
 0x23f   : > { %v3855_v4 = vsel %vm3831_vm6, %v3686_v18, %v3854_v13  ;;  %v2068_v53 = vadd.f32 %v2067_v29, %v6183_v43  ;;  %v3313_v21 = vadd.f32 %v4200_v23, %v2477_v6  ;;  %v3314_v16 = vadd.f32 %v4201_v54, %v2479_v62  ;;  %v2080_v18 = vpop.f32.mrf.mxu0 }
 0x240   : > { %v3856_v9 = vsel %vm3833_vm7, %v3690_v27, %v3855_v4  ;;  %v3407_v26 = vadd.f32 %v3319_v15, %v3311_v10  ;;  %v3408_v48 = vadd.f32 %v3320_v60, %v3312_v37  ;;  %v2146_v50 = vmax.f32 %v2076_v61, 0.0  ;;  %v4701_v25 = vpop.f32.mrf.mxu1 }
 0x241   : > { %v3857_v45 = vsel %vm3835_vm8, %v3694_v44, %v3856_v9  ;;  %v2144_v24 = vmax.f32 %v2068_v53, 0.0  ;;  %v3409_v17 = vadd.f32 %v3321_v42, %v3313_v21  ;;  %v3410_v49 = vadd.f32 %v3322_v52, %v3314_v16 }
 0x242   : > { %3897 = vst [vmem:[%s6222_s5 + $0x18] sm:$0xff] %v3857_v45  ;;  %v3471_v51 = vmul.f32 0.25, %v3407_v26  ;;  %v1928_v28 = vadd.f32 %v6277_v20, %v6541_v30  ;;  %v3472_v22 = vmul.f32 0.25, %v3408_v48  ;;  %v2514_v43 = vcombine.high %v2146_v50, %v2146_v50  ;;  %v4702_v61 = vpop.f32.mrf.mxu1  ;;  %v6543_v30 = vld [vmem:[#allocation13_spill] sm:$0xff] }
 0x243   : > { %v2521_v14 = vrot.slane %v2146_v50, %v6118_v35  ;;  %v2480_v6 = vcombine.high %v2144_v24, %v2144_v24  ;;  %v3473_v34 = vmul.f32 0.25, %v3409_v17  ;;  %v3474_v15 = vmul.f32 0.25, %v3410_v49  ;;  %v6542_v50 = vld [vmem:[#allocation10_spill] sm:$0xff]  ;;  %v4779_v17 = vpop.f32.mrf.mxu0 }
 0x244   : > { %v3698_v19 = vrot.slane %v3471_v51, %v6120_v58  ;;  %v2487_v40 = vrot.slane %v2144_v24, %v6118_v35  ;;  %v3702_v3 = vrot.slane %v3472_v22, %v6120_v58  ;;  %v2528_v55 = vrot.slane %v2514_v43, %v6118_v35 }
 0x245   : > { %v2529_v57 = vcombine.high %v2521_v14, %v2521_v14  ;;  %v4210_v60 = vrot.slane %v2521_v14, 9  ;;  %v3706_v20 = vrot.slane %v3473_v34, %v6120_v58  ;;  %v3710_v42 = vrot.slane %v3474_v15, %v6120_v58 }
 0x246   : > { %v2494_v56 = vrot.slane %v2480_v6, %v6118_v35  ;;  %v2495_v32 = vcombine.high %v2487_v40, %v2487_v40  ;;  %v3858_v47 = vsel %vm3823_vm2, %v3702_v3, %v3698_v19  ;;  %v2530_v8 = vcombine.high %v2528_v55, %v2528_v55 }
 0x247   : > { %v4211_v52 = vrot.slane %v2529_v57, 9  ;;  %v4212_v62 = vrot.slane %v2528_v55, 9  ;;  %v3859_v36 = vsel %vm3825_vm3, %v3706_v20, %v3858_v47  ;;  %v3323_v7 = vadd.f32 %v4210_v60, %v2521_v14 }
 0x248   : > { %v2496_v29 = vcombine.high %v2494_v56, %v2494_v56  ;;  %v4202_v5 = vrot.slane %v2487_v40, 9  ;;  %v4213_v27 = vrot.slane %v2530_v8, 9  ;;  %v4203_v54 = vrot.slane %v2495_v32, 9 }
 0x249   : > { %v3324_v13 = vadd.f32 %v4211_v52, %v2529_v57  ;;  %v3325_v23 = vadd.f32 %v4212_v62, %v2528_v55  ;;  %v4204_v10 = vrot.slane %v2494_v56, 9  ;;  %v3860_v4 = vsel %vm3827_vm4, %v3710_v42, %v3859_v36 }
 0x24a   : > { %v4205_v37 = vrot.slane %v2496_v29, 9  ;;  %v3315_v44 = vadd.f32 %v4202_v5, %v2487_v40  ;;  %v3326_v53 = vadd.f32 %v4213_v27, %v2530_v8  ;;  %v3316_v9 = vadd.f32 %v4203_v54, %v2495_v32 }
 0x24b   : > { %v2089_v21 = vadd.f32 %v4778_v46, %v1928_v28  ;;  %v4700_v16 = vadd.f32 %v4699_v2, %v4698_v39  ;;  %v3317_v26 = vadd.f32 %v4204_v10, %v2494_v56  ;;  %v1920_v24 = vadd.f32 %v6235_v63, %v6542_v50 }
 0x24c   : > { %v3318_v45 = vadd.f32 %v4205_v37, %v2496_v29  ;;  %v3411_v48 = vadd.f32 %v3323_v7, %v3315_v44  ;;  %v3412_v49 = vadd.f32 %v3324_v13, %v3316_v9  ;;  %v1931_v22 = vadd.f32 %v6283_v1, %v6543_v30 }
 0x24d   : > { %v2149_v51 = vmax.f32 %v2089_v21, 0.0  ;;  %v6363_v43 = vadd.f32 %v4702_v61, %v4701_v25  ;;  %v3413_v14 = vadd.f32 %v3325_v23, %v3317_v26  ;;  %v2081_v15 = vadd.f32 %v2080_v18, %v1920_v24  ;;  %v2083_v25 = vpop.f32.mrf.mxu0  ;;  %v6544_v21 = vld [vmem:[#allocation11_spill] sm:$0xff] }
 0x24e   : > { %v3414_v6 = vadd.f32 %v3326_v53, %v3318_v45  ;;  %v3475_v34 = vmul.f32 0.25, %v3411_v48  ;;  %v3476_v28 = vmul.f32 0.25, %v3412_v49  ;;  %v2092_v19 = vadd.f32 %v4779_v17, %v1931_v22  ;;  %v6545_v45 = vld [vmem:[#allocation16_spill] sm:$0xff] }
 0x24f   : > { %v2565_v39 = vcombine.high %v2149_v51, %v2149_v51  ;;  %v2572_v2 = vrot.slane %v2149_v51, %v6118_v35  ;;  %v3477_v40 = vmul.f32 0.25, %v3413_v14  ;;  %v2147_v3 = vmax.f32 %v2081_v15, 0.0  ;;  %v4782_v61 = vpop.f32.mrf.mxu0 }
 0x250   : > { %v3478_v46 = vmul.f32 0.25, %v3414_v6  ;;  %v3714_v63 = vrot.slane %v3475_v34, %v6120_v58  ;;  %v3718_v55 = vrot.slane %v3476_v28, %v6120_v58  ;;  %v2150_v9 = vmax.f32 %v2092_v19, 0.0 }
 0x251   : > { %v2579_v1 = vrot.slane %v2565_v39, %v6118_v35  ;;  %v2580_v57 = vcombine.high %v2572_v2, %v2572_v2  ;;  %v4222_v60 = vrot.slane %v2572_v2, 9  ;;  %v3722_v20 = vrot.slane %v3477_v40, %v6120_v58 }
 0x252   : > { %v3726_v42 = vrot.slane %v3478_v46, %v6120_v58  ;;  %v3861_v56 = vsel %vm3829_vm5, %v3714_v63, %v3860_v4  ;;  %v2531_v32 = vcombine.high %v2147_v3, %v2147_v3  ;;  %v2538_v29 = vrot.slane %v2147_v3, %v6118_v35  ;;  %v4704_v4 = vpop.f32.mrf.mxu1 }
 0x253   : > { %v3862_v47 = vsel %vm3831_vm6, %v3718_v55, %v3861_v56  ;;  %v2581_v8 = vcombine.high %v2579_v1, %v2579_v1  ;;  %v4223_v52 = vrot.slane %v2580_v57, 9  ;;  %v4224_v62 = vrot.slane %v2579_v1, 9 }
 0x254   : > { %v3863_v36 = vsel %vm3833_vm7, %v3722_v20, %v3862_v47  ;;  %v3335_v7 = vadd.f32 %v4222_v60, %v2572_v2  ;;  %v2545_v5 = vrot.slane %v2531_v32, %v6118_v35  ;;  %v2546_v54 = vcombine.high %v2538_v29, %v2538_v29  ;;  %v4705_v39 = vpop.f32.mrf.mxu1 }
 0x255   : > { %v3864_v18 = vsel %vm3835_vm8, %v3726_v42, %v3863_v36  ;;  %v4225_v27 = vrot.slane %v2581_v8, 9  ;;  %v3336_v13 = vadd.f32 %v4223_v52, %v2580_v57  ;;  %v3337_v23 = vadd.f32 %v4224_v62, %v2579_v1 }
 0x256   : > { %3898 = vst [vmem:[%s6222_s5 + $0x20] sm:$0xff] %v3864_v18  ;;  %v2547_v10 = vcombine.high %v2545_v5, %v2545_v5  ;;  %v4214_v37 = vrot.slane %v2538_v29, 9  ;;  %v4216_v44 = vrot.slane %v2545_v5, 9  ;;  %v1923_v26 = vadd.f32 %v6240_v33, %v6544_v21 }
 0x257   : > { %v3338_v53 = vadd.f32 %v4225_v27, %v2581_v8  ;;  %v1944_v48 = vadd.f32 %v4700_v16, %v6545_v45  ;;  %v4215_v50 = vrot.slane %v2546_v54, 9  ;;  %v2582_v51 = vcombine.high %v2150_v9, %v2150_v9 }
 0x258   : > { %v4217_v24 = vrot.slane %v2547_v10, 9  ;;  %v3327_v17 = vadd.f32 %v4214_v37, %v2538_v29  ;;  %v3329_v49 = vadd.f32 %v4216_v44, %v2545_v5  ;;  %v2589_v30 = vrot.slane %v2150_v9, %v6118_v35 }
 0x259   : > { %v2084_v22 = vadd.f32 %v2083_v25, %v1923_v26  ;;  %v2105_v14 = vadd.f32 %v4782_v61, %v1944_v48  ;;  %v3328_v6 = vadd.f32 %v4215_v50, %v2546_v54  ;;  %v2596_v2 = vrot.slane %v2582_v51, %v6118_v35  ;;  %v4707_v25 = vpop.f32.mrf.mxu1  ;;  %v2096_v48 = vpop.f32.mrf.mxu0 }
 0x25a   : > { %v3330_v34 = vadd.f32 %v4217_v24, %v2547_v10  ;;  %v3415_v15 = vadd.f32 %v3335_v7, %v3327_v17  ;;  %v3417_v28 = vadd.f32 %v3337_v23, %v3329_v49  ;;  %v2597_v19 = vcombine.high %v2589_v30, %v2589_v30  ;;  %v6546_v23 = vld [vmem:[#allocation14_spill] sm:$0xff] }
 0x25b   : > { %v4226_v33 = vrot.slane %v2589_v30, 9  ;;  %v2148_v40 = vmax.f32 %v2084_v22, 0.0  ;;  %v3416_v16 = vadd.f32 %v3336_v13, %v3328_v6  ;;  %v2598_v55 = vcombine.high %v2596_v2, %v2596_v2 }
 0x25c   : > { %v3418_v46 = vadd.f32 %v3338_v53, %v3330_v34  ;;  %v3479_v63 = vmul.f32 0.25, %v3415_v15  ;;  %v3481_v3 = vmul.f32 0.25, %v3417_v28  ;;  %v4227_v1 = vrot.slane %v2597_v19, 9  ;;  %v4708_v53 = vpop.f32.mrf.mxu1 }
 0x25d   : > { %v4228_v57 = vrot.slane %v2596_v2, 9  ;;  %v3339_v60 = vadd.f32 %v4226_v33, %v2589_v30  ;;  %v3480_v20 = vmul.f32 0.25, %v3416_v16  ;;  %v4229_v47 = vrot.slane %v2598_v55, 9  ;;  %v4783_v33 = vpop.f32.mrf.mxu0 }
 0x25e   : > { %v3482_v42 = vmul.f32 0.25, %v3418_v46  ;;  %v3730_v56 = vrot.slane %v3479_v63, %v6120_v58  ;;  %v3738_v32 = vrot.slane %v3481_v3, %v6120_v58  ;;  %v3340_v8 = vadd.f32 %v4227_v1, %v2597_v19  ;;  %v4710_v15 = vpop.f32.mrf.mxu1 }
 0x25f   : > { %v3341_v52 = vadd.f32 %v4228_v57, %v2596_v2  ;;  %v2548_v62 = vcombine.high %v2148_v40, %v2148_v40  ;;  %v3734_v36 = vrot.slane %v3480_v20, %v6120_v58  ;;  %v2555_v29 = vrot.slane %v2148_v40, %v6118_v35 }
 0x260   : > { %v3742_v7 = vrot.slane %v3482_v42, %v6120_v58  ;;  %v2153_v5 = vmax.f32 %v2105_v14, 0.0  ;;  %v3342_v18 = vadd.f32 %v4229_v47, %v2598_v55  ;;  %v4706_v13 = vadd.f32 %v4705_v39, %v4704_v4 }
 0x261   : > { %v2562_v27 = vrot.slane %v2548_v62, %v6118_v35  ;;  %v1936_v54 = vadd.f32 %v6321_v11, %v6546_v23  ;;  %v3865_v10 = vsel %vm3823_vm2, %v3734_v36, %v3730_v56  ;;  %v2563_v37 = vcombine.high %v2555_v29, %v2555_v29  ;;  %v2099_v36 = vpop.f32.mrf.mxu0 }
 0x262   : > { %v4218_v44 = vrot.slane %v2555_v29, 9  ;;  %v2633_v61 = vcombine.high %v2153_v5, %v2153_v5  ;;  %v3866_v9 = vsel %vm3825_vm3, %v3738_v32, %v3865_v10  ;;  %v2640_v45 = vrot.slane %v2153_v5, %v6118_v35  ;;  %v4711_v32 = vpop.f32.mrf.mxu1 }
 0x263   : > { %v2564_v21 = vcombine.high %v2562_v27, %v2562_v27  ;;  %v4220_v26 = vrot.slane %v2562_v27, 9  ;;  %v4219_v50 = vrot.slane %v2563_v37, 9  ;;  %v3867_v4 = vsel %vm3827_vm4, %v3742_v7, %v3866_v9 }
 0x264   : > { %v3331_v24 = vadd.f32 %v4218_v44, %v2555_v29  ;;  %v2647_v17 = vrot.slane %v2633_v61, %v6118_v35  ;;  %v2648_v51 = vcombine.high %v2640_v45, %v2640_v45  ;;  %v4238_v30 = vrot.slane %v2640_v45, 9 }
 0x265   : > { %v4221_v11 = vrot.slane %v2564_v21, 9  ;;  %v3333_v49 = vadd.f32 %v4220_v26, %v2562_v27  ;;  %v3332_v22 = vadd.f32 %v4219_v50, %v2563_v37  ;;  %v2097_v57 = vadd.f32 %v2096_v48, %v1936_v54 }
 0x266   : > { %v3419_v14 = vadd.f32 %v3339_v60, %v3331_v24  ;;  %v2649_v6 = vcombine.high %v2647_v17, %v2647_v17  ;;  %v4240_v34 = vrot.slane %v2647_v17, 9  ;;  %v4239_v2 = vrot.slane %v2648_v51, 9 }
 0x267   : > { %v3334_v28 = vadd.f32 %v4221_v11, %v2564_v21  ;;  %v3421_v39 = vadd.f32 %v3341_v52, %v3333_v49  ;;  %v3351_v19 = vadd.f32 %v4238_v30, %v2640_v45  ;;  %v3420_v40 = vadd.f32 %v3340_v8, %v3332_v22 }
 0x268   : > { %v3483_v16 = vmul.f32 0.25, %v3419_v14  ;;  %v4241_v46 = vrot.slane %v2649_v6, 9  ;;  %v3353_v63 = vadd.f32 %v4240_v34, %v2647_v17  ;;  %v3352_v1 = vadd.f32 %v4239_v2, %v2648_v51 }
 0x269   : > { %v3422_v3 = vadd.f32 %v3342_v18, %v3334_v28  ;;  %v3485_v55 = vmul.f32 0.25, %v3421_v39  ;;  %v3484_v20 = vmul.f32 0.25, %v3420_v40  ;;  %v1947_v56 = vadd.f32 %v6363_v43, %v6100_v59  ;;  %v6547_v18 = vld [vmem:[#allocation15_spill] sm:$0xff]  ;;  %v4786_v39 = vpop.f32.mrf.mxu0 }
 0x26a   : > { %v3746_v42 = vrot.slane %v3483_v16, %v6120_v58  ;;  %v3354_v60 = vadd.f32 %v4241_v46, %v2649_v6  ;;  %v2151_v62 = vmax.f32 %v2097_v57, 0.0  ;;  %v6400_v8 = vadd.f32 %v4708_v53, %v4707_v25 }
 0x26b   : > { %v3486_v47 = vmul.f32 0.25, %v3422_v3  ;;  %v3754_v52 = vrot.slane %v3485_v55, %v6120_v58  ;;  %v3750_v7 = vrot.slane %v3484_v20, %v6120_v58  ;;  %v2108_v5 = vadd.f32 %v4783_v33, %v1947_v56 }
 0x26c   : > { %v3868_v29 = vsel %vm3829_vm5, %v3746_v42, %v3867_v4  ;;  %v1939_v27 = vadd.f32 %v6330_v41, %v6547_v18  ;;  %v2599_v59 = vcombine.high %v2151_v62, %v2151_v62  ;;  %v2606_v43 = vrot.slane %v2151_v62, %v6118_v35 }
 0x26d   : > { %v3758_v23 = vrot.slane %v3486_v47, %v6120_v58  ;;  %v4712_v54 = vadd.f32 %v4711_v32, %v4710_v15  ;;  %v3869_v10 = vsel %vm3831_vm6, %v3750_v7, %v3868_v29  ;;  %v2154_v25 = vmax.f32 %v2108_v5, 0.0  ;;  %v2112_v7 = vpop.f32.mrf.mxu0 }
 0x26e   : > { %v2100_v37 = vadd.f32 %v2099_v36, %v1939_v27  ;;  %v1952_v44 = vadd.f32 %v4706_v13, %v6103_v38  ;;  %v3870_v61 = vsel %vm3833_vm7, %v3754_v52, %v3869_v10  ;;  %v2613_v53 = vrot.slane %v2599_v59, %v6118_v35 }
 0x26f   : > { %v2614_v9 = vcombine.high %v2606_v43, %v2606_v43  ;;  %v4230_v21 = vrot.slane %v2606_v43, 9  ;;  %v3871_v41 = vsel %vm3835_vm8, %v3758_v23, %v3870_v61  ;;  %v2650_v26 = vcombine.high %v2154_v25, %v2154_v25 }
 0x270   : > { %v2657_v45 = vrot.slane %v2154_v25, %v6118_v35  ;;  %v2152_v48 = vmax.f32 %v2100_v37, 0.0  ;;  %3899 = vst [vmem:[%s6222_s5 + $0x28] sm:$0xff] %v3871_v41  ;;  %v2615_v50 = vcombine.high %v2613_v53, %v2613_v53  ;;  %v4232_v4 = vrot.slane %v2613_v53, 9 }
 0x271   : > { %v4231_v24 = vrot.slane %v2614_v9, 9  ;;  %v3343_v17 = vadd.f32 %v4230_v21, %v2606_v43  ;;  %v2664_v11 = vrot.slane %v2650_v26, %v6118_v35  ;;  %v1960_v5 = vadd.f32 %v4712_v54, %v6127_v12 }
 0x272   : > { %v2665_v38 = vcombine.high %v2657_v45, %v2657_v45  ;;  %v4242_v13 = vrot.slane %v2657_v45, 9  ;;  %v2616_v49 = vcombine.high %v2152_v48, %v2152_v48  ;;  %v4233_v51 = vrot.slane %v2615_v50, 9 }
 0x273   : > { %v3344_v30 = vadd.f32 %v4231_v24, %v2614_v9  ;;  %v3345_v22 = vadd.f32 %v4232_v4, %v2613_v53  ;;  %v3423_v14 = vadd.f32 %v3351_v19, %v3343_v17  ;;  %v2666_v6 = vcombine.high %v2664_v11, %v2664_v11  ;;  %v4713_v19 = vpop.f32.mrf.mxu1 }
 0x274   : > { %v4243_v34 = vrot.slane %v2665_v38, 9  ;;  %v4244_v15 = vrot.slane %v2664_v11, 9  ;;  %v3355_v28 = vadd.f32 %v4242_v13, %v2657_v45  ;;  %v3346_v2 = vadd.f32 %v4233_v51, %v2615_v50 }
 0x275   : > { %v3424_v33 = vadd.f32 %v3352_v1, %v3344_v30  ;;  %v3425_v40 = vadd.f32 %v3353_v63, %v3345_v22  ;;  %v3487_v16 = vmul.f32 0.25, %v3423_v14  ;;  %v4245_v46 = vrot.slane %v2666_v6, 9  ;;  %v4714_v37 = vpop.f32.mrf.mxu1 }
 0x276   : > { %v3356_v3 = vadd.f32 %v4243_v34, %v2665_v38  ;;  %v3357_v55 = vadd.f32 %v4244_v15, %v2664_v11  ;;  %v2623_v57 = vrot.slane %v2152_v48, %v6118_v35  ;;  %v3426_v20 = vadd.f32 %v3354_v60, %v3346_v2 }
 0x277   : > { %v3488_v42 = vmul.f32 0.25, %v3424_v33  ;;  %v3489_v56 = vmul.f32 0.25, %v3425_v40  ;;  %v3762_v32 = vrot.slane %v3487_v16, %v6120_v58  ;;  %v3358_v47 = vadd.f32 %v4245_v46, %v2666_v6 }
 0x278   : > { %v2630_v52 = vrot.slane %v2616_v49, %v6118_v35  ;;  %v2631_v62 = vcombine.high %v2623_v57, %v2623_v57  ;;  %v4234_v36 = vrot.slane %v2623_v57, 9  ;;  %v3490_v1 = vmul.f32 0.25, %v3426_v20  ;;  %v4787_v20 = vpop.f32.mrf.mxu0 }
 0x279   : > { %v3766_v63 = vrot.slane %v3488_v42, %v6120_v58  ;;  %v3770_v29 = vrot.slane %v3489_v56, %v6120_v58  ;;  %v2121_v10 = vadd.f32 %v4786_v39, %v1960_v5  ;;  %v2113_v25 = vadd.f32 %v2112_v7, %v1952_v44 }
 0x27a   : > { %v2632_v18 = vcombine.high %v2630_v52, %v2630_v52  ;;  %v4235_v60 = vrot.slane %v2631_v62, 9  ;;  %v4236_v27 = vrot.slane %v2630_v52, 9  ;;  %v3347_v23 = vadd.f32 %v4234_v36, %v2623_v57 }
 0x27b   : > { %v3774_v59 = vrot.slane %v3490_v1, %v6120_v58  ;;  %v3872_v43 = vsel %vm3823_vm2, %v3766_v63, %v3762_v32  ;;  %v2157_v12 = vmax.f32 %v2121_v10, 0.0  ;;  %v2155_v54 = vmax.f32 %v2113_v25, 0.0 }
 0x27c   : > { %v3873_v61 = vsel %vm3825_vm3, %v3770_v29, %v3872_v43  ;;  %v4237_v53 = vrot.slane %v2632_v18, 9  ;;  %v3348_v9 = vadd.f32 %v4235_v60, %v2631_v62  ;;  %v3349_v21 = vadd.f32 %v4236_v27, %v2630_v52 }
 0x27d   : > { %v3427_v41 = vadd.f32 %v3355_v28, %v3347_v23  ;;  %v3874_v26 = vsel %vm3827_vm4, %v3774_v59, %v3873_v61  ;;  %v4715_v24 = vadd.f32 %v4714_v37, %v4713_v19  ;;  %v2701_v17 = vcombine.high %v2157_v12, %v2157_v12  ;;  %v2115_v23 = vpop.f32.mrf.mxu0 }
 0x27e   : > { %v3350_v45 = vadd.f32 %v4237_v53, %v2632_v18  ;;  %v3428_v48 = vadd.f32 %v3356_v3, %v3348_v9  ;;  %v3429_v50 = vadd.f32 %v3357_v55, %v3349_v21  ;;  %v2708_v11 = vrot.slane %v2157_v12, %v6118_v35 }
 0x27f   : > { %v3491_v4 = vmul.f32 0.25, %v3427_v41  ;;  %v2667_v44 = vcombine.high %v2155_v54, %v2155_v54  ;;  %v2674_v51 = vrot.slane %v2155_v54, %v6118_v35  ;;  %v2715_v22 = vrot.slane %v2701_v17, %v6118_v35 }
 0x280   : > { %v3430_v38 = vadd.f32 %v3358_v47, %v3350_v45  ;;  %v3492_v13 = vmul.f32 0.25, %v3428_v48  ;;  %v3493_v49 = vmul.f32 0.25, %v3429_v50  ;;  %v2716_v14 = vcombine.high %v2708_v11, %v2708_v11 }
 0x281   : > { %v3778_v30 = vrot.slane %v3491_v4, %v6120_v58  ;;  %v4254_v6 = vrot.slane %v2708_v11, 9  ;;  %v2681_v39 = vrot.slane %v2667_v44, %v6118_v35  ;;  %v2717_v33 = vcombine.high %v2715_v22, %v2715_v22 }
 0x282   : > { %v3494_v34 = vmul.f32 0.25, %v3430_v38  ;;  %v3782_v15 = vrot.slane %v3492_v13, %v6120_v58  ;;  %v3786_v28 = vrot.slane %v3493_v49, %v6120_v58  ;;  %v4255_v40 = vrot.slane %v2716_v14, 9 }
 0x283   : > { %v3875_v2 = vsel %vm3829_vm5, %v3778_v30, %v3874_v26  ;;  %v4256_v16 = vrot.slane %v2715_v22, 9  ;;  %v2682_v55 = vcombine.high %v2674_v51, %v2674_v51  ;;  %v2683_v57 = vcombine.high %v2681_v39, %v2681_v39 }
 0x284   : > { %v3790_v46 = vrot.slane %v3494_v34, %v6120_v58  ;;  %v3876_v3 = vsel %vm3831_vm6, %v3782_v15, %v3875_v2  ;;  %v4257_v56 = vrot.slane %v2717_v33, 9  ;;  %v4246_v32 = vrot.slane %v2674_v51, 9 }
 0x285   : > { %v3877_v42 = vsel %vm3833_vm7, %v3786_v28, %v3876_v3  ;;  %v4248_v19 = vrot.slane %v2681_v39, 9  ;;  %v4247_v52 = vrot.slane %v2682_v55, 9  ;;  %v4249_v62 = vrot.slane %v2683_v57, 9 }
 0x286   : > { %v3878_v47 = vsel %vm3835_vm8, %v3790_v46, %v3877_v42  ;;  %v3367_v36 = vadd.f32 %v4254_v6, %v2708_v11  ;;  %v3359_v7 = vadd.f32 %v4246_v32, %v2674_v51  ;;  %v3368_v63 = vadd.f32 %v4255_v40, %v2716_v14 }
 0x287   : > { %3900 = vst [vmem:[%s6222_s5 + $0x30] sm:$0xff] %v3878_v47  ;;  %v3361_v1 = vadd.f32 %v4248_v19, %v2681_v39  ;;  %v3369_v29 = vadd.f32 %v4256_v16, %v2715_v22  ;;  %v3360_v5 = vadd.f32 %v4247_v52, %v2682_v55  ;;  %v3362_v18 = vadd.f32 %v4249_v62, %v2683_v57 }
 0x288   : > { %v3370_v60 = vadd.f32 %v4257_v56, %v2717_v33  ;;  %v1963_v27 = vadd.f32 %v4715_v24, %v6141_v0  ;;  %v3431_v59 = vadd.f32 %v3367_v36, %v3359_v7  ;;  %v1955_v10 = vadd.f32 %v6400_v8, %v6108_v31 }
 0x289   : > { %v3433_v43 = vadd.f32 %v3369_v29, %v3361_v1  ;;  %v3432_v25 = vadd.f32 %v3368_v63, %v3360_v5 }
 0x28a   : > { %v3434_v37 = vadd.f32 %v3370_v60, %v3362_v18  ;;  %v2124_v61 = vadd.f32 %v4787_v20, %v1963_v27  ;;  %v3495_v53 = vmul.f32 0.25, %v3431_v59  ;;  %v2116_v21 = vadd.f32 %v2115_v23, %v1955_v10 }
 0x28b   : > { %v3497_v9 = vmul.f32 0.25, %v3433_v43  ;;  %v3496_v41 = vmul.f32 0.25, %v3432_v25 }
 0x28c   : > { %v3498_v26 = vmul.f32 0.25, %v3434_v37  ;;  %v2158_v12 = vmax.f32 %v2124_v61, 0.0  ;;  %v2156_v45 = vmax.f32 %v2116_v21, 0.0  ;;  %v3794_v0 = vrot.slane %v3495_v53, %v6120_v58 }
 0x28d   : > { %v3802_v54 = vrot.slane %v3497_v9, %v6120_v58  ;;  %v3798_v48 = vrot.slane %v3496_v41, %v6120_v58 }
 0x28e   : > { %v2718_v50 = vcombine.high %v2158_v12, %v2158_v12  ;;  %v2725_v24 = vrot.slane %v2158_v12, %v6118_v35  ;;  %v3806_v31 = vrot.slane %v3498_v26, %v6120_v58  ;;  %v2684_v8 = vcombine.high %v2156_v45, %v2156_v45 }
 0x28f   : > { %v2691_v4 = vrot.slane %v2156_v45, %v6118_v35  ;;  %v3879_v17 = vsel %vm3823_vm2, %v3798_v48, %v3794_v0 }
 0x290   : > { %v2732_v11 = vrot.slane %v2718_v50, %v6118_v35  ;;  %v2733_v44 = vcombine.high %v2725_v24, %v2725_v24  ;;  %v4258_v38 = vrot.slane %v2725_v24, 9  ;;  %v3880_v13 = vsel %vm3825_vm3, %v3802_v54, %v3879_v17 }
 0x291   : > { %v2698_v49 = vrot.slane %v2684_v8, %v6118_v35  ;;  %v2699_v51 = vcombine.high %v2691_v4, %v2691_v4  ;;  %v4250_v30 = vrot.slane %v2691_v4, 9  ;;  %v3881_v46 = vsel %vm3827_vm4, %v3806_v31, %v3880_v13 }
 0x292   : > { %v2734_v22 = vcombine.high %v2732_v11, %v2732_v11  ;;  %v4259_v14 = vrot.slane %v2733_v44, 9  ;;  %v4260_v6 = vrot.slane %v2732_v11, 9  ;;  %v3371_v34 = vadd.f32 %v4258_v38, %v2725_v24 }
 0x293   : > { %v2700_v15 = vcombine.high %v2698_v49, %v2698_v49  ;;  %v4251_v28 = vrot.slane %v2699_v51, 9  ;;  %v4252_v39 = vrot.slane %v2698_v49, 9  ;;  %v3363_v2 = vadd.f32 %v4250_v30, %v2691_v4 }
 0x294   : > { %v4261_v33 = vrot.slane %v2734_v22, 9  ;;  %v3372_v40 = vadd.f32 %v4259_v14, %v2733_v44  ;;  %v3373_v16 = vadd.f32 %v4260_v6, %v2732_v11 }
 0x295   : > { %v4253_v3 = vrot.slane %v2700_v15, 9  ;;  %v3364_v55 = vadd.f32 %v4251_v28, %v2699_v51  ;;  %v3365_v35 = vadd.f32 %v4252_v39, %v2698_v49  ;;  %v3435_v57 = vadd.f32 %v3371_v34, %v3363_v2 }
 0x296   : > { %v3374_v20 = vadd.f32 %v4261_v33, %v2734_v22 }
 0x297   : > { %v3366_v42 = vadd.f32 %v4253_v3, %v2700_v15  ;;  %v3436_v56 = vadd.f32 %v3372_v40, %v3364_v55  ;;  %v3437_v32 = vadd.f32 %v3373_v16, %v3365_v35  ;;  %v3499_v19 = vmul.f32 0.25, %v3435_v57 }
 0x299   : > { %v3438_v47 = vadd.f32 %v3374_v20, %v3366_v42  ;;  %v3500_v52 = vmul.f32 0.25, %v3436_v56  ;;  %v3501_v62 = vmul.f32 0.25, %v3437_v32  ;;  %v3810_v36 = vrot.slane %v3499_v19, %v6120_v58 }
 0x29b   : > { %v3502_v7 = vmul.f32 0.25, %v3438_v47  ;;  %v3814_v1 = vrot.slane %v3500_v52, %v6120_v58  ;;  %v3818_v63 = vrot.slane %v3501_v62, %v6120_v58  ;;  %v3882_v29 = vsel %vm3829_vm5, %v3810_v36, %v3881_v46 }
 0x29d   : > { %v3822_v5 = vrot.slane %v3502_v7, %v6120_v58  ;;  %v3883_v18 = vsel %vm3831_vm6, %v3814_v1, %v3882_v29 }
 0x29e   : > { %v3884_v60 = vsel %vm3833_vm7, %v3818_v63, %v3883_v18 }
 0x29f   : > { %v3885_v27 = vsel %vm3835_vm8, %v3822_v5, %v3884_v60 }
 0x2a0   : > { %3901 = vst [vmem:[%s6222_s5 + $0x38] sm:$0xff] %v3885_v27 }
 0x2a1   : > { %4989 = shalt.err (!%p4986_p5)
}
 0x2a2   : > { %s4990_s26 = scalar_lea.hbm %s6464_s11, 1024  ;;  %s4994_s29 = scalar_lea.hbm %s6521_s3, 2048 }
 0x2a3   : > { %p4991_p6 = scmp.ne.s32.totalorder %s6464_s11, %s4990_s26  ;;  %p4995_p10 = scmp.lt.s32.totalorder %s6464_s11, %s6521_s3 }
 0x2a4   : > { %p4996_p11 = scmp.lt.s32.totalorder %s4994_s29, %s4990_s26 }
 0x2a5   : > { %p4992_p7 = pnand %p4991_p6, %p5118_p4 }
 0x2a6   : > { %p4997_p12 = por %p4996_p11, %p4995_p10 }
 0x2a7   : > { %p4993_p9 = pneg %p4992_p7 }
 0x2a9   : > { %p4998_p13 = pnand %p4997_p12, %p4993_p9 }
 0x2ab   : > { %5001 = shalt.err (!%p4998_p13)
}
 0x2ac   : > { %s5056_s4 = smov 128   ;;  %s5057_s5 = smov 8  }
 0x2ad   : > { %4805 = dma.vmem_to_hbm [thread:$0]  (%p5118_p4), %s6466_s8, 1024, %s6464_s11, %s6473_s15, %s5056_s4, %s5056_s4, %s5057_s5  }
 0x2ae PF: > { %p4811_p0 = scmp.ge.s32.totalorder %s5052_s17, 2  ;;  %s3932_s7 = sand.u32 1, %s5032_s12  }
 0x2af   : > { %s3933_s9 = scalar_lea.sflag [#allocation3], %s3932_s7 }
 0x2b0   : > { %p4808_p1 = pnand %p4811_p0, %p5125_p8 }
 0x2b2   : > { %p4809_p2 = pneg %p4808_p1 }
 0x2b4   : > { %5027 = dma.done.wait (%p4809_p2), %s3933_s9, 1024  }
 0x2b5   : > { %5029 = vsyncadd (%p4809_p2), %s3933_s9, 4294966272  ;;  %s16_s17 = sadd.s32 1, %s5052_s17   ;;  %s6548_s12 = smov %s5036_s13 }
 0x2b6   : > { %p13_p3 = scmp.ge.s32.totalorder %s16_s17, 4   ;;  %s6549_s13 = smov %s5040_s14 }
 0x2b7   : > { %s6550_s14 = smov %s5131_s25  ;;  %s6551_s15 = smov %s5048_s16 }
 0x2b8   : > { %s6552_s16 = smov %s6554_s20  ;;  %15 = sbr.rel (!%p13_p3) target bundleno = 4 (0x4), region = 73 }
 0x2bd   :  { %3938 = vsyncpa [#allocation3], 1 }
 0x2be   :  { %3940 = vsyncpa [#allocation3 + $0x1], 1 }

</bundles_post_ra>
